<compile_context>
chip_gen: v6e
topology: v6e:2x2x1
jax: 0.10.0
libtpu: 0.0.40
codegen_flags: <defaults>
</compile_context>

<pallas_src>
import functools
import math

import jax
import jax.numpy as jnp
from jax.experimental import pallas as pl
from jax.experimental.pallas import tpu as pltpu

EPS = 1e-5


# ---------------- small helpers -----------------------------------------------

def _round_up(x, m):
    return (x + m - 1) // m * m


def _divisor_row_tile(h, w):
    """Largest divisor of h keeping the matmul M-dim (rows * w) around <= 512."""
    cap = max(1, min(h, max(1, 512 // max(w, 1))))
    best = 1
    for d in range(1, cap + 1):
        if h % d == 0:
            best = d
    return best


def _vmem_limit(block_bytes):
    # Double-buffered pipeline blocks + headroom; safe on v5e/v6e (128 MiB
    # physical, 16/32 MiB default scoped) and v7x (64 MiB physical per TC).
    return int(min(max(2 * int(block_bytes) + (16 << 20), 32 << 20), 64 << 20))


def _pad_channels(a, target):
    pad = target - a.shape[-1]
    if pad == 0:
        return a
    cfg = [(0, 0)] * (a.ndim - 1) + [(0, pad)]
    return jnp.pad(a, cfg)


# ---------------- pass 1: 3x3 conv (9 shifted K=Cin dots) + partial BN stats ---

def _conv3x3_stats_kernel(x_ref, w_ref, y_ref, sum_ref, ssq_ref, *, tr, w):
    # x_ref: (1, tr+2, W+2, Cinp) bf16 halo block
    # w_ref: (3, 3, Cinp, tc)     bf16 weight tile
    # y_ref: (1, tr, W, tc)       bf16 pre-BN conv output
    # sum_ref / ssq_ref: (1, 1, tc) f32 per-row-block partial statistics
    cin = x_ref.shape[-1]
    tc = y_ref.shape[-1]
    acc = jnp.zeros((tr * w, tc), jnp.float32)
    for dy in range(3):
        for dx in range(3):
            patch = x_ref[0, dy:dy + tr, dx:dx + w, :].reshape(tr * w, cin)
            acc = acc + jnp.dot(patch, w_ref[dy, dx],
                                preferred_element_type=jnp.float32)
    y_ref[0] = acc.reshape(tr, w, tc).astype(y_ref.dtype)
    sum_ref[0] = jnp.sum(acc, axis=0, keepdims=True)
    ssq_ref[0] = jnp.sum(acc * acc, axis=0, keepdims=True)


# ---------------- pass 2: BN normalize + ReLU (+ fused recurrent/residual add) -

def _bn_relu_kernel(y_ref, sum_ref, ssq_ref, g_ref, b_ref, o_ref, *,
                    inv_count, eps):
    mean = sum_ref[...] * inv_count                         # (1, tc)
    var = jnp.maximum(ssq_ref[...] * inv_count - mean * mean, 0.0)
    scale = g_ref[...] * jax.lax.rsqrt(var + eps)
    shift = b_ref[...] - mean * scale
    y = y_ref[...].astype(jnp.float32)                      # (1, tr, W, tc)
    o = y * scale.reshape(1, 1, 1, -1) + shift.reshape(1, 1, 1, -1)
    o_ref[...] = jnp.maximum(o, 0.0).astype(o_ref.dtype)


def _bn_relu_add_kernel(y_ref, sum_ref, ssq_ref, g_ref, b_ref, base_ref,
                        o_ref, *, inv_count, eps):
    mean = sum_ref[...] * inv_count
    var = jnp.maximum(ssq_ref[...] * inv_count - mean * mean, 0.0)
    scale = g_ref[...] * jax.lax.rsqrt(var + eps)
    shift = b_ref[...] - mean * scale
    y = y_ref[...].astype(jnp.float32)
    o = jnp.maximum(y * scale.reshape(1, 1, 1, -1)
                    + shift.reshape(1, 1, 1, -1), 0.0)
    o_ref[...] = (o + base_ref[...].astype(jnp.float32)).astype(o_ref.dtype)


# ---------------- 1x1 convolution (block entry) --------------------------------

def _conv1x1_kernel(x_ref, w_ref, b_ref, o_ref):
    acc = jnp.dot(x_ref[...], w_ref[...], preferred_element_type=jnp.float32)
    o_ref[...] = (acc + b_ref[...]).astype(o_ref.dtype)


# ---------------- wrappers ------------------------------------------------------

def conv3x3_bn_relu(x, w, gamma, beta, base=None, out_dtype=jnp.bfloat16):
    """Fused Conv2d(3x3, pad=1) + BatchNorm(batch stats) + ReLU.

    x:    (N, H, W, Cinp) activation, channels already padded to a multiple of 128.
    w:    (3, 3, Cin_real, Cout_real) conv weights (bias dropped: cancelled by BN).
    base: optional (N, H, W, Coutp); output becomes relu(bn(conv(x))) + base,
          i.e. the recurrent / residual add fused into the epilogue.
    Returns (N, H, W, Coutp) in `out_dtype`; padded channels stay exactly zero.
    """
    N, H, W, Cinp = x.shape
    assert Cinp % 128 == 0
    Cout = w.shape[-1]
    Coutp = _round_up(Cout, 128)
    NHW = N * H * W

    tr = _divisor_row_tile(H, W)             # output rows per block (divides H)
    nrb = H // tr
    NB = N * nrb
    TRH, Wp = tr + 2, W + 2
    tc = 256 if Coutp % 256 == 0 else 128
    n_ct = Coutp // tc

    # Weights: pad Cin/Cout to lane multiples, bf16 for the MXU.
    wp = jnp.pad(w, ((0, 0), (0, 0),
                     (0, Cinp - w.shape[2]),
                     (0, Coutp - Cout))).astype(jnp.bfloat16)

    # Spatial zero-pad + halo'd row blocks: (NB, tr+2, W+2, Cinp) bf16.
    xp = jnp.pad(x.astype(jnp.bfloat16), ((0, 0), (1, 1), (1, 1), (0, 0)))
    rows = (jnp.arange(nrb)[:, None] * tr + jnp.arange(TRH)[None, :]).reshape(-1)
    xh = jnp.take(xp, rows, axis=1).reshape(NB, TRH, Wp, Cinp)

    # ---- pass 1: conv + partial BN statistics ----
    kern1 = functools.partial(_conv3x3_stats_kernel, tr=tr, w=W)
    p1_bytes = (TRH * Wp * Cinp * 2 + 9 * Cinp * tc * 2
                + tr * W * tc * (2 + 4) + 2 * tc * 4)
    y4, psum, pssq = pl.pallas_call(
        kern1,
        out_shape=(jax.ShapeDtypeStruct((NB, tr, W, Coutp), jnp.bfloat16),
                   jax.ShapeDtypeStruct((NB, 1, Coutp), jnp.float32),
                   jax.ShapeDtypeStruct((NB, 1, Coutp), jnp.float32)),
        grid_spec=pltpu.PrefetchScalarGridSpec(
            num_scalar_prefetch=0,
            grid=(NB, n_ct),
            in_specs=[
                pl.BlockSpec((1, TRH, Wp, Cinp), lambda i, j: (i, 0, 0, 0)),
                pl.BlockSpec((3, 3, Cinp, tc), lambda i, j: (0, 0, 0, j)),
            ],
            out_specs=(
                pl.BlockSpec((1, tr, W, tc), lambda i, j: (i, 0, 0, j)),
                pl.BlockSpec((1, 1, tc), lambda i, j: (i, 0, j)),
                pl.BlockSpec((1, 1, tc), lambda i, j: (i, 0, j)),
            ),
        ),
        compiler_params=pltpu.CompilerParams(
            dimension_semantics=("parallel", "parallel"),
            vmem_limit_bytes=_vmem_limit(p1_bytes)),
        cost_estimate=pl.CostEstimate(
            flops=2 * NHW * 9 * Cinp * Coutp,
            transcendentals=0,
            bytes_accessed=int(xh.size * 2 + wp.size * 2
                               + NHW * Coutp * 2 + 2 * NB * Coutp * 4)),
    )(xh, wp)

    # Reduce the tiny per-row-block partial statistics -> (1, Coutp).
    csum = jnp.sum(psum, axis=0)
    cssq = jnp.sum(pssq, axis=0)
    gp = _pad_channels(gamma.reshape(1, -1).astype(jnp.float32), Coutp)
    bp = _pad_channels(beta.reshape(1, -1).astype(jnp.float32), Coutp)

    # ---- pass 2: BN normalize + ReLU (+ fused add) ----
    ins = [y4, csum, cssq, gp, bp]
    in_specs = [
        pl.BlockSpec((1, tr, W, tc), lambda i, j: (i, 0, 0, j)),
        pl.BlockSpec((1, tc), lambda i, j: (0, j)),
        pl.BlockSpec((1, tc), lambda i, j: (0, j)),
        pl.BlockSpec((1, tc), lambda i, j: (0, j)),
        pl.BlockSpec((1, tc), lambda i, j: (0, j)),
    ]
    if base is not None:
        ins.append(base.astype(jnp.bfloat16).reshape(NB, tr, W, Coutp))
        in_specs.append(pl.BlockSpec((1, tr, W, tc), lambda i, j: (i, 0, 0, j)))
        body = _bn_relu_add_kernel
    else:
        body = _bn_relu_kernel
    kern2 = functools.partial(body, inv_count=1.0 / float(NHW), eps=EPS)

    out_itemsize = jnp.dtype(out_dtype).itemsize
    p2_bytes = (tr * W * tc * (2 + (2 if base is not None else 0) + out_itemsize)
                + 4 * tc * 4)
    out4 = pl.pallas_call(
        kern2,
        out_shape=jax.ShapeDtypeStruct((NB, tr, W, Coutp), out_dtype),
        grid_spec=pltpu.PrefetchScalarGridSpec(
            num_scalar_prefetch=0,
            grid=(NB, n_ct),
            in_specs=in_specs,
            out_specs=pl.BlockSpec((1, tr, W, tc), lambda i, j: (i, 0, 0, j)),
        ),
        compiler_params=pltpu.CompilerParams(
            dimension_semantics=("parallel", "parallel"),
            vmem_limit_bytes=_vmem_limit(p2_bytes)),
    )(*ins)
    return out4.reshape(N, H, W, Coutp)


def conv1x1(x, w, b):
    """1x1 conv with bias. x: (N,H,W,Cin) f32, w: (Cin,Cout), b: (Cout,).

    Returns (N, H, W, Coutp) bf16 with Coutp = round_up(Cout, 128); padded
    channels are exactly zero.
    """
    N, H, W, Cin = x.shape
    Cout = w.shape[-1]
    Cinp = _round_up(Cin, 128)
    Coutp = _round_up(Cout, 128)
    NHW = N * H * W
    tr1 = 256
    NHWp = _round_up(NHW, tr1)
    tc = 256 if Coutp % 256 == 0 else 128
    n_ct = Coutp // tc

    x2 = jnp.pad(x.reshape(NHW, Cin).astype(jnp.bfloat16),
                 ((0, NHWp - NHW), (0, Cinp - Cin)))
    wpad = jnp.pad(w, ((0, Cinp - Cin), (0, Coutp - Cout))).astype(jnp.bfloat16)
    bpad = jnp.pad(b.reshape(1, Cout),
                   ((0, 0), (0, Coutp - Cout))).astype(jnp.float32)

    blk_bytes = tr1 * Cinp * 2 + Cinp * tc * 2 + tc * 4 + tr1 * tc * 2
    out = pl.pallas_call(
        _conv1x1_kernel,
        out_shape=jax.ShapeDtypeStruct((NHWp, Coutp), jnp.bfloat16),
        grid_spec=pltpu.PrefetchScalarGridSpec(
            num_scalar_prefetch=0,
            grid=(NHWp // tr1, n_ct),
            in_specs=[
                pl.BlockSpec((tr1, Cinp), lambda i, j: (i, 0)),
                pl.BlockSpec((Cinp, tc), lambda i, j: (0, j)),
                pl.BlockSpec((1, tc), lambda i, j: (0, j)),
            ],
            out_specs=pl.BlockSpec((tr1, tc), lambda i, j: (i, j)),
        ),
        compiler_params=pltpu.CompilerParams(
            dimension_semantics=("parallel", "parallel"),
            vmem_limit_bytes=_vmem_limit(blk_bytes)),
    )(x2, wpad, bpad)
    return out[:NHW].reshape(N, H, W, Coutp)


# ---------------- module composition --------------------------------------------

def recurrent_block(x, p, t=2, final_base=None, final_dtype=jnp.bfloat16):
    """PyTorch Recurrent_block.forward with every add fused into a conv epilogue.

        x1 = conv(x); repeat t times: x1 = conv(x + x1)

    Intermediate x1 values are only ever consumed as (x + x1), so every conv
    except the last emits x + conv(.) directly; the caller chooses what is
    added to the last conv output (`final_base`, or nothing).
    """
    cur = conv3x3_bn_relu(x, p["w"], p["gamma"], p["beta"], base=x)  # x + conv(x)
    for i in range(t):
        last = (i == t - 1)
        cur = conv3x3_bn_relu(cur, p["w"], p["gamma"], p["beta"],
                              base=(final_base if last else x),
                              out_dtype=(final_dtype if last else jnp.bfloat16))
    return cur


def rrcnn_forward(params, x_nchw, t=2):
    """RRCNN_block.forward: Conv_1x1 -> Recurrent_block x2 -> residual add."""
    x = jnp.transpose(x_nchw, (0, 2, 3, 1)).astype(jnp.float32)  # NCHW -> NHWC
    ch_out = params["b1"].shape[0]
    x0 = conv1x1(x, params["w1"], params["b1"])                  # (N,H,W,Coutp) bf16
    y0 = recurrent_block(x0, params["rb1"], t=t)
    # Final residual add (x0 + RB2 output) is fused into the last conv of rb2.
    y1 = recurrent_block(y0, params["rb2"], t=t,
                         final_base=x0, final_dtype=jnp.float32)
    y = y1[..., :ch_out]                                         # drop lane padding
    return jnp.transpose(y, (0, 3, 1, 2))                        # NHWC -> NCHW


# ---------------- parameter init -------------------------------------------------

def _conv_init(key, kh, kw, cin, cout):
    fan_in = kh * kw * cin
    bound = 1.0 / math.sqrt(fan_in)
    kw_, kb_ = jax.random.split(key)
    w = jax.random.uniform(kw_, (kh, kw, cin, cout), jnp.float32, -bound, bound)
    b = jax.random.uniform(kb_, (cout,), jnp.float32, -bound, bound)
    return w, b


def _recurrent_init(key, ch):
    w, _ = _conv_init(key, 3, 3, ch, ch)   # 3x3 bias dropped (cancelled by BN)
    return dict(w=w,
                gamma=jnp.ones((ch,), jnp.float32),
                beta=jnp.zeros((ch,), jnp.float32))


def init_rrcnn(key, ch_in, ch_out):
    k1, k2, k3 = jax.random.split(key, 3)
    w1, b1 = _conv_init(k1, 1, 1, ch_in, ch_out)
    return dict(w1=w1.reshape(ch_in, ch_out), b1=b1,
                rb1=_recurrent_init(k2, ch_out),
                rb2=_recurrent_init(k3, ch_out))


# ---------------- main ------------------------------------------------------------

if __name__ == "__main__":
    key = jax.random.PRNGKey(0)
    pkey, xkey = jax.random.split(key)

    ch_in, ch_out, t = 3, 32, 2
    params = init_rrcnn(pkey, ch_in, ch_out)

    # NCHW input like the PyTorch module: (batch=2, ch_in=3, 16, 16).
    x = jax.random.normal(xkey, (2, ch_in, 16, 16), jnp.float32)

    fwd = jax.jit(functools.partial(rrcnn_forward, t=t))
    out = jax.block_until_ready(fwd(params, x))

    assert out.shape == (2, ch_out, 16, 16), out.shape
    assert out.dtype == jnp.float32
    assert bool(jnp.all(jnp.isfinite(out)))
    print("KERNEL_OK")
</pallas_src>

<mosaic_0001>
module attributes {stable_mosaic.version = 11 : i64} {
  func.func @_conv1x1_kernel(%arg0: i32, %arg1: i32, %arg2: memref<256x128xbf16, #tpu.memory_space<vmem>>, %arg3: memref<128x128xbf16, #tpu.memory_space<vmem>>, %arg4: memref<1x128xf32, #tpu.memory_space<vmem>>, %arg5: memref<256x128xbf16, #tpu.memory_space<vmem>>) attributes {dimension_semantics = [#tpu.dimension_semantics<parallel>, #tpu.dimension_semantics<parallel>], iteration_bounds = array<i64: 2, 1>, scalar_prefetch = 0 : i64, scratch_operands = 0 : i64, tpu.core_type = #tpu.core_type<tc>, window_params = [{transform_indices = @transform_0, window_bounds = array<i64: 256, 128>}, {transform_indices = @transform_1, window_bounds = array<i64: 128, 128>}, {transform_indices = @transform_2, window_bounds = array<i64: 1, 128>}, {transform_indices = @transform_3, window_bounds = array<i64: 256, 128>}]} {
    %c0 = arith.constant 0 : index
    %c0_0 = arith.constant 0 : index
    %0 = vector.load %arg2[%c0, %c0_0] : memref<256x128xbf16, #tpu.memory_space<vmem>>, vector<256x128xbf16>
    %c0_1 = arith.constant 0 : index
    %c0_2 = arith.constant 0 : index
    %1 = vector.load %arg3[%c0_1, %c0_2] : memref<128x128xbf16, #tpu.memory_space<vmem>>, vector<128x128xbf16>
    %cst = arith.constant dense<0.000000e+00> : vector<256x128xf32>
    %2 = tpu.matmul %0, %1, %cst {dimension_numbers = #tpu.dot_dimension_numbers<[1], [0], [0], [1], [0, 0, 1, 1], [], []>} : vector<256x128xbf16>, vector<128x128xbf16>, vector<256x128xf32> -> vector<256x128xf32>
    %c0_3 = arith.constant 0 : index
    %c0_4 = arith.constant 0 : index
    %3 = vector.load %arg4[%c0_3, %c0_4] : memref<1x128xf32, #tpu.memory_space<vmem>>, vector<1x128xf32>
    %4 = vector.broadcast %3 : vector<1x128xf32> to vector<256x128xf32>
    %5 = arith.addf %2, %4 : vector<256x128xf32>
    %6 = arith.truncf %5 : vector<256x128xf32> to vector<256x128xbf16>
    %c0_5 = arith.constant 0 : index
    %c0_6 = arith.constant 0 : index
    %7 = vector.load %arg5[%c0_5, %c0_6] : memref<256x128xbf16, #tpu.memory_space<vmem>>, vector<256x128xbf16>
    tpu.vector_store %arg5[%c0_5, %c0_6], %6 {strides = array<i32>} : memref<256x128xbf16, #tpu.memory_space<vmem>>, vector<256x128xbf16>,
    return
  }
  func.func @transform_0(%arg0: i32, %arg1: i32) -> (i32, i32) {
    %c0_i32 = arith.constant 0 : i32
    %c0_i32_0 = arith.constant 0 : i32
    return %arg0, %c0_i32 : i32, i32
  }
  func.func @transform_1(%arg0: i32, %arg1: i32) -> (i32, i32) {
    %c0_i32 = arith.constant 0 : i32
    %c0_i32_0 = arith.constant 0 : i32
    return %c0_i32, %arg1 : i32, i32
  }
  func.func @transform_2(%arg0: i32, %arg1: i32) -> (i32, i32) {
    %c0_i32 = arith.constant 0 : i32
    %c0_i32_0 = arith.constant 0 : i32
    return %c0_i32, %arg1 : i32, i32
  }
  func.func @transform_3(%arg0: i32, %arg1: i32) -> (i32, i32) {
    %c0_i32 = arith.constant 0 : i32
    return %arg0, %arg1 : i32, i32
  }
}

module attributes {stable_mosaic.version = 11 : i64} {
  func.func @_bn_relu_add_kernel(%arg0: i32, %arg1: i32, %arg2: memref<1x16x16x128xbf16, #tpu.memory_space<vmem>>, %arg3: memref<1x128xf32, #tpu.memory_space<vmem>>, %arg4: memref<1x128xf32, #tpu.memory_space<vmem>>, %arg5: memref<1x128xf32, #tpu.memory_space<vmem>>, %arg6: memref<1x128xf32, #tpu.memory_space<vmem>>, %arg7: memref<1x16x16x128xbf16, #tpu.memory_space<vmem>>, %arg8: memref<1x16x16x128xbf16, #tpu.memory_space<vmem>>) attributes {dimension_semantics = [#tpu.dimension_semantics<parallel>, #tpu.dimension_semantics<parallel>], iteration_bounds = array<i64: 2, 1>, scalar_prefetch = 0 : i64, scratch_operands = 0 : i64, tpu.core_type = #tpu.core_type<tc>, window_params = [{transform_indices = @transform_0, window_bounds = array<i64: 1, 16, 16, 128>}, {transform_indices = @transform_1, window_bounds = array<i64: 1, 128>}, {transform_indices = @transform_2, window_bounds = array<i64: 1, 128>}, {transform_indices = @transform_3, window_bounds = array<i64: 1, 128>}, {transform_indices = @transform_4, window_bounds = array<i64: 1, 128>}, {transform_indices = @transform_5, window_bounds = array<i64: 1, 16, 16, 128>}, {transform_indices = @transform_6, window_bounds = array<i64: 1, 16, 16, 128>}]} {
    %c0 = arith.constant 0 : index
    %c0_0 = arith.constant 0 : index
    %0 = vector.load %arg3[%c0, %c0_0] : memref<1x128xf32, #tpu.memory_space<vmem>>, vector<1x128xf32>
    %cst = arith.constant 0.001953125 : f32
    %1 = vector.broadcast %cst : f32 to vector<1x128xf32>
    %2 = arith.mulf %0, %1 : vector<1x128xf32>
    %c0_1 = arith.constant 0 : index
    %c0_2 = arith.constant 0 : index
    %3 = vector.load %arg4[%c0_1, %c0_2] : memref<1x128xf32, #tpu.memory_space<vmem>>, vector<1x128xf32>
    %cst_3 = arith.constant 0.001953125 : f32
    %4 = vector.broadcast %cst_3 : f32 to vector<1x128xf32>
    %5 = arith.mulf %3, %4 : vector<1x128xf32>
    %6 = arith.mulf %2, %2 : vector<1x128xf32>
    %7 = arith.subf %5, %6 : vector<1x128xf32>
    %cst_4 = arith.constant 0.000000e+00 : f32
    %8 = vector.broadcast %cst_4 : f32 to vector<1x128xf32>
    %9 = arith.maximumf %7, %8 : vector<1x128xf32>
    %c0_5 = arith.constant 0 : index
    %c0_6 = arith.constant 0 : index
    %10 = vector.load %arg5[%c0_5, %c0_6] : memref<1x128xf32, #tpu.memory_space<vmem>>, vector<1x128xf32>
    %cst_7 = arith.constant 9.99999974E-6 : f32
    %11 = vector.broadcast %cst_7 : f32 to vector<1x128xf32>
    %12 = arith.addf %9, %11 : vector<1x128xf32>
    %13 = math.rsqrt %12 : vector<1x128xf32>
    %14 = arith.mulf %10, %13 : vector<1x128xf32>
    %c0_8 = arith.constant 0 : index
    %c0_9 = arith.constant 0 : index
    %15 = vector.load %arg6[%c0_8, %c0_9] : memref<1x128xf32, #tpu.memory_space<vmem>>, vector<1x128xf32>
    %16 = arith.mulf %2, %14 : vector<1x128xf32>
    %17 = arith.subf %15, %16 : vector<1x128xf32>
    %c0_10 = arith.constant 0 : index
    %c0_11 = arith.constant 0 : index
    %c0_12 = arith.constant 0 : index
    %c0_13 = arith.constant 0 : index
    %18 = vector.load %arg2[%c0_10, %c0_11, %c0_12, %c0_13] : memref<1x16x16x128xbf16, #tpu.memory_space<vmem>>, vector<1x16x16x128xbf16>
    %19 = arith.extf %18 : vector<1x16x16x128xbf16> to vector<1x16x16x128xf32>
    %20 = vector.shape_cast %14 : vector<1x128xf32> to vector<1x1x1x128xf32>
    %21 = vector.broadcast %20 : vector<1x1x1x128xf32> to vector<1x16x16x128xf32>
    %22 = arith.mulf %19, %21 : vector<1x16x16x128xf32>
    %23 = vector.shape_cast %17 : vector<1x128xf32> to vector<1x1x1x128xf32>
    %24 = vector.broadcast %23 : vector<1x1x1x128xf32> to vector<1x16x16x128xf32>
    %25 = arith.addf %22, %24 : vector<1x16x16x128xf32>
    %cst_14 = arith.constant 0.000000e+00 : f32
    %26 = vector.broadcast %cst_14 : f32 to vector<1x16x16x128xf32>
    %27 = arith.maximumf %25, %26 : vector<1x16x16x128xf32>
    %c0_15 = arith.constant 0 : index
    %c0_16 = arith.constant 0 : index
    %c0_17 = arith.constant 0 : index
    %c0_18 = arith.constant 0 : index
    %28 = vector.load %arg7[%c0_15, %c0_16, %c0_17, %c0_18] : memref<1x16x16x128xbf16, #tpu.memory_space<vmem>>, vector<1x16x16x128xbf16>
    %29 = arith.extf %28 : vector<1x16x16x128xbf16> to vector<1x16x16x128xf32>
    %30 = arith.addf %27, %29 : vector<1x16x16x128xf32>
    %31 = arith.truncf %30 : vector<1x16x16x128xf32> to vector<1x16x16x128xbf16>
    %c0_19 = arith.constant 0 : index
    %c0_20 = arith.constant 0 : index
    %c0_21 = arith.constant 0 : index
    %c0_22 = arith.constant 0 : index
    %32 = vector.load %arg8[%c0_19, %c0_20, %c0_21, %c0_22] : memref<1x16x16x128xbf16, #tpu.memory_space<vmem>>, vector<1x16x16x128xbf16>
    tpu.vector_store %arg8[%c0_19, %c0_20, %c0_21, %c0_22], %31 {strides = array<i32>} : memref<1x16x16x128xbf16, #tpu.memory_space<vmem>>, vector<1x16x16x128xbf16>,
    return
  }
  func.func @transform_0(%arg0: i32, %arg1: i32) -> (i32, i32, i32, i32) {
    %c0_i32 = arith.constant 0 : i32
    %c0_i32_0 = arith.constant 0 : i32
    %c0_i32_1 = arith.constant 0 : i32
    return %arg0, %c0_i32, %c0_i32_0, %arg1 : i32, i32, i32, i32
  }
  func.func @transform_1(%arg0: i32, %arg1: i32) -> (i32, i32) {
    %c0_i32 = arith.constant 0 : i32
    %c0_i32_0 = arith.constant 0 : i32
    return %c0_i32, %arg1 : i32, i32
  }
  func.func @transform_2(%arg0: i32, %arg1: i32) -> (i32, i32) {
    %c0_i32 = arith.constant 0 : i32
    %c0_i32_0 = arith.constant 0 : i32
    return %c0_i32, %arg1 : i32, i32
  }
  func.func @transform_3(%arg0: i32, %arg1: i32) -> (i32, i32) {
    %c0_i32 = arith.constant 0 : i32
    %c0_i32_0 = arith.constant 0 : i32
    return %c0_i32, %arg1 : i32, i32
  }
  func.func @transform_4(%arg0: i32, %arg1: i32) -> (i32, i32) {
    %c0_i32 = arith.constant 0 : i32
    %c0_i32_0 = arith.constant 0 : i32
    return %c0_i32, %arg1 : i32, i32
  }
  func.func @transform_5(%arg0: i32, %arg1: i32) -> (i32, i32, i32, i32) {
    %c0_i32 = arith.constant 0 : i32
    %c0_i32_0 = arith.constant 0 : i32
    %c0_i32_1 = arith.constant 0 : i32
    return %arg0, %c0_i32, %c0_i32_0, %arg1 : i32, i32, i32, i32
  }
  func.func @transform_6(%arg0: i32, %arg1: i32) -> (i32, i32, i32, i32) {
    %c0_i32 = arith.constant 0 : i32
    %c0_i32_0 = arith.constant 0 : i32
    %c0_i32_1 = arith.constant 0 : i32
    return %arg0, %c0_i32, %c0_i32_0, %arg1 : i32, i32, i32, i32
  }
}

module attributes {stable_mosaic.version = 11 : i64} {
  func.func @_conv3x3_stats_kernel(%arg0: i32, %arg1: i32, %arg2: memref<1x18x18x128xbf16, #tpu.memory_space<vmem>>, %arg3: memref<3x3x128x128xbf16, #tpu.memory_space<vmem>>, %arg4: memref<1x16x16x128xbf16, #tpu.memory_space<vmem>>, %arg5: memref<1x1x128xf32, #tpu.memory_space<vmem>>, %arg6: memref<1x1x128xf32, #tpu.memory_space<vmem>>) attributes {dimension_semantics = [#tpu.dimension_semantics<parallel>, #tpu.dimension_semantics<parallel>], iteration_bounds = array<i64: 2, 1>, scalar_prefetch = 0 : i64, scratch_operands = 0 : i64, tpu.core_type = #tpu.core_type<tc>, window_params = [{transform_indices = @transform_0, window_bounds = array<i64: 1, 18, 18, 128>}, {transform_indices = @transform_1, window_bounds = array<i64: 3, 3, 128, 128>}, {transform_indices = @transform_2, window_bounds = array<i64: 1, 16, 16, 128>}, {transform_indices = @transform_3, window_bounds = array<i64: 1, 1, 128>}, {transform_indices = @transform_4, window_bounds = array<i64: 1, 1, 128>}]} {
    %cst = arith.constant 0.000000e+00 : f32
    %0 = vector.broadcast %cst : f32 to vector<256x128xf32>
    %c0 = arith.constant 0 : index
    %c0_0 = arith.constant 0 : index
    %c0_1 = arith.constant 0 : index
    %c0_2 = arith.constant 0 : index
    %1 = vector.load %arg2[%c0, %c0_0, %c0_1, %c0_2] : memref<1x18x18x128xbf16, #tpu.memory_space<vmem>>, vector<1x16x16x128xbf16>
    %2 = vector.shape_cast %1 : vector<1x16x16x128xbf16> to vector<16x16x128xbf16>
    %3 = vector.shape_cast %2 : vector<16x16x128xbf16> to vector<256x128xbf16>
    %c0_3 = arith.constant 0 : index
    %c0_4 = arith.constant 0 : index
    %c0_5 = arith.constant 0 : index
    %c0_6 = arith.constant 0 : index
    %4 = vector.load %arg3[%c0_3, %c0_4, %c0_5, %c0_6] : memref<3x3x128x128xbf16, #tpu.memory_space<vmem>>, vector<1x1x128x128xbf16>
    %5 = vector.shape_cast %4 : vector<1x1x128x128xbf16> to vector<128x128xbf16>
    %cst_7 = arith.constant dense<0.000000e+00> : vector<256x128xf32>
    %6 = tpu.matmul %3, %5, %cst_7 {dimension_numbers = #tpu.dot_dimension_numbers<[1], [0], [0], [1], [0, 0, 1, 1], [], []>} : vector<256x128xbf16>, vector<128x128xbf16>, vector<256x128xf32> -> vector<256x128xf32>
    %7 = arith.addf %0, %6 : vector<256x128xf32>
    %c0_8 = arith.constant 0 : index
    %c0_9 = arith.constant 0 : index
    %c1 = arith.constant 1 : index
    %c0_10 = arith.constant 0 : index
    %8 = vector.load %arg2[%c0_8, %c0_9, %c1, %c0_10] : memref<1x18x18x128xbf16, #tpu.memory_space<vmem>>, vector<1x16x16x128xbf16>
    %9 = vector.shape_cast %8 : vector<1x16x16x128xbf16> to vector<16x16x128xbf16>
    %10 = vector.shape_cast %9 : vector<16x16x128xbf16> to vector<256x128xbf16>
    %c0_11 = arith.constant 0 : index
    %c1_12 = arith.constant 1 : index
    %c0_13 = arith.constant 0 : index
    %c0_14 = arith.constant 0 : index
    %11 = vector.load %arg3[%c0_11, %c1_12, %c0_13, %c0_14] : memref<3x3x128x128xbf16, #tpu.memory_space<vmem>>, vector<1x1x128x128xbf16>
    %12 = vector.shape_cast %11 : vector<1x1x128x128xbf16> to vector<128x128xbf16>
    %cst_15 = arith.constant dense<0.000000e+00> : vector<256x128xf32>
    %13 = tpu.matmul %10, %12, %cst_15 {dimension_numbers = #tpu.dot_dimension_numbers<[1], [0], [0], [1], [0, 0, 1, 1], [], []>} : vector<256x128xbf16>, vector<128x128xbf16>, vector<256x128xf32> -> vector<256x128xf32>
    %14 = arith.addf %7, %13 : vector<256x128xf32>
    %c0_16 = arith.constant 0 : index
    %c0_17 = arith.constant 0 : index
    %c2 = arith.constant 2 : index
    %c0_18 = arith.constant 0 : index
    %15 = vector.load %arg2[%c0_16, %c0_17, %c2, %c0_18] : memref<1x18x18x128xbf16, #tpu.memory_space<vmem>>, vector<1x16x16x128xbf16>
    %16 = vector.shape_cast %15 : vector<1x16x16x128xbf16> to vector<16x16x128xbf16>
    %17 = vector.shape_cast %16 : vector<16x16x128xbf16> to vector<256x128xbf16>
    %c0_19 = arith.constant 0 : index
    %c2_20 = arith.constant 2 : index
    %c0_21 = arith.constant 0 : index
    %c0_22 = arith.constant 0 : index
    %18 = vector.load %arg3[%c0_19, %c2_20, %c0_21, %c0_22] : memref<3x3x128x128xbf16, #tpu.memory_space<vmem>>, vector<1x1x128x128xbf16>
    %19 = vector.shape_cast %18 : vector<1x1x128x128xbf16> to vector<128x128xbf16>
    %cst_23 = arith.constant dense<0.000000e+00> : vector<256x128xf32>
    %20 = tpu.matmul %17, %19, %cst_23 {dimension_numbers = #tpu.dot_dimension_numbers<[1], [0], [0], [1], [0, 0, 1, 1], [], []>} : vector<256x128xbf16>, vector<128x128xbf16>, vector<256x128xf32> -> vector<256x128xf32>
    %21 = arith.addf %14, %20 : vector<256x128xf32>
    %c0_24 = arith.constant 0 : index
    %c1_25 = arith.constant 1 : index
    %c0_26 = arith.constant 0 : index
    %c0_27 = arith.constant 0 : index
    %22 = vector.load %arg2[%c0_24, %c1_25, %c0_26, %c0_27] : memref<1x18x18x128xbf16, #tpu.memory_space<vmem>>, vector<1x16x16x128xbf16>
    %23 = vector.shape_cast %22 : vector<1x16x16x128xbf16> to vector<16x16x128xbf16>
    %24 = vector.shape_cast %23 : vector<16x16x128xbf16> to vector<256x128xbf16>
    %c1_28 = arith.constant 1 : index
    %c0_29 = arith.constant 0 : index
    %c0_30 = arith.constant 0 : index
    %c0_31 = arith.constant 0 : index
    %25 = vector.load %arg3[%c1_28, %c0_29, %c0_30, %c0_31] : memref<3x3x128x128xbf16, #tpu.memory_space<vmem>>, vector<1x1x128x128xbf16>
    %26 = vector.shape_cast %25 : vector<1x1x128x128xbf16> to vector<128x128xbf16>
    %cst_32 = arith.constant dense<0.000000e+00> : vector<256x128xf32>
    %27 = tpu.matmul %24, %26, %cst_32 {dimension_numbers = #tpu.dot_dimension_numbers<[1], [0], [0], [1], [0, 0, 1, 1], [], []>} : vector<256x128xbf16>, vector<128x128xbf16>, vector<256x128xf32> -> vector<256x128xf32>
    %28 = arith.addf %21, %27 : vector<256x128xf32>
    %c0_33 = arith.constant 0 : index
    %c1_34 = arith.constant 1 : index
    %c1_35 = arith.constant 1 : index
    %c0_36 = arith.constant 0 : index
    %29 = vector.load %arg2[%c0_33, %c1_34, %c1_35, %c0_36] : memref<1x18x18x128xbf16, #tpu.memory_space<vmem>>, vector<1x16x16x128xbf16>
    %30 = vector.shape_cast %29 : vector<1x16x16x128xbf16> to vector<16x16x128xbf16>
    %31 = vector.shape_cast %30 : vector<16x16x128xbf16> to vector<256x128xbf16>
    %c1_37 = arith.constant 1 : index
    %c1_38 = arith.constant 1 : index
    %c0_39 = arith.constant 0 : index
    %c0_40 = arith.constant 0 : index
    %32 = vector.load %arg3[%c1_37, %c1_38, %c0_39, %c0_40] : memref<3x3x128x128xbf16, #tpu.memory_space<vmem>>, vector<1x1x128x128xbf16>
    %33 = vector.shape_cast %32 : vector<1x1x128x128xbf16> to vector<128x128xbf16>
    %cst_41 = arith.constant dense<0.000000e+00> : vector<256x128xf32>
    %34 = tpu.matmul %31, %33, %cst_41 {dimension_numbers = #tpu.dot_dimension_numbers<[1], [0], [0], [1], [0, 0, 1, 1], [], []>} : vector<256x128xbf16>, vector<128x128xbf16>, vector<256x128xf32> -> vector<256x128xf32>
    %35 = arith.addf %28, %34 : vector<256x128xf32>
    %c0_42 = arith.constant 0 : index
    %c1_43 = arith.constant 1 : index
    %c2_44 = arith.constant 2 : index
    %c0_45 = arith.constant 0 : index
    %36 = vector.load %arg2[%c0_42, %c1_43, %c2_44, %c0_45] : memref<1x18x18x128xbf16, #tpu.memory_space<vmem>>, vector<1x16x16x128xbf16>
    %37 = vector.shape_cast %36 : vector<1x16x16x128xbf16> to vector<16x16x128xbf16>
    %38 = vector.shape_cast %37 : vector<16x16x128xbf16> to vector<256x128xbf16>
    %c1_46 = arith.constant 1 : index
    %c2_47 = arith.constant 2 : index
    %c0_48 = arith.constant 0 : index
    %c0_49 = arith.constant 0 : index
    %39 = vector.load %arg3[%c1_46, %c2_47, %c0_48, %c0_49] : memref<3x3x128x128xbf16, #tpu.memory_space<vmem>>, vector<1x1x128x128xbf16>
    %40 = vector.shape_cast %39 : vector<1x1x128x128xbf16> to vector<128x128xbf16>
    %cst_50 = arith.constant dense<0.000000e+00> : vector<256x128xf32>
    %41 = tpu.matmul %38, %40, %cst_50 {dimension_numbers = #tpu.dot_dimension_numbers<[1], [0], [0], [1], [0, 0, 1, 1], [], []>} : vector<256x128xbf16>, vector<128x128xbf16>, vector<256x128xf32> -> vector<256x128xf32>
    %42 = arith.addf %35, %41 : vector<256x128xf32>
    %c0_51 = arith.constant 0 : index
    %c2_52 = arith.constant 2 : index
    %c0_53 = arith.constant 0 : index
    %c0_54 = arith.constant 0 : index
    %43 = vector.load %arg2[%c0_51, %c2_52, %c0_53, %c0_54] : memref<1x18x18x128xbf16, #tpu.memory_space<vmem>>, vector<1x16x16x128xbf16>
    %44 = vector.shape_cast %43 : vector<1x16x16x128xbf16> to vector<16x16x128xbf16>
    %45 = vector.shape_cast %44 : vector<16x16x128xbf16> to vector<256x128xbf16>
    %c2_55 = arith.constant 2 : index
    %c0_56 = arith.constant 0 : index
    %c0_57 = arith.constant 0 : index
    %c0_58 = arith.constant 0 : index
    %46 = vector.load %arg3[%c2_55, %c0_56, %c0_57, %c0_58] : memref<3x3x128x128xbf16, #tpu.memory_space<vmem>>, vector<1x1x128x128xbf16>
    %47 = vector.shape_cast %46 : vector<1x1x128x128xbf16> to vector<128x128xbf16>
    %cst_59 = arith.constant dense<0.000000e+00> : vector<256x128xf32>
    %48 = tpu.matmul %45, %47, %cst_59 {dimension_numbers = #tpu.dot_dimension_numbers<[1], [0], [0], [1], [0, 0, 1, 1], [], []>} : vector<256x128xbf16>, vector<128x128xbf16>, vector<256x128xf32> -> vector<256x128xf32>
    %49 = arith.addf %42, %48 : vector<256x128xf32>
    %c0_60 = arith.constant 0 : index
    %c2_61 = arith.constant 2 : index
    %c1_62 = arith.constant 1 : index
    %c0_63 = arith.constant 0 : index
    %50 = vector.load %arg2[%c0_60, %c2_61, %c1_62, %c0_63] : memref<1x18x18x128xbf16, #tpu.memory_space<vmem>>, vector<1x16x16x128xbf16>
    %51 = vector.shape_cast %50 : vector<1x16x16x128xbf16> to vector<16x16x128xbf16>
    %52 = vector.shape_cast %51 : vector<16x16x128xbf16> to vector<256x128xbf16>
    %c2_64 = arith.constant 2 : index
    %c1_65 = arith.constant 1 : index
    %c0_66 = arith.constant 0 : index
    %c0_67 = arith.constant 0 : index
    %53 = vector.load %arg3[%c2_64, %c1_65, %c0_66, %c0_67] : memref<3x3x128x128xbf16, #tpu.memory_space<vmem>>, vector<1x1x128x128xbf16>
    %54 = vector.shape_cast %53 : vector<1x1x128x128xbf16> to vector<128x128xbf16>
    %cst_68 = arith.constant dense<0.000000e+00> : vector<256x128xf32>
    %55 = tpu.matmul %52, %54, %cst_68 {dimension_numbers = #tpu.dot_dimension_numbers<[1], [0], [0], [1], [0, 0, 1, 1], [], []>} : vector<256x128xbf16>, vector<128x128xbf16>, vector<256x128xf32> -> vector<256x128xf32>
    %56 = arith.addf %49, %55 : vector<256x128xf32>
    %c0_69 = arith.constant 0 : index
    %c2_70 = arith.constant 2 : index
    %c2_71 = arith.constant 2 : index
    %c0_72 = arith.constant 0 : index
    %57 = vector.load %arg2[%c0_69, %c2_70, %c2_71, %c0_72] : memref<1x18x18x128xbf16, #tpu.memory_space<vmem>>, vector<1x16x16x128xbf16>
    %58 = vector.shape_cast %57 : vector<1x16x16x128xbf16> to vector<16x16x128xbf16>
    %59 = vector.shape_cast %58 : vector<16x16x128xbf16> to vector<256x128xbf16>
    %c2_73 = arith.constant 2 : index
    %c2_74 = arith.constant 2 : index
    %c0_75 = arith.constant 0 : index
    %c0_76 = arith.constant 0 : index
    %60 = vector.load %arg3[%c2_73, %c2_74, %c0_75, %c0_76] : memref<3x3x128x128xbf16, #tpu.memory_space<vmem>>, vector<1x1x128x128xbf16>
    %61 = vector.shape_cast %60 : vector<1x1x128x128xbf16> to vector<128x128xbf16>
    %cst_77 = arith.constant dense<0.000000e+00> : vector<256x128xf32>
    %62 = tpu.matmul %59, %61, %cst_77 {dimension_numbers = #tpu.dot_dimension_numbers<[1], [0], [0], [1], [0, 0, 1, 1], [], []>} : vector<256x128xbf16>, vector<128x128xbf16>, vector<256x128xf32> -> vector<256x128xf32>
    %63 = arith.addf %56, %62 : vector<256x128xf32>
    %64 = vector.shape_cast %63 : vector<256x128xf32> to vector<16x16x128xf32>
    %65 = arith.truncf %64 : vector<16x16x128xf32> to vector<16x16x128xbf16>
    %c0_78 = arith.constant 0 : index
    %c0_79 = arith.constant 0 : index
    %c0_80 = arith.constant 0 : index
    %c0_81 = arith.constant 0 : index
    %66 = vector.load %arg4[%c0_78, %c0_79, %c0_80, %c0_81] : memref<1x16x16x128xbf16, #tpu.memory_space<vmem>>, vector<1x16x16x128xbf16>
    %67 = vector.shape_cast %66 : vector<1x16x16x128xbf16> to vector<16x16x128xbf16>
    %68 = vector.shape_cast %65 : vector<16x16x128xbf16> to vector<1x16x16x128xbf16>
    tpu.vector_store %arg4[%c0_78, %c0_79, %c0_80, %c0_81], %68 {strides = array<i32>} : memref<1x16x16x128xbf16, #tpu.memory_space<vmem>>, vector<1x16x16x128xbf16>,
    %cst_82 = arith.constant dense<0.000000e+00> : vector<128xf32>
    %69 = vector.multi_reduction <add>, %63, %cst_82 [0] : vector<256x128xf32> to vector<128xf32>
    %70 = vector.shape_cast %69 : vector<128xf32> to vector<1x128xf32>
    %c0_83 = arith.constant 0 : index
    %c0_84 = arith.constant 0 : index
    %c0_85 = arith.constant 0 : index
    %71 = vector.load %arg5[%c0_83, %c0_84, %c0_85] : memref<1x1x128xf32, #tpu.memory_space<vmem>>, vector<1x1x128xf32>
    %72 = vector.shape_cast %71 : vector<1x1x128xf32> to vector<1x128xf32>
    %73 = vector.shape_cast %70 : vector<1x128xf32> to vector<1x1x128xf32>
    tpu.vector_store %arg5[%c0_83, %c0_84, %c0_85], %73 {strides = array<i32>} : memref<1x1x128xf32, #tpu.memory_space<vmem>>, vector<1x1x128xf32>,
    %74 = arith.mulf %63, %63 : vector<256x128xf32>
    %cst_86 = arith.constant dense<0.000000e+00> : vector<128xf32>
    %75 = vector.multi_reduction <add>, %74, %cst_86 [0] : vector<256x128xf32> to vector<128xf32>
    %76 = vector.shape_cast %75 : vector<128xf32> to vector<1x128xf32>
    %c0_87 = arith.constant 0 : index
    %c0_88 = arith.constant 0 : index
    %c0_89 = arith.constant 0 : index
    %77 = vector.load %arg6[%c0_87, %c0_88, %c0_89] : memref<1x1x128xf32, #tpu.memory_space<vmem>>, vector<1x1x128xf32>
    %78 = vector.shape_cast %77 : vector<1x1x128xf32> to vector<1x128xf32>
    %79 = vector.shape_cast %76 : vector<1x128xf32> to vector<1x1x128xf32>
    tpu.vector_store %arg6[%c0_87, %c0_88, %c0_89], %79 {strides = array<i32>} : memref<1x1x128xf32, #tpu.memory_space<vmem>>, vector<1x1x128xf32>,
    return
  }
  func.func @transform_0(%arg0: i32, %arg1: i32) -> (i32, i32, i32, i32) {
    %c0_i32 = arith.constant 0 : i32
    %c0_i32_0 = arith.constant 0 : i32
    %c0_i32_1 = arith.constant 0 : i32
    %c0_i32_2 = arith.constant 0 : i32
    return %arg0, %c0_i32, %c0_i32_0, %c0_i32_1 : i32, i32, i32, i32
  }
  func.func @transform_1(%arg0: i32, %arg1: i32) -> (i32, i32, i32, i32) {
    %c0_i32 = arith.constant 0 : i32
    %c0_i32_0 = arith.constant 0 : i32
    %c0_i32_1 = arith.constant 0 : i32
    %c0_i32_2 = arith.constant 0 : i32
    return %c0_i32, %c0_i32_0, %c0_i32_1, %arg1 : i32, i32, i32, i32
  }
  func.func @transform_2(%arg0: i32, %arg1: i32) -> (i32, i32, i32, i32) {
    %c0_i32 = arith.constant 0 : i32
    %c0_i32_0 = arith.constant 0 : i32
    %c0_i32_1 = arith.constant 0 : i32
    return %arg0, %c0_i32, %c0_i32_0, %arg1 : i32, i32, i32, i32
  }
  func.func @transform_3(%arg0: i32, %arg1: i32) -> (i32, i32, i32) {
    %c0_i32 = arith.constant 0 : i32
    %c0_i32_0 = arith.constant 0 : i32
    return %arg0, %c0_i32, %arg1 : i32, i32, i32
  }
  func.func @transform_4(%arg0: i32, %arg1: i32) -> (i32, i32, i32) {
    %c0_i32 = arith.constant 0 : i32
    %c0_i32_0 = arith.constant 0 : i32
    return %arg0, %c0_i32, %arg1 : i32, i32, i32
  }
}

module attributes {stable_mosaic.version = 11 : i64} {
  func.func @_bn_relu_kernel(%arg0: i32, %arg1: i32, %arg2: memref<1x16x16x128xbf16, #tpu.memory_space<vmem>>, %arg3: memref<1x128xf32, #tpu.memory_space<vmem>>, %arg4: memref<1x128xf32, #tpu.memory_space<vmem>>, %arg5: memref<1x128xf32, #tpu.memory_space<vmem>>, %arg6: memref<1x128xf32, #tpu.memory_space<vmem>>, %arg7: memref<1x16x16x128xbf16, #tpu.memory_space<vmem>>) attributes {dimension_semantics = [#tpu.dimension_semantics<parallel>, #tpu.dimension_semantics<parallel>], iteration_bounds = array<i64: 2, 1>, scalar_prefetch = 0 : i64, scratch_operands = 0 : i64, tpu.core_type = #tpu.core_type<tc>, window_params = [{transform_indices = @transform_0, window_bounds = array<i64: 1, 16, 16, 128>}, {transform_indices = @transform_1, window_bounds = array<i64: 1, 128>}, {transform_indices = @transform_2, window_bounds = array<i64: 1, 128>}, {transform_indices = @transform_3, window_bounds = array<i64: 1, 128>}, {transform_indices = @transform_4, window_bounds = array<i64: 1, 128>}, {transform_indices = @transform_5, window_bounds = array<i64: 1, 16, 16, 128>}]} {
    %c0 = arith.constant 0 : index
    %c0_0 = arith.constant 0 : index
    %0 = vector.load %arg3[%c0, %c0_0] : memref<1x128xf32, #tpu.memory_space<vmem>>, vector<1x128xf32>
    %cst = arith.constant 0.001953125 : f32
    %1 = vector.broadcast %cst : f32 to vector<1x128xf32>
    %2 = arith.mulf %0, %1 : vector<1x128xf32>
    %c0_1 = arith.constant 0 : index
    %c0_2 = arith.constant 0 : index
    %3 = vector.load %arg4[%c0_1, %c0_2] : memref<1x128xf32, #tpu.memory_space<vmem>>, vector<1x128xf32>
    %cst_3 = arith.constant 0.001953125 : f32
    %4 = vector.broadcast %cst_3 : f32 to vector<1x128xf32>
    %5 = arith.mulf %3, %4 : vector<1x128xf32>
    %6 = arith.mulf %2, %2 : vector<1x128xf32>
    %7 = arith.subf %5, %6 : vector<1x128xf32>
    %cst_4 = arith.constant 0.000000e+00 : f32
    %8 = vector.broadcast %cst_4 : f32 to vector<1x128xf32>
    %9 = arith.maximumf %7, %8 : vector<1x128xf32>
    %c0_5 = arith.constant 0 : index
    %c0_6 = arith.constant 0 : index
    %10 = vector.load %arg5[%c0_5, %c0_6] : memref<1x128xf32, #tpu.memory_space<vmem>>, vector<1x128xf32>
    %cst_7 = arith.constant 9.99999974E-6 : f32
    %11 = vector.broadcast %cst_7 : f32 to vector<1x128xf32>
    %12 = arith.addf %9, %11 : vector<1x128xf32>
    %13 = math.rsqrt %12 : vector<1x128xf32>
    %14 = arith.mulf %10, %13 : vector<1x128xf32>
    %c0_8 = arith.constant 0 : index
    %c0_9 = arith.constant 0 : index
    %15 = vector.load %arg6[%c0_8, %c0_9] : memref<1x128xf32, #tpu.memory_space<vmem>>, vector<1x128xf32>
    %16 = arith.mulf %2, %14 : vector<1x128xf32>
    %17 = arith.subf %15, %16 : vector<1x128xf32>
    %c0_10 = arith.constant 0 : index
    %c0_11 = arith.constant 0 : index
    %c0_12 = arith.constant 0 : index
    %c0_13 = arith.constant 0 : index
    %18 = vector.load %arg2[%c0_10, %c0_11, %c0_12, %c0_13] : memref<1x16x16x128xbf16, #tpu.memory_space<vmem>>, vector<1x16x16x128xbf16>
    %19 = arith.extf %18 : vector<1x16x16x128xbf16> to vector<1x16x16x128xf32>
    %20 = vector.shape_cast %14 : vector<1x128xf32> to vector<1x1x1x128xf32>
    %21 = vector.broadcast %20 : vector<1x1x1x128xf32> to vector<1x16x16x128xf32>
    %22 = arith.mulf %19, %21 : vector<1x16x16x128xf32>
    %23 = vector.shape_cast %17 : vector<1x128xf32> to vector<1x1x1x128xf32>
    %24 = vector.broadcast %23 : vector<1x1x1x128xf32> to vector<1x16x16x128xf32>
    %25 = arith.addf %22, %24 : vector<1x16x16x128xf32>
    %cst_14 = arith.constant 0.000000e+00 : f32
    %26 = vector.broadcast %cst_14 : f32 to vector<1x16x16x128xf32>
    %27 = arith.maximumf %25, %26 : vector<1x16x16x128xf32>
    %28 = arith.truncf %27 : vector<1x16x16x128xf32> to vector<1x16x16x128xbf16>
    %c0_15 = arith.constant 0 : index
    %c0_16 = arith.constant 0 : index
    %c0_17 = arith.constant 0 : index
    %c0_18 = arith.constant 0 : index
    %29 = vector.load %arg7[%c0_15, %c0_16, %c0_17, %c0_18] : memref<1x16x16x128xbf16, #tpu.memory_space<vmem>>, vector<1x16x16x128xbf16>
    tpu.vector_store %arg7[%c0_15, %c0_16, %c0_17, %c0_18], %28 {strides = array<i32>} : memref<1x16x16x128xbf16, #tpu.memory_space<vmem>>, vector<1x16x16x128xbf16>,
    return
  }
  func.func @transform_0(%arg0: i32, %arg1: i32) -> (i32, i32, i32, i32) {
    %c0_i32 = arith.constant 0 : i32
    %c0_i32_0 = arith.constant 0 : i32
    %c0_i32_1 = arith.constant 0 : i32
    return %arg0, %c0_i32, %c0_i32_0, %arg1 : i32, i32, i32, i32
  }
  func.func @transform_1(%arg0: i32, %arg1: i32) -> (i32, i32) {
    %c0_i32 = arith.constant 0 : i32
    %c0_i32_0 = arith.constant 0 : i32
    return %c0_i32, %arg1 : i32, i32
  }
  func.func @transform_2(%arg0: i32, %arg1: i32) -> (i32, i32) {
    %c0_i32 = arith.constant 0 : i32
    %c0_i32_0 = arith.constant 0 : i32
    return %c0_i32, %arg1 : i32, i32
  }
  func.func @transform_3(%arg0: i32, %arg1: i32) -> (i32, i32) {
    %c0_i32 = arith.constant 0 : i32
    %c0_i32_0 = arith.constant 0 : i32
    return %c0_i32, %arg1 : i32, i32
  }
  func.func @transform_4(%arg0: i32, %arg1: i32) -> (i32, i32) {
    %c0_i32 = arith.constant 0 : i32
    %c0_i32_0 = arith.constant 0 : i32
    return %c0_i32, %arg1 : i32, i32
  }
  func.func @transform_5(%arg0: i32, %arg1: i32) -> (i32, i32, i32, i32) {
    %c0_i32 = arith.constant 0 : i32
    %c0_i32_0 = arith.constant 0 : i32
    %c0_i32_1 = arith.constant 0 : i32
    return %arg0, %c0_i32, %c0_i32_0, %arg1 : i32, i32, i32, i32
  }
}

module attributes {stable_mosaic.version = 11 : i64} {
  func.func @_bn_relu_add_kernel(%arg0: i32, %arg1: i32, %arg2: memref<1x16x16x128xbf16, #tpu.memory_space<vmem>>, %arg3: memref<1x128xf32, #tpu.memory_space<vmem>>, %arg4: memref<1x128xf32, #tpu.memory_space<vmem>>, %arg5: memref<1x128xf32, #tpu.memory_space<vmem>>, %arg6: memref<1x128xf32, #tpu.memory_space<vmem>>, %arg7: memref<1x16x16x128xbf16, #tpu.memory_space<vmem>>, %arg8: memref<1x16x16x128xf32, #tpu.memory_space<vmem>>) attributes {dimension_semantics = [#tpu.dimension_semantics<parallel>, #tpu.dimension_semantics<parallel>], iteration_bounds = array<i64: 2, 1>, scalar_prefetch = 0 : i64, scratch_operands = 0 : i64, tpu.core_type = #tpu.core_type<tc>, window_params = [{transform_indices = @transform_0, window_bounds = array<i64: 1, 16, 16, 128>}, {transform_indices = @transform_1, window_bounds = array<i64: 1, 128>}, {transform_indices = @transform_2, window_bounds = array<i64: 1, 128>}, {transform_indices = @transform_3, window_bounds = array<i64: 1, 128>}, {transform_indices = @transform_4, window_bounds = array<i64: 1, 128>}, {transform_indices = @transform_5, window_bounds = array<i64: 1, 16, 16, 128>}, {transform_indices = @transform_6, window_bounds = array<i64: 1, 16, 16, 128>}]} {
    %c0 = arith.constant 0 : index
    %c0_0 = arith.constant 0 : index
    %0 = vector.load %arg3[%c0, %c0_0] : memref<1x128xf32, #tpu.memory_space<vmem>>, vector<1x128xf32>
    %cst = arith.constant 0.001953125 : f32
    %1 = vector.broadcast %cst : f32 to vector<1x128xf32>
    %2 = arith.mulf %0, %1 : vector<1x128xf32>
    %c0_1 = arith.constant 0 : index
    %c0_2 = arith.constant 0 : index
    %3 = vector.load %arg4[%c0_1, %c0_2] : memref<1x128xf32, #tpu.memory_space<vmem>>, vector<1x128xf32>
    %cst_3 = arith.constant 0.001953125 : f32
    %4 = vector.broadcast %cst_3 : f32 to vector<1x128xf32>
    %5 = arith.mulf %3, %4 : vector<1x128xf32>
    %6 = arith.mulf %2, %2 : vector<1x128xf32>
    %7 = arith.subf %5, %6 : vector<1x128xf32>
    %cst_4 = arith.constant 0.000000e+00 : f32
    %8 = vector.broadcast %cst_4 : f32 to vector<1x128xf32>
    %9 = arith.maximumf %7, %8 : vector<1x128xf32>
    %c0_5 = arith.constant 0 : index
    %c0_6 = arith.constant 0 : index
    %10 = vector.load %arg5[%c0_5, %c0_6] : memref<1x128xf32, #tpu.memory_space<vmem>>, vector<1x128xf32>
    %cst_7 = arith.constant 9.99999974E-6 : f32
    %11 = vector.broadcast %cst_7 : f32 to vector<1x128xf32>
    %12 = arith.addf %9, %11 : vector<1x128xf32>
    %13 = math.rsqrt %12 : vector<1x128xf32>
    %14 = arith.mulf %10, %13 : vector<1x128xf32>
    %c0_8 = arith.constant 0 : index
    %c0_9 = arith.constant 0 : index
    %15 = vector.load %arg6[%c0_8, %c0_9] : memref<1x128xf32, #tpu.memory_space<vmem>>, vector<1x128xf32>
    %16 = arith.mulf %2, %14 : vector<1x128xf32>
    %17 = arith.subf %15, %16 : vector<1x128xf32>
    %c0_10 = arith.constant 0 : index
    %c0_11 = arith.constant 0 : index
    %c0_12 = arith.constant 0 : index
    %c0_13 = arith.constant 0 : index
    %18 = vector.load %arg2[%c0_10, %c0_11, %c0_12, %c0_13] : memref<1x16x16x128xbf16, #tpu.memory_space<vmem>>, vector<1x16x16x128xbf16>
    %19 = arith.extf %18 : vector<1x16x16x128xbf16> to vector<1x16x16x128xf32>
    %20 = vector.shape_cast %14 : vector<1x128xf32> to vector<1x1x1x128xf32>
    %21 = vector.broadcast %20 : vector<1x1x1x128xf32> to vector<1x16x16x128xf32>
    %22 = arith.mulf %19, %21 : vector<1x16x16x128xf32>
    %23 = vector.shape_cast %17 : vector<1x128xf32> to vector<1x1x1x128xf32>
    %24 = vector.broadcast %23 : vector<1x1x1x128xf32> to vector<1x16x16x128xf32>
    %25 = arith.addf %22, %24 : vector<1x16x16x128xf32>
    %cst_14 = arith.constant 0.000000e+00 : f32
    %26 = vector.broadcast %cst_14 : f32 to vector<1x16x16x128xf32>
    %27 = arith.maximumf %25, %26 : vector<1x16x16x128xf32>
    %c0_15 = arith.constant 0 : index
    %c0_16 = arith.constant 0 : index
    %c0_17 = arith.constant 0 : index
    %c0_18 = arith.constant 0 : index
    %28 = vector.load %arg7[%c0_15, %c0_16, %c0_17, %c0_18] : memref<1x16x16x128xbf16, #tpu.memory_space<vmem>>, vector<1x16x16x128xbf16>
    %29 = arith.extf %28 : vector<1x16x16x128xbf16> to vector<1x16x16x128xf32>
    %30 = arith.addf %27, %29 : vector<1x16x16x128xf32>
    %c0_19 = arith.constant 0 : index
    %c0_20 = arith.constant 0 : index
    %c0_21 = arith.constant 0 : index
    %c0_22 = arith.constant 0 : index
    %31 = vector.load %arg8[%c0_19, %c0_20, %c0_21, %c0_22] : memref<1x16x16x128xf32, #tpu.memory_space<vmem>>, vector<1x16x16x128xf32>
    tpu.vector_store %arg8[%c0_19, %c0_20, %c0_21, %c0_22], %30 {strides = array<i32>} : memref<1x16x16x128xf32, #tpu.memory_space<vmem>>, vector<1x16x16x128xf32>,
    return
  }
  func.func @transform_0(%arg0: i32, %arg1: i32) -> (i32, i32, i32, i32) {
    %c0_i32 = arith.constant 0 : i32
    %c0_i32_0 = arith.constant 0 : i32
    %c0_i32_1 = arith.constant 0 : i32
    return %arg0, %c0_i32, %c0_i32_0, %arg1 : i32, i32, i32, i32
  }
  func.func @transform_1(%arg0: i32, %arg1: i32) -> (i32, i32) {
    %c0_i32 = arith.constant 0 : i32
    %c0_i32_0 = arith.constant 0 : i32
    return %c0_i32, %arg1 : i32, i32
  }
  func.func @transform_2(%arg0: i32, %arg1: i32) -> (i32, i32) {
    %c0_i32 = arith.constant 0 : i32
    %c0_i32_0 = arith.constant 0 : i32
    return %c0_i32, %arg1 : i32, i32
  }
  func.func @transform_3(%arg0: i32, %arg1: i32) -> (i32, i32) {
    %c0_i32 = arith.constant 0 : i32
    %c0_i32_0 = arith.constant 0 : i32
    return %c0_i32, %arg1 : i32, i32
  }
  func.func @transform_4(%arg0: i32, %arg1: i32) -> (i32, i32) {
    %c0_i32 = arith.constant 0 : i32
    %c0_i32_0 = arith.constant 0 : i32
    return %c0_i32, %arg1 : i32, i32
  }
  func.func @transform_5(%arg0: i32, %arg1: i32) -> (i32, i32, i32, i32) {
    %c0_i32 = arith.constant 0 : i32
    %c0_i32_0 = arith.constant 0 : i32
    %c0_i32_1 = arith.constant 0 : i32
    return %arg0, %c0_i32, %c0_i32_0, %arg1 : i32, i32, i32, i32
  }
  func.func @transform_6(%arg0: i32, %arg1: i32) -> (i32, i32, i32, i32) {
    %c0_i32 = arith.constant 0 : i32
    %c0_i32_0 = arith.constant 0 : i32
    %c0_i32_1 = arith.constant 0 : i32
    return %arg0, %c0_i32, %c0_i32_0, %arg1 : i32, i32, i32, i32
  }
}

</mosaic_0001>

<bundles_post_ra>
// kernel: rrcnn_forward.13
= control target key start
LH: loop header
LB: loop body
LE: loop exit
PB: predicated region body
PF: predicated region fallthrough
CT: control target
= control target key end

     0   :  { %s1225_s12 = smov 0   ;;  %s1227_s13 = smov 0   ;;  %s1362_s0 = inlined_call_operand.vmem [shape: bf16[512,128], index: 0, kind: input, shape index: {}]   ;;  %s1363_s1 = inlined_call_operand.vmem [shape: bf16[128,128], index: 1, kind: input, shape index: {}]   ;;  %s1364_s2 = inlined_call_operand.vmem [shape: f32[1,128], index: 2, kind: input, shape index: {}]   ;;  %s1365_s3 = inlined_call_operand.vmem [shape: bf16[512,128], index: 3, kind: output, shape index: {}]  }
   0x1   :  { %s1229_s14 = smov 0  }
   0x2 LB: > { %s25_s15 = sadd.s32 1, %s1199_s13  ;;  %p854_p0 = scmp.ge.s32.totalorder %s1203_s14, 1  ;;  %s1203_s14 = sphi %s1229_s14, %s13_s14   ;;  %s1199_s13 = sphi %s1227_s13, %s1367_s13   ;;  %s1195_s12 = sphi %s1225_s12, %s1366_s12  }
   0x3   : > { %p27_p1 = scmp.ge.s32.totalorder %s25_s15, 2  ;;  %p169_p2 = scmp.lt.s32.totalorder %s1203_s14, 3 }
   0x5   : > { %s1369_s15 = smov (%p27_p1, %s25_s15), 0  ;;  %p170_p3 = pnand %p854_p0, %p169_p2 }
   0x6   : > { %s855_s18 = sshll.u32 (!%p170_p3), %s1195_s12, 5 }
   0x7   : > { %173 = sbr.rel (%p170_p3) target bundleno = 273 (0x111), region = 32  ;;  %p204_p4 = scmp.lt.s32.totalorder (!%p170_p3), %s855_s18, 63 }
   0xc   : > { %v1157_v0 = vld [vmem:[%s1363_s1 + $0x38] sm:$0xff]   ;;  %v1158_v1 = vld [vmem:[%s1363_s1 + $0x30] sm:$0xff]   ;;  %s1371_s18 = smov (!%p204_p4, %s855_s18), 63  ;;  %v1159_v2 = vld [vmem:[%s1363_s1 + $0x28] sm:$0xff]  }
   0xd   : > { %1069 = vmatprep.subr.bf16.mxu0 %v1157_v0  ;;  %1117 = vmatprep.subr.bf16.mxu1 %v1157_v0  ;;  %s856_s23 = sshll.u32 %s1371_s18, 2  ;;  %v1160_v3 = vld [vmem:[%s1363_s1 + $0x20] sm:$0xff]   ;;  %v1161_v6 = vld [vmem:[%s1363_s1 + $0x18] sm:$0xff]   ;;  %v1162_v7 = vld [vmem:[%s1363_s1 + $0x10] sm:$0xff]  }
   0xe   : > { %1070 = vmatpush3.bf16.msra.mxu0 %v1157_v0  ;;  %1125 = vmatpush3.bf16.msra.mxu1 %v1157_v0  ;;  %s1260_s26 = scalar_lea.vmem %s1362_s0, %s856_s23  ;;  %v1163_v8 = vld [vmem:[%s1363_s1 + $0x8] sm:$0xff]   ;;  %v1164_v9 = vld [vmem:[%s1363_s1] sm:$0xff]   ;;  %s1309_s17 = scalar_lea.vmem %s1365_s3, %s856_s23 }
   0xf   : > { %1071 = vmatprep.subr.bf16.mxu0 %v1158_v1  ;;  %1118 = vmatprep.subr.bf16.mxu1 %v1158_v1  ;;  %v1165_v4 = vld [vmem:[%s1260_s26] sm:$0xff]   ;;  %v1167_v10 = vld [vmem:[%s1260_s26 + $0x8] sm:$0xff]   ;;  %v1169_v12 = vld [vmem:[%s1260_s26 + $0x10] sm:$0xff]  }
  0x10   : > { %v1166_v5 = vld [vmem:[%s1260_s26 + $0x40] sm:$0xff]   ;;  %1085 = vmatprep.mubr.bf16.mxu0 %v1165_v4  ;;  %v1168_v11 = vld [vmem:[%s1260_s26 + $0x48] sm:$0xff]   ;;  %v1170_v13 = vld [vmem:[%s1260_s26 + $0x50] sm:$0xff]  }
  0x11   : > { %1101 = vmatprep.mubr.bf16.mxu1 %v1166_v5  ;;  %v1171_v14 = vld [vmem:[%s1260_s26 + $0x18] sm:$0xff]   ;;  %v1173_v16 = vld [vmem:[%s1260_s26 + $0x20] sm:$0xff]   ;;  %v1175_v18 = vld [vmem:[%s1260_s26 + $0x28] sm:$0xff]  }
  0x12   : > { %1072 = vmatpush3.bf16.msra.mxu0 %v1158_v1  ;;  %1126 = vmatpush3.bf16.msra.mxu1 %v1158_v1  ;;  %v1172_v15 = vld [vmem:[%s1260_s26 + $0x58] sm:$0xff]   ;;  %v1174_v17 = vld [vmem:[%s1260_s26 + $0x60] sm:$0xff]   ;;  %v1176_v19 = vld [vmem:[%s1260_s26 + $0x68] sm:$0xff]  }
  0x13   : > { %1073 = vmatprep.subr.bf16.mxu0 %v1159_v2  ;;  %1119 = vmatprep.subr.bf16.mxu1 %v1159_v2  ;;  %v1177_v20 = vld [vmem:[%s1260_s26 + $0x30] sm:$0xff]   ;;  %v1179_v22 = vld [vmem:[%s1260_s26 + $0x38] sm:$0xff]   ;;  %v1296_v26 = vld [vmem:[%s1364_s2] ss:$0 sm:$0xff] }
  0x14   : > { %v1178_v21 = vld [vmem:[%s1260_s26 + $0x70] sm:$0xff]   ;;  %v1180_v23 = vld [vmem:[%s1260_s26 + $0x78] sm:$0xff]  }
  0x16   : > { %1074 = vmatpush3.bf16.msra.mxu0 %v1159_v2  ;;  %1127 = vmatpush3.bf16.msra.mxu1 %v1159_v2 }
  0x17   : > { %1075 = vmatprep.subr.bf16.mxu0 %v1160_v3  ;;  %1120 = vmatprep.subr.bf16.mxu1 %v1160_v3 }
  0x1a   : > { %1076 = vmatpush3.bf16.msra.mxu0 %v1160_v3  ;;  %1128 = vmatpush3.bf16.msra.mxu1 %v1160_v3 }
  0x1b   : > { %1077 = vmatprep.subr.bf16.mxu0 %v1161_v6  ;;  %1121 = vmatprep.subr.bf16.mxu1 %v1161_v6 }
  0x1e   : > { %1078 = vmatpush3.bf16.msra.mxu0 %v1161_v6  ;;  %1129 = vmatpush3.bf16.msra.mxu1 %v1161_v6 }
  0x1f   : > { %1079 = vmatprep.subr.bf16.mxu0 %v1162_v7  ;;  %1122 = vmatprep.subr.bf16.mxu1 %v1162_v7 }
  0x22   : > { %1080 = vmatpush3.bf16.msra.mxu0 %v1162_v7  ;;  %1130 = vmatpush3.bf16.msra.mxu1 %v1162_v7 }
  0x23   : > { %1081 = vmatprep.subr.bf16.mxu0 %v1163_v8  ;;  %1123 = vmatprep.subr.bf16.mxu1 %v1163_v8 }
  0x26   : > { %1082 = vmatpush3.bf16.msra.mxu0 %v1163_v8  ;;  %1131 = vmatpush3.bf16.msra.mxu1 %v1163_v8 }
  0x27   : > { %1083 = vmatprep.subr.bf16.mxu0 %v1164_v9  ;;  %1124 = vmatprep.subr.bf16.mxu1 %v1164_v9 }
  0x2a   : > { %1084 = vmatpush3.bf16.msra.mxu0 %v1164_v9  ;;  %1132 = vmatpush3.bf16.msra.mxu1 %v1164_v9 }
  0x2d   : > { %1086 = vmatmul.mubr.bf16.vlgmr.msra.gmra.mxu0 %v1167_v10  ;;  %1102 = vmatmul.mubr.bf16.vlgmr.msra.gmra.mxu1 %v1168_v11 }
  0x2e   : > { %1089 = vmatprep.mubr.bf16.mxu0 %v1169_v12  ;;  %1105 = vmatprep.mubr.bf16.mxu1 %v1170_v13 }
  0x35   : > { %1090 = vmatmul.mubr.bf16.gmra.mxu0 %v1171_v14  ;;  %1106 = vmatmul.mubr.bf16.gmra.mxu1 %v1172_v15 }
  0x36   : > { %1093 = vmatprep.mubr.bf16.mxu0 %v1173_v16  ;;  %1109 = vmatprep.mubr.bf16.mxu1 %v1174_v17 }
  0x3d   : > { %1094 = vmatmul.mubr.bf16.gmra.mxu0 %v1175_v18  ;;  %1110 = vmatmul.mubr.bf16.gmra.mxu1 %v1176_v19 }
  0x3e   : > { %1097 = vmatprep.mubr.bf16.mxu0 %v1177_v20  ;;  %1113 = vmatprep.mubr.bf16.mxu1 %v1178_v21 }
  0x45   : > { %1098 = vmatmul.mubr.bf16.gmra.mxu0 %v1179_v22  ;;  %1114 = vmatmul.mubr.bf16.gmra.mxu1 %v1180_v23 }
  0xed   : > { %v1087_v24 = vpop.f32.mrf.mxu0  ;;  %v1103_v25 = vpop.f32.mrf.mxu1 }
  0xee   : > { %v468_v31 = vadd.f32 %v1087_v24, %v1296_v26  ;;  %v532_v32 = vadd.f32 %v1103_v25, %v1296_v26 }
  0xef   : > { %v459_v27 = vpop.f32.mrf.mxu0  ;;  %v523_v28 = vpop.f32.mrf.mxu1 }
  0xf0   : > { %v460_v35 = vadd.f32 %v1296_v26, %v459_v27  ;;  %v524_v36 = vadd.f32 %v1296_v26, %v523_v28 }
  0xf1   : > { %v1088_v29 = vpop.f32.mrf.mxu0  ;;  %v1104_v30 = vpop.f32.mrf.mxu1 }
  0xf2   : > { %v471_v33 = vadd.f32 %v1088_v29, %v1296_v26  ;;  %v535_v34 = vadd.f32 %v1104_v30, %v1296_v26 }
  0xf3   : > { %v462_v37 = vpop.f32.mrf.mxu0  ;;  %v526_v38 = vpop.f32.mrf.mxu1 }
  0xf4   : > { %v958_v39 = vpack.c.bf16 %v471_v33, %v468_v31  ;;  %v998_v40 = vpack.c.bf16 %v535_v34, %v532_v32  ;;  %v463_v41 = vadd.f32 %v1296_v26, %v462_v37  ;;  %v527_v42 = vadd.f32 %v1296_v26, %v526_v38 }
  0xf5   : > { %v1091_v43 = vpop.f32.mrf.mxu0  ;;  %v1107_v44 = vpop.f32.mrf.mxu1 }
  0xf6   : > { %1030 = vst [vmem:[%s1309_s17 + $0x8] sm:$0xff] %v958_v39   ;;  %1038 = vst [vmem:[%s1309_s17 + $0x48] sm:$0xff] %v998_v40   ;;  %v953_v45 = vpack.c.bf16 %v463_v41, %v460_v35  ;;  %v993_v46 = vpack.c.bf16 %v527_v42, %v524_v36  ;;  %v484_v51 = vadd.f32 %v1091_v43, %v1296_v26 }
  0xf7   : > { %v475_v47 = vpop.f32.mrf.mxu0  ;;  %v539_v48 = vpop.f32.mrf.mxu1  ;;  %v548_v52 = vadd.f32 %v1107_v44, %v1296_v26 }
  0xf8   : > { %954 = vst [vmem:[%s1309_s17] sm:$0xff] %v953_v45   ;;  %1037 = vst [vmem:[%s1309_s17 + $0x40] sm:$0xff] %v993_v46   ;;  %v476_v55 = vadd.f32 %v1296_v26, %v475_v47  ;;  %v540_v56 = vadd.f32 %v1296_v26, %v539_v48 }
  0xf9   : > { %v1092_v49 = vpop.f32.mrf.mxu0  ;;  %v1108_v50 = vpop.f32.mrf.mxu1 }
  0xfa   : > { %v487_v53 = vadd.f32 %v1092_v49, %v1296_v26  ;;  %v551_v54 = vadd.f32 %v1108_v50, %v1296_v26 }
  0xfb   : > { %v478_v57 = vpop.f32.mrf.mxu0  ;;  %v542_v58 = vpop.f32.mrf.mxu1 }
  0xfc   : > { %v968_v59 = vpack.c.bf16 %v487_v53, %v484_v51  ;;  %v1008_v60 = vpack.c.bf16 %v551_v54, %v548_v52  ;;  %v479_v61 = vadd.f32 %v1296_v26, %v478_v57  ;;  %v543_v62 = vadd.f32 %v1296_v26, %v542_v58 }
  0xfd   : > { %v1095_v63 = vpop.f32.mrf.mxu0  ;;  %v1111_v0 = vpop.f32.mrf.mxu1 }
  0xfe   : > { %1032 = vst [vmem:[%s1309_s17 + $0x18] sm:$0xff] %v968_v59   ;;  %1040 = vst [vmem:[%s1309_s17 + $0x58] sm:$0xff] %v1008_v60   ;;  %v963_v1 = vpack.c.bf16 %v479_v61, %v476_v55  ;;  %v1003_v2 = vpack.c.bf16 %v543_v62, %v540_v56  ;;  %v500_v7 = vadd.f32 %v1095_v63, %v1296_v26 }
  0xff   : > { %v491_v3 = vpop.f32.mrf.mxu0  ;;  %v555_v4 = vpop.f32.mrf.mxu1  ;;  %v564_v8 = vadd.f32 %v1111_v0, %v1296_v26 }
 0x100   : > { %1031 = vst [vmem:[%s1309_s17 + $0x10] sm:$0xff] %v963_v1   ;;  %1039 = vst [vmem:[%s1309_s17 + $0x50] sm:$0xff] %v1003_v2   ;;  %v492_v11 = vadd.f32 %v1296_v26, %v491_v3  ;;  %v556_v12 = vadd.f32 %v1296_v26, %v555_v4 }
 0x101   : > { %v1096_v5 = vpop.f32.mrf.mxu0  ;;  %v1112_v6 = vpop.f32.mrf.mxu1 }
 0x102   : > { %v503_v9 = vadd.f32 %v1096_v5, %v1296_v26  ;;  %v567_v10 = vadd.f32 %v1112_v6, %v1296_v26 }
 0x103   : > { %v494_v13 = vpop.f32.mrf.mxu0  ;;  %v558_v14 = vpop.f32.mrf.mxu1 }
 0x104   : > { %v978_v15 = vpack.c.bf16 %v503_v9, %v500_v7  ;;  %v1018_v16 = vpack.c.bf16 %v567_v10, %v564_v8  ;;  %v495_v17 = vadd.f32 %v1296_v26, %v494_v13  ;;  %v559_v18 = vadd.f32 %v1296_v26, %v558_v14 }
 0x105   : > { %v1099_v19 = vpop.f32.mrf.mxu0  ;;  %v1115_v20 = vpop.f32.mrf.mxu1 }
 0x106   : > { %1034 = vst [vmem:[%s1309_s17 + $0x28] sm:$0xff] %v978_v15   ;;  %1042 = vst [vmem:[%s1309_s17 + $0x68] sm:$0xff] %v1018_v16   ;;  %v973_v21 = vpack.c.bf16 %v495_v17, %v492_v11  ;;  %v1013_v22 = vpack.c.bf16 %v559_v18, %v556_v12  ;;  %v516_v28 = vadd.f32 %v1099_v19, %v1296_v26 }
 0x107   : > { %v507_v23 = vpop.f32.mrf.mxu0  ;;  %v571_v24 = vpop.f32.mrf.mxu1  ;;  %v580_v29 = vadd.f32 %v1115_v20, %v1296_v26 }
 0x108   : > { %1033 = vst [vmem:[%s1309_s17 + $0x20] sm:$0xff] %v973_v21   ;;  %1041 = vst [vmem:[%s1309_s17 + $0x60] sm:$0xff] %v1013_v22   ;;  %v508_v32 = vadd.f32 %v1296_v26, %v507_v23  ;;  %v572_v33 = vadd.f32 %v1296_v26, %v571_v24 }
 0x109   : > { %v1100_v25 = vpop.f32.mrf.mxu0  ;;  %v1116_v27 = vpop.f32.mrf.mxu1 }
 0x10a   : > { %v519_v30 = vadd.f32 %v1100_v25, %v1296_v26  ;;  %v583_v31 = vadd.f32 %v1116_v27, %v1296_v26 }
 0x10b   : > { %v510_v34 = vpop.f32.mrf.mxu0  ;;  %v574_v35 = vpop.f32.mrf.mxu1 }
 0x10c   : > { %v988_v36 = vpack.c.bf16 %v519_v30, %v516_v28  ;;  %v1028_v37 = vpack.c.bf16 %v583_v31, %v580_v29  ;;  %v511_v38 = vadd.f32 %v1296_v26, %v510_v34  ;;  %v575_v39 = vadd.f32 %v1296_v26, %v574_v35 }
 0x10e   : > { %1036 = vst [vmem:[%s1309_s17 + $0x38] sm:$0xff] %v988_v36   ;;  %1044 = vst [vmem:[%s1309_s17 + $0x78] sm:$0xff] %v1028_v37   ;;  %v983_v40 = vpack.c.bf16 %v511_v38, %v508_v32  ;;  %v1023_v41 = vpack.c.bf16 %v575_v39, %v572_v33 }
 0x110   : > { %1035 = vst [vmem:[%s1309_s17 + $0x30] sm:$0xff] %v983_v40   ;;  %1043 = vst [vmem:[%s1309_s17 + $0x70] sm:$0xff] %v1023_v41  }
 0x111 PF: > { %s13_s14 = sadd.s32 1, %s1203_s14   ;;  %s1366_s12 = smov %s1199_s13 }
 0x112   : > { %p10_p5 = scmp.ge.s32.totalorder %s13_s14, 4   ;;  %s1367_s13 = smov %s1369_s15 }
 0x114   :  { %12 = sbr.rel (!%p10_p5) target bundleno = 2 (0x2), region = 68 }

// kernel: rrcnn_forward.15
= control target key start
LH: loop header
LB: loop body
LE: loop exit
PB: predicated region body
PF: predicated region fallthrough
CT: control target
= control target key end

     0   :  { %s1384_s21 = smov 0   ;;  %s1386_s22 = smov 0   ;;  %s1825_s0 = inlined_call_operand.vmem [shape: bf16[2,16,16,128], index: 0, kind: input, shape index: {}]   ;;  %s1826_s1 = inlined_call_operand.vmem [shape: f32[1,128], index: 1, kind: input, shape index: {}]   ;;  %s1827_s2 = inlined_call_operand.vmem [shape: f32[1,128], index: 2, kind: input, shape index: {}]   ;;  %s1828_s3 = inlined_call_operand.vmem [shape: f32[1,128], index: 3, kind: input, shape index: {}]   ;;  %s1829_s4 = inlined_call_operand.vmem [shape: f32[1,128], index: 4, kind: input, shape index: {}]   ;;  %s1830_s5 = inlined_call_operand.vmem [shape: bf16[2,16,16,128], index: 5, kind: input, shape index: {}]   ;;  %s1831_s6 = inlined_call_operand.vmem [shape: bf16[2,16,16,128], index: 6, kind: output, shape index: {}]  }
   0x1   :  { %s1388_s23 = smov 0  }
   0x2 LB: > { %s28_s24 = sadd.s32 1, %s1343_s22  ;;  %p970_p0 = scmp.ge.s32.totalorder %s1347_s23, 1  ;;  %s1347_s23 = sphi %s1388_s23, %s16_s23   ;;  %s1343_s22 = sphi %s1386_s22, %s1874_s22   ;;  %s1339_s21 = sphi %s1384_s21, %s1873_s21  }
   0x3   : > { %p30_p1 = scmp.ge.s32.totalorder %s28_s24, 2  ;;  %p278_p2 = scmp.lt.s32.totalorder %s1347_s23, 3 }
   0x5   : > { %s1876_s24 = smov (%p30_p1, %s28_s24), 0  ;;  %p279_p3 = pnand %p970_p0, %p278_p2 }
   0x6   : > { %p334_p4 = scmp.lt.s32.totalorder (!%p279_p3), %s1339_s21, 1 }
   0x7   : > { %282 = sbr.rel (%p279_p3) target bundleno = 93 (0x5d), region = 44 }
   0xc   : > { %v370_v0 = vld [vmem:[%s1826_s1] sm:$0x1]  ;;  %s1878_s21 = smov (!%p334_p4, %s1339_s21), 1  ;;  %v449_v5 = vlaneseq }
   0xd   : > { %v372_v1 = vld [vmem:[%s1827_s2] sm:$0x1]  ;;  %v1408_v2 = vmul.f32 0.001953125, %v370_v0  ;;  %s1412_s29 = sshll.u32 %s1878_s21, 7 }
   0xe   : > { %v373_v3 = vmul.f32 0.001953125, %v372_v1  ;;  %s1418_s8 = scalar_lea.vmem %s1825_s0, %s1412_s29  ;;  %s1424_s11 = scalar_lea.vmem %s1830_s5, %s1412_s29  ;;  %v1426_v8 = vshrl.u32 %v449_v5, 7  ;;  %v377_v1 = vld [vmem:[%s1828_s3] sm:$0x1] }
   0xf   : > { %v374_v4 = vmul.f32 %v1408_v2, %v1408_v2  ;;  %v1429_v10 = vld [vmem:[%s1418_s8] sm:$0xff]   ;;  %v1435_v12 = vld [vmem:[%s1418_s8 + $0x8] sm:$0xff]   ;;  %v1441_v14 = vld [vmem:[%s1418_s8 + $0x10] sm:$0xff]   ;;  %s1665_s18 = scalar_lea.vmem %s1831_s6, %s1412_s29 }
  0x10   : > { %v1432_v11 = vld [vmem:[%s1424_s11] sm:$0xff]   ;;  %v1438_v13 = vld [vmem:[%s1424_s11 + $0x8] sm:$0xff]   ;;  %v1048_v15 = vunpack.c.l.bf16 %v1429_v10  ;;  %v1049_v16 = vunpack.c.h.bf16 %v1429_v10  ;;  %v451_v17 = vsub.s32 0, %v1426_v8  ;;  %v1447_v18 = vld [vmem:[%s1424_s11 + $0x10] sm:$0xff]   ;;  %v1052_v22 = vunpack.c.l.bf16 %v1435_v12 }
  0x11   : > { %v375_v6 = vsub.f32 %v373_v3, %v374_v4  ;;  %v1450_v19 = vld [vmem:[%s1418_s8 + $0x18] sm:$0xff]   ;;  %v1112_v20 = vunpack.c.l.bf16 %v1432_v11  ;;  %v1113_v21 = vunpack.c.h.bf16 %v1432_v11  ;;  %v1053_v23 = vunpack.c.h.bf16 %v1435_v12  ;;  %v1460_v25 = vld [vmem:[%s1418_s8 + $0x20] sm:$0xff]   ;;  %v1470_v31 = vld [vmem:[%s1418_s8 + $0x28] sm:$0xff]  }
  0x12   : > { %v1457_v24 = vld [vmem:[%s1424_s11 + $0x18] sm:$0xff]   ;;  %v1116_v26 = vunpack.c.l.bf16 %v1438_v13  ;;  %v1056_v28 = vunpack.c.l.bf16 %v1441_v14  ;;  %v1057_v29 = vunpack.c.h.bf16 %v1441_v14  ;;  %v1467_v30 = vld [vmem:[%s1424_s11 + $0x20] sm:$0xff]   ;;  %v1060_v34 = vunpack.c.l.bf16 %v1450_v19  ;;  %v1477_v36 = vld [vmem:[%s1424_s11 + $0x28] sm:$0xff]  }
  0x13   : > { %v376_v7 = vmax.f32 %v375_v6, 0.0  ;;  %v1061_v35 = vunpack.c.h.bf16 %v1450_v19  ;;  %v1480_v37 = vld [vmem:[%s1418_s8 + $0x30] sm:$0xff]   ;;  %v1064_v40 = vunpack.c.l.bf16 %v1460_v25  ;;  %v1065_v41 = vunpack.c.h.bf16 %v1460_v25  ;;  %v1490_v43 = vld [vmem:[%s1418_s8 + $0x38] sm:$0xff]   ;;  %v1500_v49 = vld [vmem:[%s1418_s8 + $0x40] sm:$0xff]  }
  0x14   : > { %v1487_v42 = vld [vmem:[%s1424_s11 + $0x30] sm:$0xff]   ;;  %v1068_v46 = vunpack.c.l.bf16 %v1470_v31  ;;  %v1069_v47 = vunpack.c.h.bf16 %v1470_v31  ;;  %v1497_v48 = vld [vmem:[%s1424_s11 + $0x38] sm:$0xff]   ;;  %v1072_v52 = vunpack.c.l.bf16 %v1480_v37  ;;  %v1073_v53 = vunpack.c.h.bf16 %v1480_v37  ;;  %v1507_v54 = vld [vmem:[%s1424_s11 + $0x40] sm:$0xff]  }
  0x15   : > { %v378_v9 = vadd.f32 1e-05, %v376_v7  ;;  %v1510_v55 = vld [vmem:[%s1418_s8 + $0x48] sm:$0xff]   ;;  %v1520_v61 = vld [vmem:[%s1418_s8 + $0x50] sm:$0xff]   ;;  %v1530_v4 = vld [vmem:[%s1418_s8 + $0x58] sm:$0xff]  }
  0x16   : > { %v1517_v60 = vld [vmem:[%s1424_s11 + $0x48] sm:$0xff]   ;;  %v1527_v3 = vld [vmem:[%s1424_s11 + $0x50] sm:$0xff]   ;;  %v1537_v63 = vld [vmem:[%s1424_s11 + $0x58] sm:$0xff]  }
  0x17   : > { %1323 = vrsqrt.f32 %v378_v9  ;;  %v1540_v62 = vld [vmem:[%s1418_s8 + $0x60] sm:$0xff]   ;;  %v1553_v9 = vld [vmem:[%s1418_s8 + $0x68] sm:$0xff]   ;;  %v1563_v45 = vld [vmem:[%s1418_s8 + $0x70] sm:$0xff]  }
  0x18   : > { %v1550_v57 = vld [vmem:[%s1424_s11 + $0x60] sm:$0xff]   ;;  %v1560_v5 = vld [vmem:[%s1424_s11 + $0x68] sm:$0xff]   ;;  %v1570_v58 = vld [vmem:[%s1424_s11 + $0x70] sm:$0xff]   ;;  %v1105_v39 = vunpack.c.h.bf16 %v1563_v45 }
  0x19   : > { %v1576_v38 = vld [vmem:[%s1418_s8 + $0x78] sm:$0xff]   ;;  %v381_v44 = vld [vmem:[%s1829_s4] sm:$0x1] }
  0x1a   : > { %v1579_v33 = vld [vmem:[%s1424_s11 + $0x78] sm:$0xff]   ;;  %v1108_v7 = vunpack.c.l.bf16 %v1576_v38  ;;  %v1109_v56 = vunpack.c.h.bf16 %v1576_v38 }
  0x24   : > { %v1324_v6 = vpop.eup %1323 }
  0x25   : > { %v380_v51 = vmul.f32 %v1324_v6, %v377_v1  ;;  %v1104_v6 = vunpack.c.l.bf16 %v1563_v45  ;;  %v1172_v1 = vunpack.c.l.bf16 %v1579_v33 }
  0x27   : > { %v382_v0 = vmul.f32 %v380_v51, %v1408_v2  ;;  %v1591_v50 = vrot.slane %v380_v51, %v451_v17 }
  0x29   : > { %v383_v27 = vsub.f32 %v381_v44, %v382_v0  ;;  %v454_v2 = vmul.f32 %v1048_v15, %v1591_v50  ;;  %v455_v51 = vmul.f32 %v1049_v16, %v1591_v50  ;;  %v456_v59 = vmul.f32 %v1052_v22, %v1591_v50 }
  0x2a   : > { %v457_v32 = vmul.f32 %v1053_v23, %v1591_v50  ;;  %v458_v44 = vmul.f32 %v1056_v28, %v1591_v50  ;;  %v459_v15 = vmul.f32 %v1057_v29, %v1591_v50  ;;  %v460_v10 = vmul.f32 %v1060_v34, %v1591_v50 }
  0x2b   : > { %v1622_v16 = vrot.slane %v383_v27, %v451_v17  ;;  %v461_v12 = vmul.f32 %v1061_v35, %v1591_v50  ;;  %v462_v22 = vmul.f32 %v1064_v40, %v1591_v50  ;;  %v463_v14 = vmul.f32 %v1065_v41, %v1591_v50 }
  0x2c   : > { %v464_v23 = vmul.f32 %v1068_v46, %v1591_v50  ;;  %v465_v8 = vmul.f32 %v1069_v47, %v1591_v50  ;;  %v466_v17 = vmul.f32 %v1072_v52, %v1591_v50  ;;  %v467_v19 = vmul.f32 %v1073_v53, %v1591_v50 }
  0x2d   : > { %v492_v27 = vadd.f32 %v1622_v16, %v454_v2  ;;  %v493_v25 = vadd.f32 %v1622_v16, %v455_v51  ;;  %v494_v28 = vadd.f32 %v1622_v16, %v456_v59  ;;  %v495_v29 = vadd.f32 %v1622_v16, %v457_v32 }
  0x2e   : > { %v496_v34 = vadd.f32 %v1622_v16, %v458_v44  ;;  %v497_v31 = vadd.f32 %v1622_v16, %v459_v15  ;;  %v498_v35 = vadd.f32 %v1622_v16, %v460_v10  ;;  %v499_v40 = vadd.f32 %v1622_v16, %v461_v12 }
  0x2f   : > { %v524_v41 = vmax.f32 %v492_v27, 0.0  ;;  %v525_v37 = vmax.f32 %v493_v25, 0.0  ;;  %v526_v46 = vmax.f32 %v494_v28, 0.0  ;;  %v527_v47 = vmax.f32 %v495_v29, 0.0 }
  0x30   : > { %v528_v52 = vmax.f32 %v496_v34, 0.0  ;;  %v529_v53 = vmax.f32 %v497_v31, 0.0  ;;  %v530_v0 = vmax.f32 %v498_v35, 0.0  ;;  %v531_v2 = vmax.f32 %v499_v40, 0.0 }
  0x31   : > { %v620_v32 = vadd.f32 %v1112_v20, %v524_v41  ;;  %v621_v59 = vadd.f32 %v1113_v21, %v525_v37  ;;  %v622_v51 = vadd.f32 %v1116_v26, %v526_v46  ;;  %v1832_v44 = vunpack.c.h.bf16 %v1438_v13 }
  0x32   : > { %v1833_v10 = vunpack.c.l.bf16 %v1447_v18  ;;  %v1834_v20 = vunpack.c.h.bf16 %v1447_v18  ;;  %v1835_v21 = vunpack.c.l.bf16 %v1457_v24  ;;  %v1836_v26 = vunpack.c.h.bf16 %v1457_v24 }
  0x33   : > { %v623_v15 = vadd.f32 %v1832_v44, %v527_v47  ;;  %v1177_v25 = vpack.c.bf16 %v621_v59, %v620_v32  ;;  %v500_v29 = vadd.f32 %v1622_v16, %v462_v22  ;;  %v501_v34 = vadd.f32 %v1622_v16, %v463_v14 }
  0x34   : > { %v624_v12 = vadd.f32 %v1833_v10, %v528_v52  ;;  %v625_v11 = vadd.f32 %v1834_v20, %v529_v53  ;;  %v626_v27 = vadd.f32 %v1835_v21, %v530_v0  ;;  %v627_v13 = vadd.f32 %v1836_v26, %v531_v2 }
  0x35   : > { %v1182_v28 = vpack.c.bf16 %v623_v15, %v622_v51  ;;  %v502_v40 = vadd.f32 %v1622_v16, %v464_v23  ;;  %v503_v18 = vadd.f32 %v1622_v16, %v465_v8  ;;  %1178 = vst [vmem:[%s1665_s18] sm:$0xff] %v1177_v25   ;;  %v532_v41 = vmax.f32 %v500_v29, 0.0 }
  0x36   : > { %v1187_v31 = vpack.c.bf16 %v625_v11, %v624_v12  ;;  %v1192_v35 = vpack.c.bf16 %v627_v13, %v626_v27  ;;  %v533_v37 = vmax.f32 %v501_v34, 0.0  ;;  %v504_v24 = vadd.f32 %v1622_v16, %v466_v17 }
  0x37   : > { %1284 = vst [vmem:[%s1665_s18 + $0x8] sm:$0xff] %v1182_v28   ;;  %v505_v46 = vadd.f32 %v1622_v16, %v467_v19  ;;  %v534_v47 = vmax.f32 %v502_v40, 0.0  ;;  %v535_v22 = vmax.f32 %v503_v18, 0.0  ;;  %v1837_v14 = vunpack.c.l.bf16 %v1490_v43 }
  0x38   : > { %1285 = vst [vmem:[%s1665_s18 + $0x10] sm:$0xff] %v1187_v31   ;;  %1286 = vst [vmem:[%s1665_s18 + $0x18] sm:$0xff] %v1192_v35   ;;  %v1838_v23 = vunpack.c.h.bf16 %v1490_v43  ;;  %v1839_v53 = vunpack.c.l.bf16 %v1467_v30  ;;  %v1840_v2 = vunpack.c.h.bf16 %v1467_v30  ;;  %v536_v19 = vmax.f32 %v504_v24, 0.0 }
  0x39   : > { %v468_v52 = vmul.f32 %v1837_v14, %v1591_v50  ;;  %v537_v32 = vmax.f32 %v505_v46, 0.0  ;;  %v1841_v59 = vunpack.c.l.bf16 %v1477_v36  ;;  %v1842_v44 = vunpack.c.h.bf16 %v1477_v36 }
  0x3a   : > { %v469_v8 = vmul.f32 %v1838_v23, %v1591_v50  ;;  %v628_v0 = vadd.f32 %v1839_v53, %v532_v41  ;;  %v629_v17 = vadd.f32 %v1840_v2, %v533_v37  ;;  %v1843_v20 = vunpack.c.l.bf16 %v1487_v42 }
  0x3b   : > { %v630_v51 = vadd.f32 %v1841_v59, %v534_v47  ;;  %v631_v15 = vadd.f32 %v1842_v44, %v535_v22  ;;  %v506_v10 = vadd.f32 %v1622_v16, %v468_v52  ;;  %v1844_v30 = vunpack.c.h.bf16 %v1487_v42 }
  0x3c   : > { %v507_v43 = vadd.f32 %v1622_v16, %v469_v8  ;;  %v1197_v12 = vpack.c.bf16 %v629_v17, %v628_v0  ;;  %v632_v11 = vadd.f32 %v1843_v20, %v536_v19  ;;  %v1845_v27 = vunpack.c.l.bf16 %v1500_v49 }
  0x3d   : > { %v633_v21 = vadd.f32 %v1844_v30, %v537_v32  ;;  %v1202_v13 = vpack.c.bf16 %v631_v15, %v630_v51  ;;  %v538_v36 = vmax.f32 %v506_v10, 0.0  ;;  %v1846_v28 = vunpack.c.h.bf16 %v1500_v49 }
  0x3e   : > { %v470_v26 = vmul.f32 %v1845_v27, %v1591_v50  ;;  %v539_v25 = vmax.f32 %v507_v43, 0.0  ;;  %1287 = vst [vmem:[%s1665_s18 + $0x20] sm:$0xff] %v1197_v12   ;;  %v1847_v42 = vunpack.c.l.bf16 %v1510_v55  ;;  %v1848_v40 = vunpack.c.h.bf16 %v1510_v55 }
  0x3f   : > { %v471_v29 = vmul.f32 %v1846_v28, %v1591_v50  ;;  %v1207_v34 = vpack.c.bf16 %v633_v21, %v632_v11  ;;  %1288 = vst [vmem:[%s1665_s18 + $0x28] sm:$0xff] %v1202_v13   ;;  %v1849_v41 = vunpack.c.l.bf16 %v1497_v48  ;;  %v1850_v24 = vunpack.c.h.bf16 %v1497_v48 }
  0x40   : > { %v508_v31 = vadd.f32 %v1622_v16, %v470_v26  ;;  %v472_v35 = vmul.f32 %v1847_v42, %v1591_v50  ;;  %v473_v18 = vmul.f32 %v1848_v40, %v1591_v50  ;;  %v1851_v47 = vunpack.c.l.bf16 %v1520_v61 }
  0x41   : > { %v634_v37 = vadd.f32 %v1849_v41, %v538_v36  ;;  %v635_v49 = vadd.f32 %v1850_v24, %v539_v25  ;;  %v509_v46 = vadd.f32 %v1622_v16, %v471_v29  ;;  %1289 = vst [vmem:[%s1665_s18 + $0x30] sm:$0xff] %v1207_v34   ;;  %v1852_v23 = vunpack.c.h.bf16 %v1520_v61 }
  0x42   : > { %v474_v22 = vmul.f32 %v1851_v47, %v1591_v50  ;;  %v540_v14 = vmax.f32 %v508_v31, 0.0  ;;  %v510_v52 = vadd.f32 %v1622_v16, %v472_v35  ;;  %v511_v55 = vadd.f32 %v1622_v16, %v473_v18 }
  0x43   : > { %v475_v8 = vmul.f32 %v1852_v23, %v1591_v50  ;;  %v1212_v53 = vpack.c.bf16 %v635_v49, %v634_v37  ;;  %v541_v48 = vmax.f32 %v509_v46, 0.0  ;;  %v1853_v2 = vunpack.c.l.bf16 %v1530_v4 }
  0x44   : > { %v512_v0 = vadd.f32 %v1622_v16, %v474_v22  ;;  %v1854_v19 = vunpack.c.l.bf16 %v1507_v54  ;;  %v542_v59 = vmax.f32 %v510_v52, 0.0  ;;  %v543_v51 = vmax.f32 %v511_v55, 0.0 }
  0x45   : > { %v476_v17 = vmul.f32 %v1853_v2, %v1591_v50  ;;  %v513_v44 = vadd.f32 %v1622_v16, %v475_v8  ;;  %1290 = vst [vmem:[%s1665_s18 + $0x38] sm:$0xff] %v1212_v53   ;;  %v1855_v15 = vunpack.c.h.bf16 %v1507_v54  ;;  %v1856_v43 = vunpack.c.h.bf16 %v1530_v4 }
  0x46   : > { %v636_v32 = vadd.f32 %v1854_v19, %v540_v14  ;;  %v544_v10 = vmax.f32 %v512_v0, 0.0  ;;  %v1857_v11 = vunpack.c.l.bf16 %v1517_v60  ;;  %v1858_v21 = vunpack.c.h.bf16 %v1517_v60 }
  0x47   : > { %v637_v61 = vadd.f32 %v1855_v15, %v541_v48  ;;  %v477_v12 = vmul.f32 %v1856_v43, %v1591_v50  ;;  %v514_v20 = vadd.f32 %v1622_v16, %v476_v17  ;;  %v545_v26 = vmax.f32 %v513_v44, 0.0 }
  0x48   : > { %v638_v30 = vadd.f32 %v1857_v11, %v542_v59  ;;  %v639_v27 = vadd.f32 %v1858_v21, %v543_v51  ;;  %v1859_v54 = vunpack.c.l.bf16 %v1540_v62  ;;  %v1860_v25 = vunpack.c.l.bf16 %v1527_v3 }
  0x49   : > { %v1217_v36 = vpack.c.bf16 %v637_v61, %v636_v32  ;;  %v515_v4 = vadd.f32 %v1622_v16, %v477_v12  ;;  %v546_v29 = vmax.f32 %v514_v20, 0.0  ;;  %v1861_v31 = vunpack.c.h.bf16 %v1527_v3 }
  0x4a   : > { %v478_v13 = vmul.f32 %v1859_v54, %v1591_v50  ;;  %v640_v28 = vadd.f32 %v1860_v25, %v544_v10  ;;  %v1222_v34 = vpack.c.bf16 %v639_v27, %v638_v30  ;;  %v1862_v60 = vunpack.c.h.bf16 %v1540_v62 }
  0x4b   : > { %v641_v42 = vadd.f32 %v1861_v31, %v545_v26  ;;  %1291 = vst [vmem:[%s1665_s18 + $0x40] sm:$0xff] %v1217_v36   ;;  %v547_v18 = vmax.f32 %v515_v4, 0.0  ;;  %v1863_v41 = vunpack.c.l.bf16 %v1537_v63  ;;  %v1864_v24 = vunpack.c.l.bf16 %v1553_v9 }
  0x4c   : > { %v479_v35 = vmul.f32 %v1862_v60, %v1591_v50  ;;  %v516_v40 = vadd.f32 %v1622_v16, %v478_v13  ;;  %v1865_v3 = vunpack.c.h.bf16 %v1553_v9  ;;  %1292 = vst [vmem:[%s1665_s18 + $0x48] sm:$0xff] %v1222_v34   ;;  %v482_v14 = vmul.f32 %v1104_v6, %v1591_v50 }
  0x4d   : > { %v642_v37 = vadd.f32 %v1863_v41, %v546_v29  ;;  %v480_v49 = vmul.f32 %v1864_v24, %v1591_v50  ;;  %v1227_v47 = vpack.c.bf16 %v641_v42, %v640_v28  ;;  %v1866_v52 = vunpack.c.h.bf16 %v1537_v63 }
  0x4e   : > { %v481_v46 = vmul.f32 %v1865_v3, %v1591_v50  ;;  %v517_v62 = vadd.f32 %v1622_v16, %v479_v35  ;;  %v548_v22 = vmax.f32 %v516_v40, 0.0  ;;  %v483_v9 = vmul.f32 %v1105_v39, %v1591_v50 }
  0x4f   : > { %v643_v55 = vadd.f32 %v1866_v52, %v547_v18  ;;  %v518_v23 = vadd.f32 %v1622_v16, %v480_v49  ;;  %1293 = vst [vmem:[%s1665_s18 + $0x50] sm:$0xff] %v1227_v47   ;;  %v1867_v48 = vunpack.c.l.bf16 %v1550_v57  ;;  %v520_v2 = vadd.f32 %v1622_v16, %v482_v14 }
  0x50   : > { %v519_v8 = vadd.f32 %v1622_v16, %v481_v46  ;;  %v549_v53 = vmax.f32 %v517_v62, 0.0  ;;  %v484_v63 = vmul.f32 %v1108_v7, %v1591_v50  ;;  %v521_v32 = vadd.f32 %v1622_v16, %v483_v9 }
  0x51   : > { %v644_v0 = vadd.f32 %v1867_v48, %v548_v22  ;;  %v1232_v6 = vpack.c.bf16 %v643_v55, %v642_v37  ;;  %v550_v17 = vmax.f32 %v518_v23, 0.0  ;;  %v1868_v59 = vunpack.c.h.bf16 %v1550_v57 }
  0x52   : > { %v551_v19 = vmax.f32 %v519_v8, 0.0  ;;  %v552_v45 = vmax.f32 %v520_v2, 0.0  ;;  %v485_v51 = vmul.f32 %v1109_v56, %v1591_v50  ;;  %v522_v44 = vadd.f32 %v1622_v16, %v484_v63 }
  0x53   : > { %v645_v39 = vadd.f32 %v1868_v59, %v549_v53  ;;  %1294 = vst [vmem:[%s1665_s18 + $0x58] sm:$0xff] %v1232_v6   ;;  %v1869_v7 = vunpack.c.l.bf16 %v1560_v5  ;;  %v1870_v61 = vunpack.c.h.bf16 %v1560_v5  ;;  %v553_v43 = vmax.f32 %v521_v32, 0.0 }
  0x54   : > { %v1173_v57 = vunpack.c.h.bf16 %v1579_v33  ;;  %v1871_v20 = vunpack.c.l.bf16 %v1570_v58  ;;  %v523_v50 = vadd.f32 %v1622_v16, %v485_v51  ;;  %v554_v56 = vmax.f32 %v522_v44, 0.0 }
  0x55   : > { %v646_v15 = vadd.f32 %v1869_v7, %v550_v17  ;;  %v647_v10 = vadd.f32 %v1870_v61, %v551_v19  ;;  %v1237_v12 = vpack.c.bf16 %v645_v39, %v644_v0  ;;  %v1872_v30 = vunpack.c.h.bf16 %v1570_v58 }
  0x56   : > { %v648_v38 = vadd.f32 %v1871_v20, %v552_v45  ;;  %v555_v27 = vmax.f32 %v523_v50, 0.0  ;;  %v650_v5 = vadd.f32 %v1172_v1, %v554_v56 }
  0x57   : > { %v1242_v11 = vpack.c.bf16 %v647_v10, %v646_v15  ;;  %v649_v21 = vadd.f32 %v1872_v30, %v553_v43  ;;  %1295 = vst [vmem:[%s1665_s18 + $0x60] sm:$0xff] %v1237_v12  }
  0x58   : > { %v651_v54 = vadd.f32 %v1173_v57, %v555_v27 }
  0x59   : > { %1296 = vst [vmem:[%s1665_s18 + $0x68] sm:$0xff] %v1242_v11   ;;  %v1247_v26 = vpack.c.bf16 %v649_v21, %v648_v38 }
  0x5a   : > { %v1252_v13 = vpack.c.bf16 %v651_v54, %v650_v5 }
  0x5b   : > { %1297 = vst [vmem:[%s1665_s18 + $0x70] sm:$0xff] %v1247_v26  }
  0x5c   : > { %1298 = vst [vmem:[%s1665_s18 + $0x78] sm:$0xff] %v1252_v13  }
  0x5d PF: > { %s16_s23 = sadd.s32 1, %s1347_s23   ;;  %s1873_s21 = smov %s1343_s22 }
  0x5e   : > { %p13_p5 = scmp.ge.s32.totalorder %s16_s23, 4   ;;  %s1874_s22 = smov %s1876_s24 }
  0x60   :  { %15 = sbr.rel (!%p13_p5) target bundleno = 2 (0x2), region = 89 }

// kernel: rrcnn_forward.19
= control target key start
LH: loop header
LB: loop body
LE: loop exit
PB: predicated region body
PF: predicated region fallthrough
CT: control target
= control target key end

     0   :  { %s1125_s18 = smov 0   ;;  %s1127_s19 = smov 0   ;;  %s1364_s0 = inlined_call_operand.vmem [shape: bf16[2,16,16,128], index: 0, kind: input, shape index: {}]   ;;  %s1365_s1 = inlined_call_operand.vmem [shape: f32[1,128], index: 1, kind: input, shape index: {}]   ;;  %s1366_s2 = inlined_call_operand.vmem [shape: f32[1,128], index: 2, kind: input, shape index: {}]   ;;  %s1367_s3 = inlined_call_operand.vmem [shape: f32[1,128], index: 3, kind: input, shape index: {}]   ;;  %s1368_s4 = inlined_call_operand.vmem [shape: f32[1,128], index: 4, kind: input, shape index: {}]   ;;  %s1369_s5 = inlined_call_operand.vmem [shape: bf16[2,16,16,128], index: 5, kind: output, shape index: {}]  }
   0x1   :  { %s1129_s20 = smov 0  }
   0x2 LB: > { %s27_s21 = sadd.s32 1, %s1089_s19  ;;  %p798_p0 = scmp.ge.s32.totalorder %s1093_s20, 1  ;;  %s1093_s20 = sphi %s1129_s20, %s15_s20   ;;  %s1089_s19 = sphi %s1127_s19, %s1371_s19   ;;  %s1085_s18 = sphi %s1125_s18, %s1370_s18  }
   0x3   : > { %p29_p1 = scmp.ge.s32.totalorder %s27_s21, 2  ;;  %p238_p2 = scmp.lt.s32.totalorder %s1093_s20, 3 }
   0x5   : > { %s1373_s21 = smov (%p29_p1, %s27_s21), 0  ;;  %p239_p3 = pnand %p798_p0, %p238_p2 }
   0x6   : > { %p284_p4 = scmp.lt.s32.totalorder (!%p239_p3), %s1085_s18, 1 }
   0x7   : > { %242 = sbr.rel (%p239_p3) target bundleno = 75 (0x4b), region = 40 }
   0xc   : > { %v312_v0 = vld [vmem:[%s1365_s1] sm:$0x1]  ;;  %s1375_s18 = smov (!%p284_p4, %s1085_s18), 1  ;;  %v391_v8 = vlaneseq }
   0xd   : > { %v314_v1 = vld [vmem:[%s1366_s2] sm:$0x1]  ;;  %v313_v2 = vmul.f32 0.001953125, %v312_v0  ;;  %s837_s26 = sshll.u32 %s1375_s18, 7 }
   0xe   : > { %v315_v3 = vmul.f32 0.001953125, %v314_v1  ;;  %s1157_s29 = scalar_lea.vmem %s1364_s0, %s837_s26  ;;  %v1159_v9 = vshrl.u32 %v391_v8, 7  ;;  %v319_v28 = vld [vmem:[%s1367_s3] sm:$0x1]  ;;  %s1259_s11 = scalar_lea.vmem %s1369_s5, %s837_s26 }
   0xf   : > { %v316_v4 = vmul.f32 %v313_v2, %v313_v2  ;;  %v872_v10 = vld [vmem:[%s1157_s29] sm:$0xff]   ;;  %v1015_v11 = vld [vmem:[%s1157_s29 + $0x8] sm:$0xff]   ;;  %v1016_v12 = vld [vmem:[%s1157_s29 + $0x10] sm:$0xff]  }
  0x10   : > { %v1017_v13 = vld [vmem:[%s1157_s29 + $0x18] sm:$0xff]   ;;  %v1166_v14 = vld [vmem:[%s1157_s29 + $0x20] sm:$0xff]   ;;  %v1169_v15 = vld [vmem:[%s1157_s29 + $0x28] sm:$0xff]   ;;  %v873_v16 = vunpack.c.l.bf16 %v872_v10  ;;  %v874_v17 = vunpack.c.h.bf16 %v872_v10  ;;  %v393_v18 = vsub.s32 0, %v1159_v9  ;;  %v877_v19 = vunpack.c.l.bf16 %v1015_v11 }
  0x11   : > { %v317_v5 = vsub.f32 %v315_v3, %v316_v4  ;;  %v1020_v20 = vld [vmem:[%s1157_s29 + $0x30] sm:$0xff]   ;;  %v1174_v21 = vld [vmem:[%s1157_s29 + $0x38] sm:$0xff]   ;;  %v878_v22 = vunpack.c.h.bf16 %v1015_v11  ;;  %v881_v23 = vunpack.c.l.bf16 %v1016_v12  ;;  %v882_v24 = vunpack.c.h.bf16 %v1016_v12  ;;  %v1177_v26 = vld [vmem:[%s1157_s29 + $0x40] sm:$0xff]  }
  0x12   : > { %v885_v25 = vunpack.c.l.bf16 %v1017_v13  ;;  %v1180_v27 = vld [vmem:[%s1157_s29 + $0x48] sm:$0xff]   ;;  %v886_v29 = vunpack.c.h.bf16 %v1017_v13  ;;  %v889_v30 = vunpack.c.l.bf16 %v1166_v14  ;;  %v890_v31 = vunpack.c.h.bf16 %v1166_v14  ;;  %v1189_v33 = vld [vmem:[%s1157_s29 + $0x50] sm:$0xff]   ;;  %v1194_v38 = vld [vmem:[%s1157_s29 + $0x58] sm:$0xff]  }
  0x13   : > { %v318_v6 = vmax.f32 %v317_v5, 0.0  ;;  %v893_v32 = vunpack.c.l.bf16 %v1169_v15  ;;  %v894_v34 = vunpack.c.h.bf16 %v1169_v15  ;;  %v897_v35 = vunpack.c.l.bf16 %v1020_v20  ;;  %v1197_v39 = vld [vmem:[%s1157_s29 + $0x60] sm:$0xff]   ;;  %v1204_v45 = vld [vmem:[%s1157_s29 + $0x68] sm:$0xff]   ;;  %v1210_v50 = vld [vmem:[%s1157_s29 + $0x70] sm:$0xff]  }
  0x14   : > { %v898_v36 = vunpack.c.h.bf16 %v1020_v20  ;;  %v901_v37 = vunpack.c.l.bf16 %v1174_v21  ;;  %v902_v41 = vunpack.c.h.bf16 %v1174_v21  ;;  %v905_v42 = vunpack.c.l.bf16 %v1177_v26  ;;  %v1213_v51 = vld [vmem:[%s1157_s29 + $0x78] sm:$0xff]   ;;  %v323_v52 = vld [vmem:[%s1368_s4] sm:$0x1] }
  0x15   : > { %v320_v7 = vadd.f32 1e-05, %v318_v6  ;;  %v906_v43 = vunpack.c.h.bf16 %v1177_v26  ;;  %v909_v44 = vunpack.c.l.bf16 %v1180_v27  ;;  %v910_v47 = vunpack.c.h.bf16 %v1180_v27 }
  0x16   : > { %v913_v48 = vunpack.c.l.bf16 %v1189_v33  ;;  %v914_v49 = vunpack.c.h.bf16 %v1189_v33  ;;  %v917_v53 = vunpack.c.l.bf16 %v1194_v38  ;;  %v918_v54 = vunpack.c.h.bf16 %v1194_v38 }
  0x17   : > { %1069 = vrsqrt.f32 %v320_v7  ;;  %v921_v55 = vunpack.c.l.bf16 %v1197_v39  ;;  %v922_v56 = vunpack.c.h.bf16 %v1197_v39  ;;  %v925_v59 = vunpack.c.l.bf16 %v1204_v45 }
  0x18   : > { %v926_v60 = vunpack.c.h.bf16 %v1204_v45  ;;  %v929_v61 = vunpack.c.l.bf16 %v1210_v50  ;;  %v930_v62 = vunpack.c.h.bf16 %v1210_v50  ;;  %v933_v63 = vunpack.c.l.bf16 %v1213_v51 }
  0x19   : > { %v934_v0 = vunpack.c.h.bf16 %v1213_v51 }
  0x24   : > { %v1070_v40 = vpop.eup %1069 }
  0x25   : > { %v322_v46 = vmul.f32 %v1070_v40, %v319_v28 }
  0x27   : > { %v324_v57 = vmul.f32 %v322_v46, %v313_v2  ;;  %v1222_v58 = vrot.slane %v322_v46, %v393_v18 }
  0x29   : > { %v325_v1 = vsub.f32 %v323_v52, %v324_v57  ;;  %v396_v3 = vmul.f32 %v873_v16, %v1222_v58  ;;  %v397_v4 = vmul.f32 %v874_v17, %v1222_v58  ;;  %v398_v2 = vmul.f32 %v877_v19, %v1222_v58 }
  0x2a   : > { %v399_v5 = vmul.f32 %v878_v22, %v1222_v58  ;;  %v400_v6 = vmul.f32 %v881_v23, %v1222_v58  ;;  %v401_v7 = vmul.f32 %v882_v24, %v1222_v58  ;;  %v402_v8 = vmul.f32 %v885_v25, %v1222_v58 }
  0x2b   : > { %v1237_v9 = vrot.slane %v325_v1, %v393_v18  ;;  %v403_v10 = vmul.f32 %v886_v29, %v1222_v58  ;;  %v404_v11 = vmul.f32 %v889_v30, %v1222_v58  ;;  %v405_v12 = vmul.f32 %v890_v31, %v1222_v58 }
  0x2c   : > { %v406_v13 = vmul.f32 %v893_v32, %v1222_v58  ;;  %v407_v14 = vmul.f32 %v894_v34, %v1222_v58  ;;  %v408_v15 = vmul.f32 %v897_v35, %v1222_v58  ;;  %v409_v16 = vmul.f32 %v898_v36, %v1222_v58 }
  0x2d   : > { %v434_v17 = vadd.f32 %v1237_v9, %v396_v3  ;;  %v435_v18 = vadd.f32 %v1237_v9, %v397_v4  ;;  %v436_v19 = vadd.f32 %v1237_v9, %v398_v2  ;;  %v437_v20 = vadd.f32 %v1237_v9, %v399_v5 }
  0x2e   : > { %v438_v22 = vadd.f32 %v1237_v9, %v400_v6  ;;  %v439_v23 = vadd.f32 %v1237_v9, %v401_v7  ;;  %v440_v24 = vadd.f32 %v1237_v9, %v402_v8  ;;  %v441_v25 = vadd.f32 %v1237_v9, %v403_v10 }
  0x2f   : > { %v466_v28 = vmax.f32 %v434_v17, 0.0  ;;  %v467_v29 = vmax.f32 %v435_v18, 0.0  ;;  %v468_v30 = vmax.f32 %v436_v19, 0.0  ;;  %v469_v31 = vmax.f32 %v437_v20, 0.0 }
  0x30   : > { %v470_v32 = vmax.f32 %v438_v22, 0.0  ;;  %v471_v34 = vmax.f32 %v439_v23, 0.0  ;;  %v472_v35 = vmax.f32 %v440_v24, 0.0  ;;  %v473_v36 = vmax.f32 %v441_v25, 0.0 }
  0x31   : > { %v938_v40 = vpack.c.bf16 %v467_v29, %v466_v28  ;;  %v943_v46 = vpack.c.bf16 %v469_v31, %v468_v30  ;;  %v442_v52 = vadd.f32 %v1237_v9, %v404_v11  ;;  %v443_v57 = vadd.f32 %v1237_v9, %v405_v12 }
  0x32   : > { %v948_v1 = vpack.c.bf16 %v471_v34, %v470_v32  ;;  %v953_v3 = vpack.c.bf16 %v473_v36, %v472_v35  ;;  %v444_v4 = vadd.f32 %v1237_v9, %v406_v13  ;;  %v445_v2 = vadd.f32 %v1237_v9, %v407_v14 }
  0x33   : > { %939 = vst [vmem:[%s1259_s11] sm:$0xff] %v938_v40   ;;  %1030 = vst [vmem:[%s1259_s11 + $0x8] sm:$0xff] %v943_v46   ;;  %v474_v5 = vmax.f32 %v442_v52, 0.0  ;;  %v475_v6 = vmax.f32 %v443_v57, 0.0  ;;  %v446_v7 = vadd.f32 %v1237_v9, %v408_v15  ;;  %v447_v8 = vadd.f32 %v1237_v9, %v409_v16 }
  0x34   : > { %1031 = vst [vmem:[%s1259_s11 + $0x10] sm:$0xff] %v948_v1   ;;  %1032 = vst [vmem:[%s1259_s11 + $0x18] sm:$0xff] %v953_v3   ;;  %v476_v10 = vmax.f32 %v444_v4, 0.0  ;;  %v477_v11 = vmax.f32 %v445_v2, 0.0  ;;  %v410_v12 = vmul.f32 %v901_v37, %v1222_v58  ;;  %v411_v13 = vmul.f32 %v902_v41, %v1222_v58 }
  0x35   : > { %v958_v14 = vpack.c.bf16 %v475_v6, %v474_v5  ;;  %v478_v17 = vmax.f32 %v446_v7, 0.0  ;;  %v479_v18 = vmax.f32 %v447_v8, 0.0  ;;  %v412_v15 = vmul.f32 %v905_v42, %v1222_v58 }
  0x36   : > { %v963_v16 = vpack.c.bf16 %v477_v11, %v476_v10  ;;  %v448_v19 = vadd.f32 %v1237_v9, %v410_v12  ;;  %v449_v20 = vadd.f32 %v1237_v9, %v411_v13  ;;  %v413_v37 = vmul.f32 %v906_v43, %v1222_v58 }
  0x37   : > { %1033 = vst [vmem:[%s1259_s11 + $0x20] sm:$0xff] %v958_v14   ;;  %v968_v21 = vpack.c.bf16 %v479_v18, %v478_v17  ;;  %v450_v41 = vadd.f32 %v1237_v9, %v412_v15  ;;  %v414_v22 = vmul.f32 %v909_v44, %v1222_v58  ;;  %v415_v42 = vmul.f32 %v910_v47, %v1222_v58 }
  0x38   : > { %1034 = vst [vmem:[%s1259_s11 + $0x28] sm:$0xff] %v963_v16   ;;  %v480_v23 = vmax.f32 %v448_v19, 0.0  ;;  %v481_v24 = vmax.f32 %v449_v20, 0.0  ;;  %v451_v25 = vadd.f32 %v1237_v9, %v413_v37  ;;  %v416_v26 = vmul.f32 %v913_v48, %v1222_v58 }
  0x39   : > { %1035 = vst [vmem:[%s1259_s11 + $0x30] sm:$0xff] %v968_v21   ;;  %v482_v43 = vmax.f32 %v450_v41, 0.0  ;;  %v452_v28 = vadd.f32 %v1237_v9, %v414_v22  ;;  %v453_v44 = vadd.f32 %v1237_v9, %v415_v42  ;;  %v417_v27 = vmul.f32 %v914_v49, %v1222_v58 }
  0x3a   : > { %v973_v47 = vpack.c.bf16 %v481_v24, %v480_v23  ;;  %v483_v29 = vmax.f32 %v451_v25, 0.0  ;;  %v454_v30 = vadd.f32 %v1237_v9, %v416_v26  ;;  %v418_v31 = vmul.f32 %v917_v53, %v1222_v58 }
  0x3b   : > { %v484_v48 = vmax.f32 %v452_v28, 0.0  ;;  %v485_v32 = vmax.f32 %v453_v44, 0.0  ;;  %v455_v34 = vadd.f32 %v1237_v9, %v417_v27  ;;  %v419_v35 = vmul.f32 %v918_v54, %v1222_v58 }
  0x3c   : > { %1036 = vst [vmem:[%s1259_s11 + $0x38] sm:$0xff] %v973_v47   ;;  %v978_v33 = vpack.c.bf16 %v483_v29, %v482_v43  ;;  %v486_v49 = vmax.f32 %v454_v30, 0.0  ;;  %v456_v36 = vadd.f32 %v1237_v9, %v418_v31  ;;  %v420_v40 = vmul.f32 %v921_v55, %v1222_v58 }
  0x3d   : > { %v983_v46 = vpack.c.bf16 %v485_v32, %v484_v48  ;;  %v487_v53 = vmax.f32 %v455_v34, 0.0  ;;  %v457_v52 = vadd.f32 %v1237_v9, %v419_v35  ;;  %v421_v38 = vmul.f32 %v922_v56, %v1222_v58 }
  0x3e   : > { %1037 = vst [vmem:[%s1259_s11 + $0x40] sm:$0xff] %v978_v33   ;;  %v488_v54 = vmax.f32 %v456_v36, 0.0  ;;  %v458_v57 = vadd.f32 %v1237_v9, %v420_v40  ;;  %v422_v1 = vmul.f32 %v925_v59, %v1222_v58  ;;  %v423_v55 = vmul.f32 %v926_v60, %v1222_v58 }
  0x3f   : > { %1038 = vst [vmem:[%s1259_s11 + $0x48] sm:$0xff] %v983_v46   ;;  %v988_v3 = vpack.c.bf16 %v487_v53, %v486_v49  ;;  %v489_v4 = vmax.f32 %v457_v52, 0.0  ;;  %v459_v39 = vadd.f32 %v1237_v9, %v421_v38  ;;  %v424_v56 = vmul.f32 %v929_v61, %v1222_v58 }
  0x40   : > { %v490_v2 = vmax.f32 %v458_v57, 0.0  ;;  %v460_v5 = vadd.f32 %v1237_v9, %v422_v1  ;;  %v461_v6 = vadd.f32 %v1237_v9, %v423_v55  ;;  %v425_v45 = vmul.f32 %v930_v62, %v1222_v58 }
  0x41   : > { %1039 = vst [vmem:[%s1259_s11 + $0x50] sm:$0xff] %v988_v3   ;;  %v993_v59 = vpack.c.bf16 %v489_v4, %v488_v54  ;;  %v491_v60 = vmax.f32 %v459_v39, 0.0  ;;  %v462_v7 = vadd.f32 %v1237_v9, %v424_v56  ;;  %v426_v61 = vmul.f32 %v933_v63, %v1222_v58 }
  0x42   : > { %v492_v8 = vmax.f32 %v460_v5, 0.0  ;;  %v493_v10 = vmax.f32 %v461_v6, 0.0  ;;  %v463_v11 = vadd.f32 %v1237_v9, %v425_v45  ;;  %v427_v50 = vmul.f32 %v934_v0, %v1222_v58 }
  0x43   : > { %1040 = vst [vmem:[%s1259_s11 + $0x58] sm:$0xff] %v993_v59   ;;  %v998_v62 = vpack.c.bf16 %v491_v60, %v490_v2  ;;  %v494_v12 = vmax.f32 %v462_v7, 0.0  ;;  %v464_v13 = vadd.f32 %v1237_v9, %v426_v61 }
  0x44   : > { %v1003_v14 = vpack.c.bf16 %v493_v10, %v492_v8  ;;  %v495_v17 = vmax.f32 %v463_v11, 0.0  ;;  %v465_v18 = vadd.f32 %v1237_v9, %v427_v50 }
  0x45   : > { %1041 = vst [vmem:[%s1259_s11 + $0x60] sm:$0xff] %v998_v62   ;;  %v496_v63 = vmax.f32 %v464_v13, 0.0 }
  0x46   : > { %1042 = vst [vmem:[%s1259_s11 + $0x68] sm:$0xff] %v1003_v14   ;;  %v1008_v15 = vpack.c.bf16 %v495_v17, %v494_v12  ;;  %v497_v16 = vmax.f32 %v465_v18, 0.0 }
  0x48   : > { %1043 = vst [vmem:[%s1259_s11 + $0x70] sm:$0xff] %v1008_v15   ;;  %v1013_v19 = vpack.c.bf16 %v497_v16, %v496_v63 }
  0x4a   : > { %1044 = vst [vmem:[%s1259_s11 + $0x78] sm:$0xff] %v1013_v19  }
  0x4b PF: > { %s15_s20 = sadd.s32 1, %s1093_s20   ;;  %s1370_s18 = smov %s1089_s19 }
  0x4c   : > { %p12_p5 = scmp.ge.s32.totalorder %s15_s20, 4   ;;  %s1371_s19 = smov %s1373_s21 }
  0x4e   :  { %14 = sbr.rel (!%p12_p5) target bundleno = 2 (0x2), region = 82 }

// kernel: rrcnn_forward.25
= control target key start
LH: loop header
LB: loop body
LE: loop exit
PB: predicated region body
PF: predicated region fallthrough
CT: control target
= control target key end

     0   :  { %s1097_s21 = smov 0   ;;  %s1099_s22 = smov 0   ;;  %s1555_s0 = inlined_call_operand.vmem [shape: bf16[2,16,16,128], index: 0, kind: input, shape index: {}]   ;;  %s1556_s1 = inlined_call_operand.vmem [shape: f32[1,128], index: 1, kind: input, shape index: {}]   ;;  %s1557_s2 = inlined_call_operand.vmem [shape: f32[1,128], index: 2, kind: input, shape index: {}]   ;;  %s1558_s3 = inlined_call_operand.vmem [shape: f32[1,128], index: 3, kind: input, shape index: {}]   ;;  %s1559_s4 = inlined_call_operand.vmem [shape: f32[1,128], index: 4, kind: input, shape index: {}]   ;;  %s1560_s5 = inlined_call_operand.vmem [shape: bf16[2,16,16,128], index: 5, kind: input, shape index: {}]   ;;  %s1561_s6 = inlined_call_operand.vmem [shape: f32[2,16,16,128], index: 6, kind: output, shape index: {}]  }
   0x1   :  { %s1101_s23 = smov 0  }
   0x2 LB: > { %s28_s24 = sadd.s32 1, %s1056_s22  ;;  %p842_p0 = scmp.ge.s32.totalorder %s1060_s23, 1  ;;  %s1060_s23 = sphi %s1101_s23, %s16_s23   ;;  %s1056_s22 = sphi %s1099_s22, %s1605_s22   ;;  %s1052_s21 = sphi %s1097_s21, %s1604_s21  }
   0x3   : > { %p30_p1 = scmp.ge.s32.totalorder %s28_s24, 2  ;;  %p278_p2 = scmp.lt.s32.totalorder %s1060_s23, 3 }
   0x5   : > { %s1607_s24 = smov (%p30_p1, %s28_s24), 0  ;;  %p279_p3 = pnand %p842_p0, %p278_p2 }
   0x6   : > { %p334_p4 = scmp.lt.s32.totalorder (!%p279_p3), %s1052_s21, 1 }
   0x7   : > { %282 = sbr.rel (%p279_p3) target bundleno = 87 (0x57), region = 44 }
   0xc   : > { %v370_v0 = vld [vmem:[%s1556_s1] sm:$0x1]  ;;  %s1609_s21 = smov (!%p334_p4, %s1052_s21), 1  ;;  %v449_v5 = vlaneseq }
   0xd   : > { %v372_v1 = vld [vmem:[%s1557_s2] sm:$0x1]  ;;  %v1121_v2 = vmul.f32 0.001953125, %v370_v0  ;;  %s851_s29 = sshll.u32 %s1609_s21, 7  ;;  %s853_s16 = sshll.u32 %s1609_s21, 8 }
   0xe   : > { %v373_v3 = vmul.f32 0.001953125, %v372_v1  ;;  %s1131_s8 = scalar_lea.vmem %s1555_s0, %s851_s29  ;;  %s1136_s11 = scalar_lea.vmem %s1560_s5, %s851_s29  ;;  %v1138_v8 = vshrl.u32 %v449_v5, 7  ;;  %v381_v54 = vld [vmem:[%s1559_s4] sm:$0x1] }
   0xf   : > { %v374_v4 = vmul.f32 %v1121_v2, %v1121_v2  ;;  %v1141_v10 = vld [vmem:[%s1131_s8] sm:$0xff]   ;;  %v1147_v12 = vld [vmem:[%s1131_s8 + $0x8] sm:$0xff]   ;;  %v1153_v14 = vld [vmem:[%s1131_s8 + $0x10] sm:$0xff]   ;;  %s1370_s19 = scalar_lea.vmem %s1561_s6, %s853_s16 }
  0x10   : > { %v1144_v11 = vld [vmem:[%s1136_s11] sm:$0xff]   ;;  %v1150_v13 = vld [vmem:[%s1136_s11 + $0x8] sm:$0xff]   ;;  %v1156_v15 = vld [vmem:[%s1136_s11 + $0x10] sm:$0xff]   ;;  %v856_v16 = vunpack.c.l.bf16 %v1141_v10  ;;  %v451_v17 = vsub.s32 0, %v1138_v8  ;;  %v857_v19 = vunpack.c.h.bf16 %v1141_v10  ;;  %v860_v23 = vunpack.c.l.bf16 %v1147_v12 }
  0x11   : > { %v375_v6 = vsub.f32 %v373_v3, %v374_v4  ;;  %v920_v18 = vunpack.c.l.bf16 %v1144_v11  ;;  %v1163_v20 = vld [vmem:[%s1131_s8 + $0x18] sm:$0xff]   ;;  %v921_v22 = vunpack.c.h.bf16 %v1144_v11  ;;  %v924_v24 = vunpack.c.l.bf16 %v1150_v13  ;;  %v1173_v26 = vld [vmem:[%s1131_s8 + $0x20] sm:$0xff]   ;;  %v1183_v32 = vld [vmem:[%s1131_s8 + $0x28] sm:$0xff]  }
  0x12   : > { %v1166_v21 = vld [vmem:[%s1136_s11 + $0x18] sm:$0xff]   ;;  %v861_v25 = vunpack.c.h.bf16 %v1147_v12  ;;  %v1176_v27 = vld [vmem:[%s1136_s11 + $0x20] sm:$0xff]   ;;  %v864_v29 = vunpack.c.l.bf16 %v1153_v14  ;;  %v865_v31 = vunpack.c.h.bf16 %v1153_v14  ;;  %v1186_v33 = vld [vmem:[%s1136_s11 + $0x28] sm:$0xff]   ;;  %v868_v35 = vunpack.c.l.bf16 %v1163_v20 }
  0x13   : > { %v376_v7 = vmax.f32 %v375_v6, 0.0  ;;  %v869_v37 = vunpack.c.h.bf16 %v1163_v20  ;;  %v1193_v38 = vld [vmem:[%s1131_s8 + $0x30] sm:$0xff]   ;;  %v872_v41 = vunpack.c.l.bf16 %v1173_v26  ;;  %v873_v43 = vunpack.c.h.bf16 %v1173_v26  ;;  %v1203_v44 = vld [vmem:[%s1131_s8 + $0x38] sm:$0xff]   ;;  %v1213_v50 = vld [vmem:[%s1131_s8 + $0x40] sm:$0xff]  }
  0x14   : > { %v1196_v39 = vld [vmem:[%s1136_s11 + $0x30] sm:$0xff]   ;;  %v1206_v45 = vld [vmem:[%s1136_s11 + $0x38] sm:$0xff]   ;;  %v876_v47 = vunpack.c.l.bf16 %v1183_v32  ;;  %v877_v49 = vunpack.c.h.bf16 %v1183_v32  ;;  %v1216_v51 = vld [vmem:[%s1136_s11 + $0x40] sm:$0xff]   ;;  %v880_v53 = vunpack.c.l.bf16 %v1193_v38  ;;  %v881_v55 = vunpack.c.h.bf16 %v1193_v38 }
  0x15   : > { %v378_v9 = vadd.f32 1e-05, %v376_v7  ;;  %v1223_v56 = vld [vmem:[%s1131_s8 + $0x48] sm:$0xff]   ;;  %v1233_v62 = vld [vmem:[%s1131_s8 + $0x50] sm:$0xff]   ;;  %v1243_v5 = vld [vmem:[%s1131_s8 + $0x58] sm:$0xff]  }
  0x16   : > { %v1226_v57 = vld [vmem:[%s1136_s11 + $0x48] sm:$0xff]   ;;  %v1236_v63 = vld [vmem:[%s1136_s11 + $0x50] sm:$0xff]   ;;  %v1246_v6 = vld [vmem:[%s1136_s11 + $0x58] sm:$0xff]  }
  0x17   : > { %1036 = vrsqrt.f32 %v378_v9  ;;  %v1253_v1 = vld [vmem:[%s1131_s8 + $0x60] sm:$0xff]   ;;  %v1266_v60 = vld [vmem:[%s1131_s8 + $0x68] sm:$0xff]   ;;  %v1276_v42 = vld [vmem:[%s1131_s8 + $0x70] sm:$0xff]  }
  0x18   : > { %v1256_v3 = vld [vmem:[%s1136_s11 + $0x60] sm:$0xff]   ;;  %v1269_v52 = vld [vmem:[%s1136_s11 + $0x68] sm:$0xff]   ;;  %v1279_v7 = vld [vmem:[%s1136_s11 + $0x70] sm:$0xff]   ;;  %v913_v46 = vunpack.c.h.bf16 %v1276_v42 }
  0x19   : > { %v377_v4 = vld [vmem:[%s1558_s3] sm:$0x1]  ;;  %v1289_v36 = vld [vmem:[%s1131_s8 + $0x78] sm:$0xff]  }
  0x1a   : > { %v1292_v34 = vld [vmem:[%s1136_s11 + $0x78] sm:$0xff]   ;;  %v916_v30 = vunpack.c.l.bf16 %v1289_v36  ;;  %v917_v59 = vunpack.c.h.bf16 %v1289_v36 }
  0x24   : > { %v1037_v9 = vpop.eup %1036 }
  0x25   : > { %v380_v40 = vmul.f32 %v1037_v9, %v377_v4  ;;  %v976_v9 = vunpack.c.l.bf16 %v1279_v7  ;;  %v981_v4 = vunpack.c.h.bf16 %v1292_v34 }
  0x27   : > { %v382_v48 = vmul.f32 %v380_v40, %v1121_v2  ;;  %v1304_v58 = vrot.slane %v380_v40, %v451_v17 }
  0x29   : > { %v383_v28 = vsub.f32 %v381_v54, %v382_v48  ;;  %v454_v2 = vmul.f32 %v856_v16, %v1304_v58  ;;  %v455_v40 = vmul.f32 %v857_v19, %v1304_v58  ;;  %v456_v0 = vmul.f32 %v860_v23, %v1304_v58 }
  0x2a   : > { %v457_v61 = vmul.f32 %v861_v25, %v1304_v58  ;;  %v458_v48 = vmul.f32 %v864_v29, %v1304_v58  ;;  %v459_v16 = vmul.f32 %v865_v31, %v1304_v58  ;;  %v460_v10 = vmul.f32 %v868_v35, %v1304_v58 }
  0x2b   : > { %v1335_v19 = vrot.slane %v383_v28, %v451_v17  ;;  %v461_v12 = vmul.f32 %v869_v37, %v1304_v58  ;;  %v462_v23 = vmul.f32 %v872_v41, %v1304_v58  ;;  %v463_v14 = vmul.f32 %v873_v43, %v1304_v58 }
  0x2c   : > { %v464_v25 = vmul.f32 %v876_v47, %v1304_v58  ;;  %v465_v8 = vmul.f32 %v877_v49, %v1304_v58  ;;  %v466_v17 = vmul.f32 %v880_v53, %v1304_v58  ;;  %v467_v20 = vmul.f32 %v881_v55, %v1304_v58 }
  0x2d   : > { %v492_v26 = vadd.f32 %v1335_v19, %v454_v2  ;;  %v493_v28 = vadd.f32 %v1335_v19, %v455_v40  ;;  %v494_v29 = vadd.f32 %v1335_v19, %v456_v0  ;;  %v495_v31 = vadd.f32 %v1335_v19, %v457_v61 }
  0x2e   : > { %v496_v32 = vadd.f32 %v1335_v19, %v458_v48  ;;  %v497_v35 = vadd.f32 %v1335_v19, %v459_v16  ;;  %v498_v37 = vadd.f32 %v1335_v19, %v460_v10  ;;  %v499_v41 = vadd.f32 %v1335_v19, %v461_v12 }
  0x2f   : > { %v524_v43 = vmax.f32 %v492_v26, 0.0  ;;  %v525_v38 = vmax.f32 %v493_v28, 0.0  ;;  %v526_v47 = vmax.f32 %v494_v29, 0.0  ;;  %v527_v49 = vmax.f32 %v495_v31, 0.0 }
  0x30   : > { %v528_v53 = vmax.f32 %v496_v32, 0.0  ;;  %v529_v54 = vmax.f32 %v497_v35, 0.0  ;;  %v530_v55 = vmax.f32 %v498_v37, 0.0  ;;  %v531_v61 = vmax.f32 %v499_v41, 0.0 }
  0x31   : > { %v620_v0 = vadd.f32 %v920_v18, %v524_v43  ;;  %v621_v2 = vadd.f32 %v921_v22, %v525_v38  ;;  %v622_v40 = vadd.f32 %v924_v24, %v526_v47  ;;  %v1562_v48 = vunpack.c.h.bf16 %v1150_v13 }
  0x32   : > { %v1563_v10 = vunpack.c.l.bf16 %v1156_v15  ;;  %v1564_v26 = vunpack.c.h.bf16 %v1156_v15  ;;  %v1565_v18 = vunpack.c.l.bf16 %v1166_v21  ;;  %v1566_v22 = vunpack.c.h.bf16 %v1166_v21 }
  0x33   : > { %v623_v16 = vadd.f32 %v1562_v48, %v527_v49  ;;  %652 = vst [vmem:[%s1370_s19] sm:$0xff] %v620_v0  ;;  %653 = vst [vmem:[%s1370_s19 + $0x8] sm:$0xff] %v621_v2  ;;  %v500_v13 = vadd.f32 %v1335_v19, %v462_v23  ;;  %v501_v24 = vadd.f32 %v1335_v19, %v463_v14  ;;  %v1567_v35 = vunpack.c.l.bf16 %v1203_v44 }
  0x34   : > { %v624_v12 = vadd.f32 %v1563_v10, %v528_v53  ;;  %v625_v28 = vadd.f32 %v1564_v26, %v529_v54  ;;  %v626_v11 = vadd.f32 %v1565_v18, %v530_v55  ;;  %v627_v29 = vadd.f32 %v1566_v22, %v531_v61  ;;  %654 = vst [vmem:[%s1370_s19 + $0x10] sm:$0xff] %v622_v40 }
  0x35   : > { %655 = vst [vmem:[%s1370_s19 + $0x18] sm:$0xff] %v623_v16  ;;  %v502_v31 = vadd.f32 %v1335_v19, %v464_v25  ;;  %v503_v32 = vadd.f32 %v1335_v19, %v465_v8  ;;  %v504_v15 = vadd.f32 %v1335_v19, %v466_v17  ;;  %v505_v21 = vadd.f32 %v1335_v19, %v467_v20 }
  0x36   : > { %656 = vst [vmem:[%s1370_s19 + $0x20] sm:$0xff] %v624_v12  ;;  %657 = vst [vmem:[%s1370_s19 + $0x28] sm:$0xff] %v625_v28  ;;  %v468_v37 = vmul.f32 %v1567_v35, %v1304_v58  ;;  %v1568_v23 = vunpack.c.h.bf16 %v1203_v44  ;;  %v532_v41 = vmax.f32 %v500_v13, 0.0  ;;  %v533_v25 = vmax.f32 %v501_v24, 0.0 }
  0x37   : > { %658 = vst [vmem:[%s1370_s19 + $0x30] sm:$0xff] %v626_v11  ;;  %659 = vst [vmem:[%s1370_s19 + $0x38] sm:$0xff] %v627_v29  ;;  %v534_v8 = vmax.f32 %v502_v31, 0.0  ;;  %v535_v43 = vmax.f32 %v503_v32, 0.0  ;;  %v536_v38 = vmax.f32 %v504_v15, 0.0  ;;  %v537_v17 = vmax.f32 %v505_v21, 0.0 }
  0x38   : > { %v469_v14 = vmul.f32 %v1568_v23, %v1304_v58  ;;  %v506_v20 = vadd.f32 %v1335_v19, %v468_v37  ;;  %v1569_v49 = vunpack.c.l.bf16 %v1176_v27  ;;  %v1570_v44 = vunpack.c.h.bf16 %v1176_v27 }
  0x39   : > { %v1571_v55 = vunpack.c.l.bf16 %v1186_v33  ;;  %v1572_v0 = vunpack.c.h.bf16 %v1186_v33  ;;  %v1573_v40 = vunpack.c.l.bf16 %v1196_v39  ;;  %v1574_v16 = vunpack.c.h.bf16 %v1196_v39 }
  0x3a   : > { %v507_v47 = vadd.f32 %v1335_v19, %v469_v14  ;;  %v628_v53 = vadd.f32 %v1569_v49, %v532_v41  ;;  %v629_v54 = vadd.f32 %v1570_v44, %v533_v25  ;;  %v538_v12 = vmax.f32 %v506_v20, 0.0 }
  0x3b   : > { %v630_v61 = vadd.f32 %v1571_v55, %v534_v8  ;;  %v631_v2 = vadd.f32 %v1572_v0, %v535_v43  ;;  %v632_v48 = vadd.f32 %v1573_v40, %v536_v38  ;;  %v633_v10 = vadd.f32 %v1574_v16, %v537_v17 }
  0x3c   : > { %v539_v26 = vmax.f32 %v507_v47, 0.0  ;;  %660 = vst [vmem:[%s1370_s19 + $0x40] sm:$0xff] %v628_v53  ;;  %661 = vst [vmem:[%s1370_s19 + $0x48] sm:$0xff] %v629_v54  ;;  %v1575_v27 = vunpack.c.l.bf16 %v1213_v50  ;;  %v1576_v33 = vunpack.c.h.bf16 %v1213_v50  ;;  %v1577_v39 = vunpack.c.l.bf16 %v1223_v56 }
  0x3d   : > { %662 = vst [vmem:[%s1370_s19 + $0x50] sm:$0xff] %v630_v61  ;;  %663 = vst [vmem:[%s1370_s19 + $0x58] sm:$0xff] %v631_v2  ;;  %v1578_v22 = vunpack.c.h.bf16 %v1223_v56  ;;  %v1579_v13 = vunpack.c.l.bf16 %v1206_v45  ;;  %v1580_v31 = vunpack.c.h.bf16 %v1206_v45  ;;  %v1581_v50 = vunpack.c.l.bf16 %v1233_v62 }
  0x3e   : > { %v470_v28 = vmul.f32 %v1575_v27, %v1304_v58  ;;  %v471_v18 = vmul.f32 %v1576_v33, %v1304_v58  ;;  %v472_v11 = vmul.f32 %v1577_v39, %v1304_v58  ;;  %664 = vst [vmem:[%s1370_s19 + $0x60] sm:$0xff] %v632_v48  ;;  %665 = vst [vmem:[%s1370_s19 + $0x68] sm:$0xff] %v633_v10  ;;  %v1582_v21 = vunpack.c.h.bf16 %v1233_v62 }
  0x3f   : > { %v473_v29 = vmul.f32 %v1578_v22, %v1304_v58  ;;  %v634_v24 = vadd.f32 %v1579_v13, %v538_v12  ;;  %v635_v32 = vadd.f32 %v1580_v31, %v539_v26  ;;  %v474_v15 = vmul.f32 %v1581_v50, %v1304_v58 }
  0x40   : > { %v475_v35 = vmul.f32 %v1582_v21, %v1304_v58  ;;  %v508_v37 = vadd.f32 %v1335_v19, %v470_v28  ;;  %v509_v56 = vadd.f32 %v1335_v19, %v471_v18  ;;  %v510_v23 = vadd.f32 %v1335_v19, %v472_v11 }
  0x41   : > { %v511_v14 = vadd.f32 %v1335_v19, %v473_v29  ;;  %666 = vst [vmem:[%s1370_s19 + $0x70] sm:$0xff] %v634_v24  ;;  %667 = vst [vmem:[%s1370_s19 + $0x78] sm:$0xff] %v635_v32  ;;  %v512_v45 = vadd.f32 %v1335_v19, %v474_v15  ;;  %v1583_v25 = vunpack.c.l.bf16 %v1243_v5  ;;  %v1584_v62 = vunpack.c.h.bf16 %v1243_v5 }
  0x42   : > { %v513_v41 = vadd.f32 %v1335_v19, %v475_v35  ;;  %v540_v38 = vmax.f32 %v508_v37, 0.0  ;;  %v541_v17 = vmax.f32 %v509_v56, 0.0  ;;  %v542_v20 = vmax.f32 %v510_v23, 0.0 }
  0x43   : > { %v476_v8 = vmul.f32 %v1583_v25, %v1304_v58  ;;  %v477_v43 = vmul.f32 %v1584_v62, %v1304_v58  ;;  %v543_v47 = vmax.f32 %v511_v14, 0.0  ;;  %v544_v49 = vmax.f32 %v512_v45, 0.0 }
  0x44   : > { %v545_v53 = vmax.f32 %v513_v41, 0.0  ;;  %v1585_v55 = vunpack.c.l.bf16 %v1216_v51  ;;  %v1586_v5 = vunpack.c.h.bf16 %v1216_v51  ;;  %v1587_v2 = vunpack.c.l.bf16 %v1226_v57 }
  0x45   : > { %v514_v44 = vadd.f32 %v1335_v19, %v476_v8  ;;  %v515_v54 = vadd.f32 %v1335_v19, %v477_v43  ;;  %v1588_v48 = vunpack.c.h.bf16 %v1226_v57  ;;  %v1589_v10 = vunpack.c.l.bf16 %v1236_v63 }
  0x46   : > { %v636_v61 = vadd.f32 %v1585_v55, %v540_v38  ;;  %v637_v0 = vadd.f32 %v1586_v5, %v541_v17  ;;  %v638_v40 = vadd.f32 %v1587_v2, %v542_v20  ;;  %v1590_v26 = vunpack.c.h.bf16 %v1236_v63 }
  0x47   : > { %v639_v16 = vadd.f32 %v1588_v48, %v543_v47  ;;  %v640_v12 = vadd.f32 %v1589_v10, %v544_v49  ;;  %v546_v28 = vmax.f32 %v514_v44, 0.0  ;;  %v547_v33 = vmax.f32 %v515_v54, 0.0 }
  0x48   : > { %v641_v27 = vadd.f32 %v1590_v26, %v545_v53  ;;  %668 = vst [vmem:[%s1370_s19 + $0x80] sm:$0xff] %v636_v61  ;;  %669 = vst [vmem:[%s1370_s19 + $0x88] sm:$0xff] %v637_v0  ;;  %v1591_v51 = vunpack.c.l.bf16 %v1253_v1  ;;  %v1592_v57 = vunpack.c.h.bf16 %v1253_v1  ;;  %v1593_v63 = vunpack.c.l.bf16 %v1266_v60 }
  0x49   : > { %670 = vst [vmem:[%s1370_s19 + $0x90] sm:$0xff] %v638_v40  ;;  %671 = vst [vmem:[%s1370_s19 + $0x98] sm:$0xff] %v639_v16  ;;  %v1594_v22 = vunpack.c.h.bf16 %v1266_v60  ;;  %v1595_v13 = vunpack.c.l.bf16 %v1246_v6  ;;  %v1596_v31 = vunpack.c.h.bf16 %v1246_v6  ;;  %v1597_v1 = vunpack.c.l.bf16 %v1276_v42 }
  0x4a   : > { %v478_v18 = vmul.f32 %v1591_v51, %v1304_v58  ;;  %v479_v39 = vmul.f32 %v1592_v57, %v1304_v58  ;;  %v480_v11 = vmul.f32 %v1593_v63, %v1304_v58  ;;  %672 = vst [vmem:[%s1370_s19 + $0xa0] sm:$0xff] %v640_v12  ;;  %673 = vst [vmem:[%s1370_s19 + $0xa8] sm:$0xff] %v641_v27  ;;  %v1598_v43 = vunpack.c.l.bf16 %v1256_v3 }
  0x4b   : > { %v481_v29 = vmul.f32 %v1594_v22, %v1304_v58  ;;  %v642_v24 = vadd.f32 %v1595_v13, %v546_v28  ;;  %v643_v32 = vadd.f32 %v1596_v31, %v547_v33  ;;  %v482_v50 = vmul.f32 %v1597_v1, %v1304_v58 }
  0x4c   : > { %v483_v15 = vmul.f32 %v913_v46, %v1304_v58  ;;  %v516_v21 = vadd.f32 %v1335_v19, %v478_v18  ;;  %v517_v60 = vadd.f32 %v1335_v19, %v479_v39  ;;  %v518_v35 = vadd.f32 %v1335_v19, %v480_v11 }
  0x4d   : > { %v519_v37 = vadd.f32 %v1335_v19, %v481_v29  ;;  %674 = vst [vmem:[%s1370_s19 + $0xb0] sm:$0xff] %v642_v24  ;;  %675 = vst [vmem:[%s1370_s19 + $0xb8] sm:$0xff] %v643_v32  ;;  %v520_v6 = vadd.f32 %v1335_v19, %v482_v50  ;;  %v484_v23 = vmul.f32 %v916_v30, %v1304_v58  ;;  %v1600_v38 = vunpack.c.l.bf16 %v1269_v52 }
  0x4e   : > { %v521_v56 = vadd.f32 %v1335_v19, %v483_v15  ;;  %v485_v42 = vmul.f32 %v917_v59, %v1304_v58  ;;  %v548_v46 = vmax.f32 %v516_v21, 0.0  ;;  %v549_v14 = vmax.f32 %v517_v60, 0.0 }
  0x4f   : > { %v550_v45 = vmax.f32 %v518_v35, 0.0  ;;  %v551_v41 = vmax.f32 %v519_v37, 0.0  ;;  %v552_v25 = vmax.f32 %v520_v6, 0.0  ;;  %v522_v62 = vadd.f32 %v1335_v19, %v484_v23 }
  0x50   : > { %v553_v8 = vmax.f32 %v521_v56, 0.0  ;;  %v523_v30 = vadd.f32 %v1335_v19, %v485_v42  ;;  %v644_v36 = vadd.f32 %v1598_v43, %v548_v46  ;;  %v1599_v58 = vunpack.c.h.bf16 %v1256_v3 }
  0x51   : > { %v646_v17 = vadd.f32 %v1600_v38, %v550_v45  ;;  %v1601_v20 = vunpack.c.h.bf16 %v1269_v52  ;;  %v648_v49 = vadd.f32 %v976_v9, %v552_v25  ;;  %v1602_v53 = vunpack.c.h.bf16 %v1279_v7 }
  0x52   : > { %v645_v59 = vadd.f32 %v1599_v58, %v549_v14  ;;  %v554_v44 = vmax.f32 %v522_v62, 0.0  ;;  %v555_v54 = vmax.f32 %v523_v30, 0.0  ;;  %676 = vst [vmem:[%s1370_s19 + $0xc0] sm:$0xff] %v644_v36  ;;  %v1603_v3 = vunpack.c.l.bf16 %v1292_v34 }
  0x53   : > { %v647_v47 = vadd.f32 %v1601_v20, %v551_v41  ;;  %v649_v19 = vadd.f32 %v1602_v53, %v553_v8  ;;  %678 = vst [vmem:[%s1370_s19 + $0xd0] sm:$0xff] %v646_v17  ;;  %680 = vst [vmem:[%s1370_s19 + $0xe0] sm:$0xff] %v648_v49 }
  0x54   : > { %677 = vst [vmem:[%s1370_s19 + $0xc8] sm:$0xff] %v645_v59  ;;  %v650_v55 = vadd.f32 %v1603_v3, %v554_v44  ;;  %v651_v52 = vadd.f32 %v981_v4, %v555_v54 }
  0x55   : > { %679 = vst [vmem:[%s1370_s19 + $0xd8] sm:$0xff] %v647_v47  ;;  %681 = vst [vmem:[%s1370_s19 + $0xe8] sm:$0xff] %v649_v19 }
  0x56   : > { %682 = vst [vmem:[%s1370_s19 + $0xf0] sm:$0xff] %v650_v55  ;;  %683 = vst [vmem:[%s1370_s19 + $0xf8] sm:$0xff] %v651_v52 }
  0x57 PF: > { %s16_s23 = sadd.s32 1, %s1060_s23   ;;  %s1604_s21 = smov %s1056_s22 }
  0x58   : > { %p13_p5 = scmp.ge.s32.totalorder %s16_s23, 4   ;;  %s1605_s22 = smov %s1607_s24 }
  0x5a   :  { %15 = sbr.rel (!%p13_p5) target bundleno = 2 (0x2), region = 89 }

// kernel: rrcnn_forward.14
= control target key start
LH: loop header
LB: loop body
LE: loop exit
PB: predicated region body
PF: predicated region fallthrough
CT: control target
= control target key end

     0   :  { %s7131_s15 = smov 0   ;;  %s7133_s16 = smov 0   ;;  %s9806_s0 = inlined_call_operand.vmem [shape: bf16[2,18,18,128], index: 0, kind: input, shape index: {}]   ;;  %s9807_s1 = inlined_call_operand.vmem [shape: bf16[3,3,128,128], index: 1, kind: input, shape index: {}]   ;;  %s9808_s2 = inlined_call_operand.vmem [shape: bf16[2,16,16,128], index: 2, kind: output, shape index: {0}]   ;;  %s9809_s3 = inlined_call_operand.vmem [shape: f32[2,1,128], index: 3, kind: output, shape index: {1}]   ;;  %s9810_s4 = inlined_call_operand.vmem [shape: f32[2,1,128], index: 4, kind: output, shape index: {2}]  }
   0x1   :  { %s7135_s17 = smov 0  }
   0x2 LB: > { %s27_s18 = sadd.s32 1, %s7100_s16  ;;  %p5514_p0 = scmp.ge.s32.totalorder %s7104_s17, 1  ;;  %s7104_s17 = sphi %s7135_s17, %s15_s17   ;;  %s7100_s16 = sphi %s7133_s16, %s10031_s16   ;;  %s7096_s15 = sphi %s7131_s15, %s10030_s15  }
   0x3   : > { %p29_p1 = scmp.ge.s32.totalorder %s27_s18, 2  ;;  %p194_p2 = scmp.lt.s32.totalorder %s7104_s17, 3 }
   0x5   : > { %s10033_s18 = smov (%p29_p1, %s27_s18), 0  ;;  %p195_p3 = pnand %p5514_p0, %p194_p2 }
   0x7   : > { %198 = sbr.rel (%p195_p3) target bundleno = 574 (0x23e), region = 28 }
   0xc   : > { %v6953_v0 = vld [vmem:[%s9807_s1 + $0x78] sm:$0xff]   ;;  %p239_p4 = scmp.lt.s32.totalorder %s7096_s15, 1  ;;  %v6954_v1 = vld [vmem:[%s9807_s1 + $0x70] sm:$0xff]   ;;  %v6955_v2 = vld [vmem:[%s9807_s1 + $0x68] sm:$0xff]   ;;  %vm333_vm0 = vsmask.f32 3328 }
   0xd   : > { %6480 = vmatprep.subr.bf16.mxu0 %v6953_v0  ;;  %6912 = vmatprep.subr.bf16.mxu1 %v6953_v0  ;;  %v6956_v3 = vld [vmem:[%s9807_s1 + $0x60] sm:$0xff]   ;;  %vm334_vm1 = vsmask.f32 7440  ;;  %v6957_v17 = vld [vmem:[%s9807_s1 + $0x58] sm:$0xff]   ;;  %v6958_v33 = vld [vmem:[%s9807_s1 + $0x50] sm:$0xff]   ;;  %vm1363_vm3 = vcmask 1042432  }
   0xe   : > { %s10035_s15 = smov (!%p239_p4, %s7096_s15), 1  ;;  %6481 = vmatpush3.bf16.msra.mxu0 %v6953_v0  ;;  %6920 = vmatpush3.bf16.msra.mxu1 %v6953_v0  ;;  %vm7195_vm2 = vmor %vm333_vm0, %vm334_vm1  ;;  %v6959_v58 = vld [vmem:[%s9807_s1 + $0x48] sm:$0xff]   ;;  %vm1364_vm4 = vcmask 1046532  }
   0xf   : > { %6482 = vmatprep.subr.bf16.mxu0 %v6954_v1  ;;  %6913 = vmatprep.subr.bf16.mxu1 %v6954_v1  ;;  %s6928_s25 = smul.u32 216, %s10035_s15  ;;  %vm7506_vm5 = vmor %vm1363_vm3, %vm1364_vm4  ;;  %s261_s24 = scalar_lea.vmem %s9809_s3, %s10035_s15 }
  0x10   : > { %s267_s27 = scalar_lea.vmem %s9810_s4, %s10035_s15 }
  0x11   : > { %s7164_s28 = scalar_lea.vmem %s9806_s0, %s6928_s25 }
  0x12   : > { %6483 = vmatpush3.bf16.msra.mxu0 %v6954_v1  ;;  %6921 = vmatpush3.bf16.msra.mxu1 %v6954_v1  ;;  %v7170_v4 = vld [vmem:[%s7164_s28] sm:$0xf]  ;;  %v7173_v5 = vld [vmem:[%s7164_s28 + $0x4] sm:$0xf]  ;;  %v7176_v6 = vld [vmem:[%s7164_s28 + $0x8] sm:$0x1] }
  0x13   : > { %6484 = vmatprep.subr.bf16.mxu0 %v6955_v2  ;;  %6914 = vmatprep.subr.bf16.mxu1 %v6955_v2  ;;  %v337_v7 = vshrl.u32 %v7170_v4, 16  ;;  %v340_v8 = vshll.u32 %v7170_v4, 16  ;;  %v346_v9 = vshll.u32 %v7173_v5, 16  ;;  %v350_v10 = vshrl.u32 %v7173_v5, 16  ;;  %v285_v12 = vld [vmem:[%s7164_s28 + $0x60] sm:$0xf] }
  0x14   : > { %v356_v11 = vshll.u32 %v7176_v6, 16  ;;  %v286_v15 = vld [vmem:[%s7164_s28 + $0x64] sm:$0xf]  ;;  %v325_v16 = vld [vmem:[%s7164_s28 + $0x68] sm:$0x1]  ;;  %v529_v21 = vshrl.u32 %v285_v12, 16 }
  0x15   : > { %v339_v13 = vrot.slane %v337_v7, 4  ;;  %v342_v14 = vrot.slane %v340_v8, 5  ;;  %v348_v18 = vrot.slane %v346_v9, 5  ;;  %v352_v19 = vrot.slane %v350_v10, 4  ;;  %v7191_v26 = vld [vmem:[%s7164_s28 + $0xc] sm:$0xf] }
  0x16   : > { %6485 = vmatpush3.bf16.msra.mxu0 %v6955_v2  ;;  %6922 = vmatpush3.bf16.msra.mxu1 %v6955_v2  ;;  %v532_v23 = vshll.u32 %v285_v12, 16  ;;  %v538_v24 = vshll.u32 %v286_v15, 16  ;;  %v542_v25 = vshrl.u32 %v286_v15, 16  ;;  %v358_v29 = vrot.slane %v356_v11, 5  ;;  %v7200_v32 = vld [vmem:[%s7164_s28 + $0x10] sm:$0xf] }
  0x17   : > { %6486 = vmatprep.subr.bf16.mxu0 %v6956_v3  ;;  %6915 = vmatprep.subr.bf16.mxu1 %v6956_v3  ;;  %v343_v22 = vor.u32 %v342_v14, %v339_v13  ;;  %v353_v28 = vor.u32 %v352_v19, %v348_v18  ;;  %v531_v30 = vrot.slane %v529_v21, 4  ;;  %v548_v31 = vshll.u32 %v325_v16, 16  ;;  %v7206_v40 = vld [vmem:[%s7164_s28 + $0x14] sm:$0x1]  ;;  %v287_v47 = vld [vmem:[%s7164_s28 + $0x6c] sm:$0xf] }
  0x18   : > { %v534_v35 = vrot.slane %v532_v23, 5  ;;  %v540_v36 = vrot.slane %v538_v24, 5  ;;  %v544_v37 = vrot.slane %v542_v25, 4  ;;  %v361_v41 = vshrl.u32 %v7191_v26, 16  ;;  %v288_v52 = vld [vmem:[%s7164_s28 + $0x70] sm:$0xf] }
  0x19   : > { %v344_v34 = vrot.slane %v343_v22, 4  ;;  %v354_v38 = vrot.slane %v353_v28, 4  ;;  %v550_v39 = vrot.slane %v548_v31, 5  ;;  %v364_v42 = vshll.u32 %v7191_v26, 16  ;;  %v326_v57 = vld [vmem:[%s7164_s28 + $0x74] sm:$0x1] }
  0x1a   : > { %6487 = vmatpush3.bf16.msra.mxu0 %v6956_v3  ;;  %6923 = vmatpush3.bf16.msra.mxu1 %v6956_v3  ;;  %v535_v44 = vor.u32 %v534_v35, %v531_v30  ;;  %v545_v45 = vor.u32 %v544_v37, %v540_v36  ;;  %v370_v46 = vshll.u32 %v7200_v32, 16  ;;  %v363_v49 = vrot.slane %v361_v41, 4  ;;  %v7229_v14 = vld [vmem:[%s7164_s28 + $0x18] sm:$0xf]  ;;  %v6960_v15 = vld [vmem:[%s9807_s1 + $0x40] sm:$0xff]  }
  0x1b   : > { %6488 = vmatprep.subr.bf16.mxu0 %v6957_v17  ;;  %6916 = vmatprep.subr.bf16.mxu1 %v6957_v17  ;;  %v349_v43 = vsel %vm7195_vm2, %v344_v34, %v348_v18  ;;  %v359_v48 = vsel %vm7195_vm2, %v354_v38, %v358_v29  ;;  %v366_v50 = vrot.slane %v364_v42, 5  ;;  %v374_v51 = vshrl.u32 %v7200_v32, 16  ;;  %v7237_v19 = vld [vmem:[%s7164_s28 + $0x1c] sm:$0xf]  ;;  %v7242_v25 = vld [vmem:[%s7164_s28 + $0x20] sm:$0x1] }
  0x1c   : > { %v5534_v53 = vcombine.low %v349_v43, %v359_v48  ;;  %v536_v54 = vrot.slane %v535_v44, 4  ;;  %v546_v55 = vrot.slane %v545_v45, 4  ;;  %v372_v56 = vrot.slane %v370_v46, 5  ;;  %v289_v34 = vld [vmem:[%s7164_s28 + $0x78] sm:$0xf] }
  0x1d   : > { %v367_v59 = vor.u32 %v366_v50, %v363_v49  ;;  %v376_v60 = vrot.slane %v374_v51, 4  ;;  %v380_v61 = vshll.u32 %v7206_v40, 16  ;;  %v553_v1 = vshrl.u32 %v287_v47, 16  ;;  %v6961_v41 = vld [vmem:[%s9807_s1 + $0x38] sm:$0xff]   ;;  %v327_v49 = vld [vmem:[%s7164_s28 + $0x80] sm:$0x1] }
  0x1e   : > { %6489 = vmatpush3.bf16.msra.mxu0 %v6957_v17  ;;  %6924 = vmatpush3.bf16.msra.mxu1 %v6957_v17  ;;  %v541_v63 = vsel %vm7195_vm2, %v536_v54, %v540_v36  ;;  %v551_v0 = vsel %vm7195_vm2, %v546_v55, %v550_v39  ;;  %v556_v2 = vshll.u32 %v287_v47, 16  ;;  %v562_v12 = vshll.u32 %v288_v52, 16  ;;  %v7251_v39 = vld [vmem:[%s7164_s28 + $0x7c] sm:$0xf] }
  0x1f   : > { %6490 = vmatprep.subr.bf16.mxu0 %v6958_v33  ;;  %6917 = vmatprep.subr.bf16.mxu1 %v6958_v33  ;;  %v5542_v3 = vcombine.low %v541_v63, %v551_v0  ;;  %v368_v7 = vrot.slane %v367_v59, 4  ;;  %v377_v8 = vor.u32 %v376_v60, %v372_v56  ;;  %v382_v9 = vrot.slane %v380_v61, 5  ;;  %v6962_v42 = vld [vmem:[%s9807_s1 + $0xb8] sm:$0xff]   ;;  %v6964_v59 = vld [vmem:[%s9807_s1 + $0xb0] sm:$0xff]   ;;  %v7278_v0 = vld [vmem:[%s7164_s28 + $0x28] sm:$0xf] }
  0x20   : > { %6496 = vmatprep.mubr.bf16.mxu0 %v5534_v53  ;;  %v555_v10 = vrot.slane %v553_v1, 4  ;;  %v558_v11 = vrot.slane %v556_v2, 5  ;;  %v566_v13 = vshrl.u32 %v288_v52, 16  ;;  %v572_v18 = vshll.u32 %v326_v57, 16  ;;  %v6963_v52 = vld [vmem:[%s9807_s1 + $0x30] sm:$0xff]  }
  0x21   : > { %v373_v16 = vsel %vm7195_vm2, %v368_v7, %v372_v56  ;;  %v378_v17 = vrot.slane %v377_v8, 4  ;;  %6512 = vmatprep.mubr.bf16.mxu1 %v5542_v3  ;;  %v564_v23 = vrot.slane %v562_v12, 5  ;;  %v385_v28 = vshrl.u32 %v7229_v14, 16  ;;  %v7269_v57 = vld [vmem:[%s7164_s28 + $0x24] sm:$0xf] }
  0x22   : > { %6491 = vmatpush3.bf16.msra.mxu0 %v6958_v33  ;;  %6925 = vmatpush3.bf16.msra.mxu1 %v6958_v33  ;;  %v559_v22 = vor.u32 %v558_v11, %v555_v10  ;;  %v568_v24 = vrot.slane %v566_v13, 4  ;;  %v574_v30 = vrot.slane %v572_v18, 5  ;;  %v388_v31 = vshll.u32 %v7229_v14, 16  ;;  %v7281_v8 = vld [vmem:[%s7164_s28 + $0x2c] sm:$0x1] }
  0x23   : > { %6492 = vmatprep.subr.bf16.mxu0 %v6959_v58  ;;  %6918 = vmatprep.subr.bf16.mxu1 %v6959_v58  ;;  %v383_v29 = vsel %vm7195_vm2, %v378_v17, %v382_v9  ;;  %v394_v33 = vshll.u32 %v7237_v19, 16  ;;  %v387_v38 = vrot.slane %v385_v28, 4  ;;  %v398_v45 = vshrl.u32 %v7237_v19, 16  ;;  %v7285_v13 = vld [vmem:[%s7164_s28 + $0x84] sm:$0xf] }
  0x24   : > { %v5535_v35 = vcombine.low %v373_v16, %v383_v29  ;;  %v560_v36 = vrot.slane %v559_v22, 4  ;;  %v569_v37 = vor.u32 %v568_v24, %v564_v23  ;;  %v390_v43 = vrot.slane %v388_v31, 5  ;;  %v7292_v22 = vld [vmem:[%s7164_s28 + $0x88] sm:$0xf] }
  0x25   : > { %v396_v44 = vrot.slane %v394_v33, 5  ;;  %v404_v46 = vshll.u32 %v7242_v25, 16  ;;  %v577_v50 = vshrl.u32 %v289_v34, 16  ;;  %v580_v51 = vshll.u32 %v289_v34, 16 }
  0x26   : > { %6493 = vmatpush3.bf16.msra.mxu0 %v6959_v58  ;;  %6926 = vmatpush3.bf16.msra.mxu1 %v6959_v58  ;;  %v565_v47 = vsel %vm7195_vm2, %v560_v36, %v564_v23  ;;  %v570_v48 = vrot.slane %v569_v37, 4  ;;  %v391_v53 = vor.u32 %v390_v43, %v387_v38  ;;  %v400_v54 = vrot.slane %v398_v45, 4  ;;  %v7301_v36 = vld [vmem:[%s7164_s28 + $0x8c] sm:$0x1] }
  0x27   : > { %6494 = vmatprep.subr.bf16.mxu0 %v6960_v15  ;;  %6919 = vmatprep.subr.bf16.mxu1 %v6960_v15  ;;  %v406_v55 = vrot.slane %v404_v46, 5  ;;  %v586_v56 = vshll.u32 %v7251_v39, 16  ;;  %v579_v60 = vrot.slane %v577_v50, 4  ;;  %v582_v61 = vrot.slane %v580_v51, 5  ;;  %v6966_v37 = vld [vmem:[%s9807_s1 + $0xa8] sm:$0xff]  }
  0x28   : > { %v575_v58 = vsel %vm7195_vm2, %v570_v48, %v574_v30  ;;  %v590_v63 = vshrl.u32 %v7251_v39, 16  ;;  %v392_v2 = vrot.slane %v391_v53, 4  ;;  %v401_v3 = vor.u32 %v400_v54, %v396_v44  ;;  %v6965_v30 = vld [vmem:[%s9807_s1 + $0x28] sm:$0xff]   ;;  %v7316_v53 = vld [vmem:[%s7164_s28 + $0x30] sm:$0xf] }
  0x29   : > { %v5543_v1 = vcombine.low %v565_v47, %v575_v58  ;;  %v588_v7 = vrot.slane %v586_v56, 5  ;;  %v583_v9 = vor.u32 %v582_v61, %v579_v60  ;;  %v596_v11 = vshll.u32 %v327_v49, 16  ;;  %v7325_v60 = vld [vmem:[%s7164_s28 + $0x34] sm:$0xf] }
  0x2a   : > { %6495 = vmatpush3.bf16.msra.mxu0 %v6960_v15  ;;  %6927 = vmatpush3.bf16.msra.mxu1 %v6960_v15  ;;  %v592_v10 = vrot.slane %v590_v63, 4  ;;  %v409_v12 = vshrl.u32 %v7269_v57, 16  ;;  %v397_v15 = vsel %vm7195_vm2, %v392_v2, %v396_v44  ;;  %v402_v16 = vrot.slane %v401_v3, 4 }
  0x2b   : > { %6528 = vmatprep.subr.bf16.mxu1 %v6961_v41  ;;  %6576 = vmatprep.subr.bf16.mxu0 %v6962_v42  ;;  %v412_v17 = vshll.u32 %v7269_v57, 16  ;;  %v418_v18 = vshll.u32 %v7278_v0, 16  ;;  %v584_v23 = vrot.slane %v583_v9, 4  ;;  %v598_v28 = vrot.slane %v596_v11, 5 }
  0x2c   : > { %v593_v24 = vor.u32 %v592_v10, %v588_v7  ;;  %v411_v29 = vrot.slane %v409_v12, 4  ;;  %v407_v31 = vsel %vm7195_vm2, %v402_v16, %v406_v55  ;;  %v428_v43 = vshll.u32 %v7281_v8, 16  ;;  %v7333_v16 = vld [vmem:[%s7164_s28 + $0x38] sm:$0x1] }
  0x2d   : > { %6497 = vmatmul.mubr.bf16.vlgmr.msra.gmra.mxu0 %v5535_v35  ;;  %6513 = vmatmul.mubr.bf16.vlgmr.msra.gmra.mxu1 %v5543_v1  ;;  %v414_v33 = vrot.slane %v412_v17, 5  ;;  %v420_v34 = vrot.slane %v418_v18, 5  ;;  %v422_v35 = vshrl.u32 %v7278_v0, 16  ;;  %v5536_v38 = vcombine.low %v397_v15, %v407_v31  ;;  %v7337_v18 = vld [vmem:[%s7164_s28 + $0x90] sm:$0xf] }
  0x2e   : > { %6529 = vmatpush3.bf16.msra.mxu1 %v6961_v41  ;;  %6577 = vmatpush3.bf16.msra.mxu0 %v6962_v42  ;;  %v589_v41 = vsel %vm7195_vm2, %v584_v23, %v588_v7  ;;  %v594_v42 = vrot.slane %v593_v24, 4  ;;  %v601_v46 = vshrl.u32 %v7285_v13, 16  ;;  %v604_v47 = vshll.u32 %v7285_v13, 16  ;;  %v7343_v31 = vld [vmem:[%s7164_s28 + $0x94] sm:$0xf] }
  0x2f   : > { %6530 = vmatprep.subr.bf16.mxu1 %v6963_v52  ;;  %6578 = vmatprep.subr.bf16.mxu0 %v6964_v59  ;;  %v415_v44 = vor.u32 %v414_v33, %v411_v29  ;;  %v424_v45 = vrot.slane %v422_v35, 4  ;;  %v430_v49 = vrot.slane %v428_v43, 5  ;;  %v610_v50 = vshll.u32 %v7292_v22, 16 }
  0x30   : > { %v599_v48 = vsel %vm7195_vm2, %v594_v42, %v598_v28  ;;  %v614_v51 = vshrl.u32 %v7292_v22, 16  ;;  %6500 = vmatprep.mubr.bf16.mxu0 %v5536_v38  ;;  %v603_v58 = vrot.slane %v601_v46, 4  ;;  %v606_v61 = vrot.slane %v604_v47, 5  ;;  %v6970_v38 = vld [vmem:[%s9807_s1 + $0x98] sm:$0xff]   ;;  %v6971_v46 = vld [vmem:[%s9807_s1 + $0x10] sm:$0xff]  }
  0x31   : > { %v5544_v54 = vcombine.low %v589_v41, %v599_v48  ;;  %v416_v55 = vrot.slane %v415_v44, 4  ;;  %v425_v56 = vor.u32 %v424_v45, %v420_v34  ;;  %v612_v63 = vrot.slane %v610_v50, 5  ;;  %v7353_v44 = vld [vmem:[%s7164_s28 + $0x98] sm:$0x1] }
  0x32   : > { %6531 = vmatpush3.bf16.msra.mxu1 %v6963_v52  ;;  %6579 = vmatpush3.bf16.msra.mxu0 %v6964_v59  ;;  %v6967_v52 = vld [vmem:[%s9807_s1 + $0x20] sm:$0xff]   ;;  %v616_v1 = vrot.slane %v614_v51, 4  ;;  %v620_v2 = vshll.u32 %v7301_v36, 16  ;;  %v433_v9 = vshrl.u32 %v7316_v53, 16  ;;  %v436_v10 = vshll.u32 %v7316_v53, 16 }
  0x33   : > { %6532 = vmatprep.subr.bf16.mxu1 %v6965_v30  ;;  %v6968_v59 = vld [vmem:[%s9807_s1 + $0xa0] sm:$0xff]   ;;  %6580 = vmatprep.subr.bf16.mxu0 %v6966_v37  ;;  %v421_v3 = vsel %vm7195_vm2, %v416_v55, %v420_v34  ;;  %v426_v7 = vrot.slane %v425_v56, 4  ;;  %v607_v11 = vor.u32 %v606_v61, %v603_v58  ;;  %v442_v17 = vshll.u32 %v7325_v60, 16  ;;  %v7366_v51 = vld [vmem:[%s7164_s28 + $0x3c] sm:$0xf]  ;;  %v6972_v55 = vld [vmem:[%s9807_s1 + $0x90] sm:$0xff]  }
  0x34   : > { %6516 = vmatprep.mubr.bf16.mxu1 %v5544_v54  ;;  %v617_v12 = vor.u32 %v616_v1, %v612_v63  ;;  %v622_v15 = vrot.slane %v620_v2, 5  ;;  %v435_v24 = vrot.slane %v433_v9, 4  ;;  %v438_v28 = vrot.slane %v436_v10, 5  ;;  %v7369_v54 = vld [vmem:[%s7164_s28 + $0x40] sm:$0xf] }
  0x35   : > { %v431_v23 = vsel %vm7195_vm2, %v426_v7, %v430_v49  ;;  %v446_v29 = vshrl.u32 %v7325_v60, 16  ;;  %v608_v34 = vrot.slane %v607_v11, 4  ;;  %v452_v43 = vshll.u32 %v7333_v16, 16  ;;  %v7376_v7 = vld [vmem:[%s7164_s28 + $0x44] sm:$0x1] }
  0x36   : > { %6533 = vmatpush3.bf16.msra.mxu1 %v6965_v30  ;;  %6581 = vmatpush3.bf16.msra.mxu0 %v6966_v37  ;;  %v6969_v30 = vld [vmem:[%s9807_s1 + $0x18] sm:$0xff]   ;;  %v5537_v33 = vcombine.low %v421_v3, %v431_v23  ;;  %v618_v35 = vrot.slane %v617_v12, 4  ;;  %v444_v37 = vrot.slane %v442_v17, 5  ;;  %v439_v41 = vor.u32 %v438_v28, %v435_v24  ;;  %v7388_v28 = vld [vmem:[%s7164_s28 + $0xa0] sm:$0xf] }
  0x37   : > { %6534 = vmatprep.subr.bf16.mxu1 %v6967_v52  ;;  %6582 = vmatprep.subr.bf16.mxu0 %v6968_v59  ;;  %v448_v42 = vrot.slane %v446_v29, 4  ;;  %v625_v45 = vshrl.u32 %v7337_v18, 16  ;;  %v613_v47 = vsel %vm7195_vm2, %v608_v34, %v612_v63  ;;  %v628_v49 = vshll.u32 %v7337_v18, 16  ;;  %v7379_v9 = vld [vmem:[%s7164_s28 + $0x9c] sm:$0xf]  ;;  %v6973_v29 = vld [vmem:[%s9807_s1 + $0x8] sm:$0xff]  }
  0x38   : > { %6501 = vmatmul.mubr.bf16.gmra.mxu0 %v5537_v33  ;;  %v623_v48 = vsel %vm7195_vm2, %v618_v35, %v622_v15  ;;  %v634_v50 = vshll.u32 %v7343_v31, 16  ;;  %v440_v58 = vrot.slane %v439_v41, 4  ;;  %v454_v63 = vrot.slane %v452_v43, 5  ;;  %v6974_v41 = vld [vmem:[%s9807_s1 + $0x88] sm:$0xff]  }
  0x39   : > { %v5545_v56 = vcombine.low %v613_v47, %v623_v48  ;;  %v449_v61 = vor.u32 %v448_v42, %v444_v37  ;;  %v630_v1 = vrot.slane %v628_v49, 5  ;;  %v638_v3 = vshrl.u32 %v7343_v31, 16 }
  0x3a   : > { %6535 = vmatpush3.bf16.msra.mxu1 %v6967_v52  ;;  %6583 = vmatpush3.bf16.msra.mxu0 %v6968_v59  ;;  %v627_v52 = vrot.slane %v625_v45, 4  ;;  %v636_v2 = vrot.slane %v634_v50, 5  ;;  %v445_v10 = vsel %vm7195_vm2, %v440_v58, %v444_v37  ;;  %v644_v11 = vshll.u32 %v7353_v44, 16 }
  0x3b   : > { %6536 = vmatprep.subr.bf16.mxu1 %v6969_v30  ;;  %6584 = vmatprep.subr.bf16.mxu0 %v6970_v38  ;;  %v450_v59 = vrot.slane %v449_v61, 4  ;;  %v457_v12 = vshrl.u32 %v7366_v51, 16  ;;  %v640_v17 = vrot.slane %v638_v3, 4  ;;  %v460_v23 = vshll.u32 %v7366_v51, 16  ;;  %v7404_v61 = vld [vmem:[%s7164_s28 + $0xa4] sm:$0x1] }
  0x3c   : > { %6517 = vmatmul.mubr.bf16.gmra.mxu1 %v5545_v56  ;;  %v631_v15 = vor.u32 %v630_v1, %v627_v52  ;;  %v466_v24 = vshll.u32 %v7369_v54, 16  ;;  %v646_v34 = vrot.slane %v644_v11, 5  ;;  %v470_v37 = vshrl.u32 %v7369_v54, 16 }
  0x3d   : > { %v455_v33 = vsel %vm7195_vm2, %v450_v59, %v454_v63  ;;  %v459_v35 = vrot.slane %v457_v12, 4  ;;  %v641_v43 = vor.u32 %v640_v17, %v636_v2  ;;  %v462_v45 = vrot.slane %v460_v23, 5  ;;  %v7409_v59 = vld [vmem:[%s7164_s28 + $0x48] sm:$0xf]  ;;  %v7418_v17 = vld [vmem:[%s7164_s28 + $0x4c] sm:$0xf] }
  0x3e   : > { %6537 = vmatpush3.bf16.msra.mxu1 %v6969_v30  ;;  %6585 = vmatpush3.bf16.msra.mxu0 %v6970_v38  ;;  %v5538_v42 = vcombine.low %v445_v10, %v455_v33  ;;  %v632_v30 = vrot.slane %v631_v15, 4  ;;  %v468_v47 = vrot.slane %v466_v24, 5  ;;  %v472_v48 = vrot.slane %v470_v37, 4 }
  0x3f   : > { %6538 = vmatprep.subr.bf16.mxu1 %v6971_v46  ;;  %6586 = vmatprep.subr.bf16.mxu0 %v6972_v55  ;;  %v476_v49 = vshll.u32 %v7376_v7, 16  ;;  %v649_v50 = vshrl.u32 %v7379_v9, 16  ;;  %v642_v56 = vrot.slane %v641_v43, 4  ;;  %v463_v58 = vor.u32 %v462_v45, %v459_v35 }
  0x40   : > { %6504 = vmatprep.mubr.bf16.mxu0 %v5538_v42  ;;  %v637_v38 = vsel %vm7195_vm2, %v632_v30, %v636_v2  ;;  %v652_v63 = vshll.u32 %v7379_v9, 16  ;;  %v473_v52 = vor.u32 %v472_v48, %v468_v47  ;;  %v658_v10 = vshll.u32 %v7388_v28, 16  ;;  %v6975_v2 = vld [vmem:[%s9807_s1] sm:$0xff]   ;;  %v7427_v30 = vld [vmem:[%s7164_s28 + $0x50] sm:$0x1] }
  0x41   : > { %v478_v1 = vrot.slane %v476_v49, 5  ;;  %v651_v3 = vrot.slane %v649_v50, 4  ;;  %v647_v11 = vsel %vm7195_vm2, %v642_v56, %v646_v34  ;;  %v464_v12 = vrot.slane %v463_v58, 4 }
  0x42   : > { %6539 = vmatpush3.bf16.msra.mxu1 %v6971_v46  ;;  %6587 = vmatpush3.bf16.msra.mxu0 %v6972_v55  ;;  %v654_v15 = vrot.slane %v652_v63, 5  ;;  %v662_v46 = vshrl.u32 %v7388_v28, 16  ;;  %v6976_v55 = vld [vmem:[%s9807_s1 + $0x80] sm:$0xff]   ;;  %v5546_v23 = vcombine.low %v637_v38, %v647_v11  ;;  %v474_v24 = vrot.slane %v473_v52, 4  ;;  %v7435_v38 = vld [vmem:[%s7164_s28 + $0xa8] sm:$0xf] }
  0x43   : > { %6540 = vmatprep.subr.bf16.mxu1 %v6973_v29  ;;  %6588 = vmatprep.subr.bf16.mxu0 %v6974_v41  ;;  %v660_v33 = vrot.slane %v658_v10, 5  ;;  %v668_v35 = vshll.u32 %v7404_v61, 16  ;;  %v469_v34 = vsel %vm7195_vm2, %v464_v12, %v468_v47  ;;  %v481_v43 = vshrl.u32 %v7409_v59, 16  ;;  %9837 = vst [vmem:[#allocation2_spill] sm:$0xff] %v7435_v38  ;;  %v7440_v47 = vld [vmem:[%s9807_s1 + $0xf8] sm:$0xff]  }
  0x44   : > { %v655_v37 = vor.u32 %v654_v15, %v651_v3  ;;  %v664_v42 = vrot.slane %v662_v46, 4  ;;  %6520 = vmatprep.mubr.bf16.mxu1 %v5546_v23  ;;  %v479_v45 = vsel %vm7195_vm2, %v474_v24, %v478_v1  ;;  %v484_v49 = vshll.u32 %v7409_v59, 16  ;;  %v7443_v52 = vld [vmem:[%s7164_s28 + $0xac] sm:$0xf]  ;;  %v7448_v1 = vld [vmem:[%s9807_s1 + $0x138] sm:$0xff]  }
  0x45   : > { %v670_v48 = vrot.slane %v668_v35, 5  ;;  %v490_v50 = vshll.u32 %v7418_v17, 16  ;;  %v483_v63 = vrot.slane %v481_v43, 4  ;;  %v494_v10 = vshrl.u32 %v7418_v17, 16  ;;  %v7453_v12 = vld [vmem:[%s7164_s28 + $0xb0] sm:$0x1] }
  0x46   : > { %6541 = vmatpush3.bf16.msra.mxu1 %v6973_v29  ;;  %6589 = vmatpush3.bf16.msra.mxu0 %v6974_v41  ;;  %v5539_v29 = vcombine.low %v469_v34, %v479_v45  ;;  %v656_v56 = vrot.slane %v655_v37, 4  ;;  %v665_v58 = vor.u32 %v664_v42, %v660_v33  ;;  %v486_v41 = vrot.slane %v484_v49, 5  ;;  %9838 = vst [vmem:[#allocation3_spill] sm:$0xff] %v7453_v12  ;;  %v7456_v15 = vld [vmem:[%s7164_s28 + $0x54] sm:$0xf] }
  0x47   : > { %6542 = vmatprep.subr.bf16.mxu1 %v6975_v2  ;;  %6590 = vmatprep.subr.bf16.mxu0 %v6976_v55  ;;  %v492_v3 = vrot.slane %v490_v50, 5  ;;  %v500_v11 = vshll.u32 %v7427_v30, 16  ;;  %v673_v24 = vshrl.u32 %v7435_v38, 16  ;;  %v676_v35 = vshll.u32 %v7435_v38, 16  ;;  %v7463_v34 = vld [vmem:[%s7164_s28 + $0x58] sm:$0xf] }
  0x48   : > { %6505 = vmatmul.mubr.bf16.gmra.mxu0 %v5539_v29  ;;  %v661_v46 = vsel %vm7195_vm2, %v656_v56, %v660_v33  ;;  %v666_v23 = vrot.slane %v665_v58, 4  ;;  %v487_v37 = vor.u32 %v486_v41, %v483_v63  ;;  %v496_v42 = vrot.slane %v494_v10, 4 }
  0x49   : > { %v502_v43 = vrot.slane %v500_v11, 5  ;;  %v682_v45 = vshll.u32 %v7443_v52, 16  ;;  %v675_v49 = vrot.slane %v673_v24, 4  ;;  %v678_v50 = vrot.slane %v676_v35, 5 }
  0x4a   : > { %6543 = vmatpush3.bf16.msra.mxu1 %v6975_v2  ;;  %6591 = vmatpush3.bf16.msra.mxu0 %v6976_v55  ;;  %v671_v33 = vsel %vm7195_vm2, %v666_v23, %v670_v48  ;;  %v686_v29 = vshrl.u32 %v7443_v52, 16  ;;  %v488_v56 = vrot.slane %v487_v37, 4  ;;  %v497_v58 = vor.u32 %v496_v42, %v492_v3  ;;  %v7472_v55 = vld [vmem:[%s7164_s28 + $0x5c] sm:$0x1]  ;;  %v7477_v48 = vld [vmem:[%s7164_s28 + $0xb4] sm:$0xf] }
  0x4b   : > { %6624 = vmatprep.subr.bf16.mxu1 %v7440_v47  ;;  %6672 = vmatprep.subr.bf16.mxu0 %v7448_v1  ;;  %v5547_v2 = vcombine.low %v661_v46, %v671_v33  ;;  %v684_v63 = vrot.slane %v682_v45, 5  ;;  %v679_v41 = vor.u32 %v678_v50, %v675_v49  ;;  %v692_v11 = vshll.u32 %v7453_v12, 16  ;;  %9839 = vst [vmem:[#allocation4_spill] sm:$0xff] %v7477_v48  ;;  %v7484_v37 = vld [vmem:[%s7164_s28 + $0xb8] sm:$0xf] }
  0x4c   : > { %v688_v10 = vrot.slane %v686_v29, 4  ;;  %v505_v21 = vshrl.u32 %v7456_v15, 16  ;;  %v493_v23 = vsel %vm7195_vm2, %v488_v56, %v492_v3  ;;  %v498_v24 = vrot.slane %v497_v58, 4  ;;  %9840 = vst [vmem:[#allocation5_spill] sm:$0xff] %v7484_v37  ;;  %v7490_v3 = vld [vmem:[%s7164_s28 + $0xbc] sm:$0x1] }
  0x4d   : > { %6521 = vmatmul.mubr.bf16.gmra.mxu1 %v5547_v2  ;;  %v508_v46 = vshll.u32 %v7456_v15, 16  ;;  %v514_v35 = vshll.u32 %v7463_v34, 16  ;;  %v680_v42 = vrot.slane %v679_v41, 4  ;;  %v694_v33 = vrot.slane %v692_v11, 5  ;;  %9841 = vst [vmem:[#allocation6_spill] sm:$0xff] %v7490_v3 }
  0x4e   : > { %v689_v45 = vor.u32 %v688_v10, %v684_v63  ;;  %v507_v49 = vrot.slane %v505_v21, 4  ;;  %v503_v50 = vsel %vm7195_vm2, %v498_v24, %v502_v43  ;;  %v518_v62 = vshrl.u32 %v7463_v34, 16  ;;  %v1315_v10 = vld [vmem:[%s7164_s28] sm:$0xe] }
  0x4f   : > { %v510_v29 = vrot.slane %v508_v46, 5  ;;  %v516_v2 = vrot.slane %v514_v35, 5  ;;  %v5540_v56 = vcombine.low %v493_v23, %v503_v50  ;;  %v685_v58 = vsel %vm7195_vm2, %v680_v42, %v684_v63 }
  0x50   : > { %v690_v20 = vrot.slane %v689_v45, 4  ;;  %v524_v41 = vshll.u32 %v7472_v55, 16  ;;  %v520_v21 = vrot.slane %v518_v62, 4  ;;  %v697_v12 = vshrl.u32 %v7477_v48, 16 }
  0x51   : > { %v511_v11 = vor.u32 %v510_v29, %v507_v49  ;;  %v700_v43 = vshll.u32 %v7477_v48, 16  ;;  %6508 = vmatprep.mubr.bf16.mxu0 %v5540_v56  ;;  %v706_v46 = vshll.u32 %v7484_v37, 16  ;;  %v710_v63 = vshrl.u32 %v7484_v37, 16  ;;  %v1316_v49 = vld [vmem:[%s7164_s28 + $0xc] sm:$0xe] }
  0x52   : > { %v695_v24 = vsel %vm7195_vm2, %v690_v20, %v694_v33  ;;  %v526_v23 = vrot.slane %v524_v41, 5  ;;  %v521_v45 = vor.u32 %v520_v21, %v516_v2  ;;  %v699_v50 = vrot.slane %v697_v12, 4  ;;  %v1317_v20 = vld [vmem:[%s7164_s28 + $0x18] sm:$0xe] }
  0x53   : > { %v5548_v35 = vcombine.low %v685_v58, %v695_v24  ;;  %v512_v42 = vrot.slane %v511_v11, 4  ;;  %v702_v62 = vrot.slane %v700_v43, 5  ;;  %v708_v29 = vrot.slane %v706_v46, 5 }
  0x54   : > { %v712_v38 = vrot.slane %v710_v63, 4  ;;  %v716_v48 = vshll.u32 %v7490_v3, 16  ;;  %v522_v58 = vrot.slane %v521_v45, 4  ;;  %v5582_v41 = vrot.slane %v1315_v10, 9 }
  0x55   : > { %6524 = vmatprep.mubr.bf16.mxu1 %v5548_v35  ;;  %v517_v33 = vsel %vm7195_vm2, %v512_v42, %v516_v2  ;;  %v1368_v12 = vrot.slane %v7173_v5, 5  ;;  %v703_v11 = vor.u32 %v702_v62, %v699_v50  ;;  %v5583_v24 = vrot.slane %v1316_v49, 9 }
  0x56   : > { %v713_v21 = vor.u32 %v712_v38, %v708_v29  ;;  %v718_v43 = vrot.slane %v716_v48, 5  ;;  %v527_v46 = vsel %vm7195_vm2, %v522_v58, %v526_v23  ;;  %v1375_v35 = vrot.slane %v7200_v32, 5 }
  0x57   : > { %v1369_v63 = vsel %vm7506_vm5, %v5582_v41, %v1368_v12  ;;  %v1370_v3 = vrot.slane %v1368_v12, 4  ;;  %v5541_v37 = vcombine.low %v517_v33, %v527_v46  ;;  %v704_v2 = vrot.slane %v703_v11, 4  ;;  %v1319_v12 = vld [vmem:[%s7164_s28 + $0x30] sm:$0xe]  ;;  %v1321_v46 = vld [vmem:[%s7164_s28 + $0x48] sm:$0xe] }
  0x58   : > { %v714_v42 = vrot.slane %v713_v21, 4  ;;  %v5558_v10 = vcombine.low %v7170_v4, %v7173_v5  ;;  %v9844_v38 = vrot.slane %v7176_v6, 5  ;;  %v1377_v45 = vrot.slane %v1375_v35, 4 }
  0x59   : > { %v5584_v23 = vrot.slane %v1317_v20, 9  ;;  %6509 = vmatmul.mubr.bf16.gmra.mxu0 %v5541_v37  ;;  %v709_v50 = vsel %vm7195_vm2, %v704_v2, %v708_v29  ;;  %v1382_v33 = vrot.slane %v7237_v19, 5  ;;  %v1376_v4 = vsel %vm7506_vm5, %v5583_v24, %v1375_v35  ;;  %v1320_v24 = vld [vmem:[%s7164_s28 + $0x3c] sm:$0xe] }
  0x5a   : > { %v1372_v48 = vsel %vm7506_vm5, %v1370_v3, %v9844_v38  ;;  %v719_v49 = vsel %vm7195_vm2, %v714_v42, %v718_v43  ;;  %v9845_v5 = vrot.slane %v7206_v40, 5  ;;  %v1385_v37 = vrot.slane %v7242_v25, 5  ;;  %v1318_v3 = vld [vmem:[%s7164_s28 + $0x24] sm:$0xe]  ;;  %v6984_v25 = vld [vmem:[%s9807_s1 + $0x130] sm:$0xff]  }
  0x5b   : > { %v5614_v62 = vcombine.low %v1369_v63, %v1372_v48  ;;  %v5549_v58 = vcombine.low %v709_v50, %v719_v49  ;;  %v1383_v29 = vsel %vm7506_vm5, %v5584_v23, %v1382_v33  ;;  %v1384_v20 = vrot.slane %v1382_v33, 4  ;;  %v6983_v23 = vld [vmem:[%s9807_s1 + $0xf0] sm:$0xff]  }
  0x5c   : > { %v1379_v6 = vsel %vm7506_vm5, %v1377_v45, %v9845_v5  ;;  %v1389_v41 = vrot.slane %v7278_v0, 5  ;;  %v5585_v21 = vrot.slane %v1318_v3, 9  ;;  %v1396_v43 = vrot.slane %v7325_v60, 5  ;;  %v7581_v3 = vld [vmem:[%s7164_s28 + $0x68] sm:$0x1] }
  0x5d   : > { %6592 = vmatprep.mubr.bf16.mxu0 %v5614_v62  ;;  %6525 = vmatmul.mubr.bf16.gmra.mxu1 %v5549_v58  ;;  %v5615_v11 = vcombine.low %v1376_v4, %v1379_v6  ;;  %v1386_v40 = vsel %vm7506_vm5, %v1384_v20, %v1385_v37  ;;  %v1392_v2 = vrot.slane %v7281_v8, 5  ;;  %v5586_v42 = vrot.slane %v1319_v12, 9  ;;  %v1322_v37 = vld [vmem:[%s7164_s28 + $0x54] sm:$0xe]  ;;  %v7605_v12 = vld [vmem:[%s7164_s28 + $0x60] sm:$0xe] }
  0x5e   : > { %6544 = vmatprep.mubr.bf16.mxu1 %v5558_v10  ;;  %v5616_v63 = vcombine.low %v1383_v29, %v1386_v40  ;;  %v1391_v35 = vrot.slane %v1389_v41, 4  ;;  %v1398_v38 = vrot.slane %v1396_v43, 4  ;;  %v1399_v10 = vrot.slane %v7333_v16, 5 }
  0x5f   : > { %v1403_v48 = vrot.slane %v7369_v54, 5  ;;  %v5560_v45 = vcombine.low %v7229_v14, %v7237_v19  ;;  %v1410_v50 = vrot.slane %v7418_v17, 5  ;;  %v5587_v49 = vrot.slane %v1320_v24, 9  ;;  %v6992_v24 = vld [vmem:[%s9807_s1 + $0x120] sm:$0xff]  }
  0x60   : > { %v1406_v8 = vrot.slane %v7376_v7, 5  ;;  %v5588_v33 = vrot.slane %v1321_v46, 9  ;;  %v1390_v14 = vsel %vm7506_vm5, %v5585_v21, %v1389_v41  ;;  %v1393_v19 = vsel %vm7506_vm5, %v1391_v35, %v1392_v2  ;;  %v7617_v46 = vld [vmem:[%s7164_s28 + $0x78] sm:$0xe]  ;;  %v6991_v2 = vld [vmem:[%s9807_s1 + $0xe0] sm:$0xff]  }
  0x61   : > { %6593 = vmatmul.mubr.bf16.vlgmr.msra.gmra.mxu0 %v5615_v11  ;;  %v1405_v62 = vrot.slane %v1403_v48, 4  ;;  %v1412_v16 = vrot.slane %v1410_v50, 4  ;;  %v1413_v58 = vrot.slane %v7427_v30, 5  ;;  %v1397_v4 = vsel %vm7506_vm5, %v5586_v42, %v1396_v43  ;;  %v7608_v11 = vld [vmem:[%s7164_s28 + $0x6c] sm:$0xe] }
  0x62   : > { %6673 = vmatpush3.bf16.msra.mxu0 %v7448_v1  ;;  %6596 = vmatprep.mubr.bf16.mxu0 %v5616_v63  ;;  %v1400_v7 = vsel %vm7506_vm5, %v1398_v38, %v1399_v10  ;;  %v6988_v1 = vld [vmem:[%s9807_s1 + $0x128] sm:$0xff]   ;;  %v1417_v5 = vrot.slane %v7463_v34, 5  ;;  %v9846_v6 = vcombine.low %v7191_v26, %v7200_v32  ;;  %v5561_v30 = vcombine.low %v7269_v57, %v7278_v0  ;;  %v1326_v63 = vld [vmem:[%s7164_s28 + $0x84] sm:$0xe]  ;;  %v1327_v42 = vld [vmem:[%s7164_s28 + $0x90] sm:$0xe] }
  0x63   : > { %6674 = vmatprep.subr.bf16.mxu0 %v6984_v25  ;;  %v1427_v29 = vrot.slane %v7581_v3, 5  ;;  %v5617_v20 = vcombine.low %v1390_v14, %v1393_v19  ;;  %v7587_v41 = vsel %vm7506_vm5, %v5587_v49, %v1403_v48  ;;  %v7591_v26 = vsel %vm7506_vm5, %v1405_v62, %v1406_v8  ;;  %v6987_v32 = vld [vmem:[%s9807_s1 + $0xe8] sm:$0xff]   ;;  %v7636_v48 = vld [vmem:[%s7164_s28 + $0x64] sm:$0xf]  ;;  %v1328_v49 = vld [vmem:[%s7164_s28 + $0x9c] sm:$0xe] }
  0x64   : > { %v5618_v57 = vcombine.low %v1397_v4, %v1400_v7  ;;  %v7598_v0 = vsel %vm7506_vm5, %v5588_v33, %v1410_v50  ;;  %v5562_v40 = vcombine.low %v7316_v53, %v7325_v60  ;;  %v5589_v21 = vrot.slane %v1322_v37, 9  ;;  %v7658_v4 = vld [vmem:[%s7164_s28 + $0x74] sm:$0x1] }
  0x65   : > { %6545 = vmatmul.mubr.bf16.vlgmr.msra.gmra.mxu1 %v9846_v6  ;;  %v1420_v43 = vrot.slane %v7472_v55, 5  ;;  %v5563_v35 = vcombine.low %v7366_v51, %v7369_v54  ;;  %v5619_v53 = vcombine.low %v7587_v41, %v7591_v26  ;;  %v5564_v60 = vcombine.low %v7409_v59, %v7418_v17  ;;  %v7077_v54 = vld [vmem:[%s7164_s28 + $0x80] sm:$0x1] }
  0x66   : > { %6625 = vmatpush3.bf16.msra.mxu1 %v7440_v47  ;;  %6548 = vmatprep.mubr.bf16.mxu1 %v5560_v45  ;;  %v7602_v47 = vsel %vm7506_vm5, %v1412_v16, %v1413_v58  ;;  %v5565_v55 = vcombine.low %v7456_v15, %v7463_v34  ;;  %v5590_v10 = vrot.slane %v7605_v12, 9  ;;  %v1424_v45 = vrot.slane %v7636_v48, 5  ;;  %v7654_v16 = vld [vmem:[%s7164_s28 + $0x70] sm:$0xf]  ;;  %v7078_v17 = vld [vmem:[%s7164_s28 + $0x60] sm:$0xf] }
  0x67   : > { %6626 = vmatprep.subr.bf16.mxu1 %v6983_v23  ;;  %6675 = vmatpush3.bf16.msra.mxu0 %v6984_v25  ;;  %v1419_v25 = vrot.slane %v1417_v5, 4  ;;  %v5620_v38 = vcombine.low %v7598_v0, %v7602_v47  ;;  %v5591_v62 = vrot.slane %v7608_v11, 9  ;;  %v1445_v8 = vrot.slane %v7292_v22, 5  ;;  %v1329_v0 = vld [vmem:[%s7164_s28 + $0xa8] sm:$0xe]  ;;  %v7838_v15 = vld [vmem:[%s9807_s1 + $0x1b8] sm:$0xff]  }
  0x68   : > { %6676 = vmatprep.subr.bf16.mxu0 %v6988_v1  ;;  %v1448_v33 = vrot.slane %v7301_v36, 5  ;;  %v7647_v14 = vsel %vm7506_vm5, %v5589_v21, %v1417_v5  ;;  %v1431_v58 = vrot.slane %v7654_v16, 5  ;;  %v1434_v7 = vrot.slane %v7658_v4, 5  ;;  %v6995_v36 = vld [vmem:[%s9807_s1 + $0xd8] sm:$0xff]  }
  0x69   : > { %6597 = vmatmul.mubr.bf16.gmra.mxu0 %v5617_v20  ;;  %v7651_v19 = vsel %vm7506_vm5, %v1419_v25, %v1420_v43  ;;  %v5592_v5 = vrot.slane %v7617_v46, 9  ;;  %v1447_v37 = vrot.slane %v1445_v8, 4  ;;  %v5594_v41 = vrot.slane %v1327_v42, 9  ;;  %v5710_v42 = vld [vmem:[%s7164_s28 + $0xc] sm:$0xf] }
  0x6a   : > { %6627 = vmatpush3.bf16.msra.mxu1 %v6983_v23  ;;  %6600 = vmatprep.mubr.bf16.mxu0 %v5618_v57  ;;  %v5593_v23 = vrot.slane %v1326_v63, 9  ;;  %v1452_v26 = vrot.slane %v7343_v31, 5  ;;  %v1455_v57 = vrot.slane %v7353_v44, 5  ;;  %v1438_v47 = vrot.slane %v7251_v39, 5 }
  0x6b   : > { %6628 = vmatprep.subr.bf16.mxu1 %v6987_v32  ;;  %6677 = vmatpush3.bf16.msra.mxu0 %v6988_v1  ;;  %v6996_v1 = vld [vmem:[%s9807_s1 + $0x118] sm:$0xff]   ;;  %v7682_v21 = vsel %vm7506_vm5, %v1447_v37, %v1448_v33  ;;  %v1459_v63 = vrot.slane %v7388_v28, 5  ;;  %v5596_v33 = vrot.slane %v1329_v0, 9  ;;  %v1466_v37 = vrot.slane %v7443_v52, 5  ;;  %v6999_v0 = vld [vmem:[%s9807_s1 + $0xd0] sm:$0xff]  }
  0x6c   : > { %6678 = vmatprep.subr.bf16.mxu0 %v6992_v24  ;;  %v7670_v6 = vsel %vm7506_vm5, %v5593_v23, %v1445_v8  ;;  %v7690_v44 = vsel %vm7506_vm5, %v5594_v41, %v1452_v26  ;;  %v1454_v43 = vrot.slane %v1452_v26, 4  ;;  %v7000_v23 = vld [vmem:[%s9807_s1 + $0x110] sm:$0xff]   ;;  %v1462_v8 = vrot.slane %v7404_v61, 5  ;;  %v9848_v61 = vld [vmem:[#allocation3_spill] sm:$0xff] }
  0x6d   : > { %6549 = vmatmul.mubr.bf16.gmra.mxu1 %v5561_v30  ;;  %v1426_v30 = vrot.slane %v1424_v45, 4  ;;  %v1461_v20 = vrot.slane %v1459_v63, 4  ;;  %v1469_v50 = vrot.slane %v9848_v61, 5  ;;  %v1425_v61 = vsel %vm7506_vm5, %v5590_v10, %v1424_v45  ;;  %v5713_v45 = vld [vmem:[%s7164_s28 + $0x18] sm:$0xf] }
  0x6e   : > { %6552 = vmatprep.mubr.bf16.mxu1 %v5562_v40  ;;  %6629 = vmatpush3.bf16.msra.mxu1 %v6987_v32  ;;  %v5595_v40 = vrot.slane %v1328_v49, 9  ;;  %v7702_v32 = vld [vmem:[%s7164_s28 + $0x10] sm:$0xf]  ;;  %v7706_v41 = vsel %vm7506_vm5, %v1454_v43, %v1455_v57  ;;  %v1468_v57 = vrot.slane %v1466_v37, 4  ;;  %v2236_v12 = vshrl.u32 %v5710_v42, 16 }
  0x6f   : > { %6630 = vmatprep.subr.bf16.mxu1 %v6991_v2  ;;  %6679 = vmatpush3.bf16.msra.mxu0 %v6992_v24  ;;  %v9847_v24 = vld [vmem:[#allocation2_spill] sm:$0xff]  ;;  %v9850_v43 = vld [vmem:[#allocation4_spill] sm:$0xff]  ;;  %v2239_v10 = vshll.u32 %v5710_v42, 16  ;;  %v1433_v51 = vrot.slane %v1431_v58, 4  ;;  %v2245_v59 = vshll.u32 %v7702_v32, 16  ;;  %v1439_v4 = vsel %vm7506_vm5, %v5592_v5, %v1438_v47 }
  0x70   : > { %6680 = vmatprep.subr.bf16.mxu0 %v6996_v1  ;;  %v7710_v26 = vsel %vm7506_vm5, %v5595_v40, %v1459_v63  ;;  %v9849_v40 = vld [vmem:[#allocation5_spill] sm:$0xff]  ;;  %v7776_v42 = vld [vmem:[%s7164_s28 + $0x14] sm:$0x1]  ;;  %v2238_v63 = vrot.slane %v2236_v12, 4  ;;  %v9852_v5 = vld [vmem:[#allocation6_spill] sm:$0xff] }
  0x71   : > { %6601 = vmatmul.mubr.bf16.gmra.mxu0 %v5619_v53  ;;  %v2241_v49 = vrot.slane %v2239_v10, 5  ;;  %v5716_v53 = vld [vmem:[%s7164_s28 + $0x24] sm:$0xf]  ;;  %v1435_v11 = vsel %vm7506_vm5, %v1433_v51, %v1434_v7 }
  0x72   : > { %6631 = vmatpush3.bf16.msra.mxu1 %v6991_v2  ;;  %6604 = vmatprep.mubr.bf16.mxu0 %v5620_v38  ;;  %v7720_v2 = vsel %vm7506_vm5, %v5596_v33, %v1466_v37  ;;  %v5621_v38 = vcombine.low %v7647_v14, %v7651_v19  ;;  %v1428_v33 = vsel %vm7506_vm5, %v1426_v30, %v1427_v29  ;;  %v7004_v14 = vld [vmem:[%s9807_s1 + $0x108] sm:$0xff]   ;;  %v7008_v30 = vld [vmem:[%s9807_s1 + $0x100] sm:$0xff]   ;;  %v7795_v19 = vrot.slane %v2245_v59, 5 }
  0x73   : > { %6632 = vmatprep.subr.bf16.mxu1 %v6995_v36  ;;  %6681 = vmatpush3.bf16.msra.mxu0 %v6996_v1  ;;  %v7738_v37 = vsel %vm7506_vm5, %v1461_v20, %v1462_v8  ;;  %v7750_v29 = vsel %vm7506_vm5, %v1468_v57, %v1469_v50  ;;  %v7003_v50 = vld [vmem:[%s9807_s1 + $0xc8] sm:$0xff]   ;;  %v7765_v1 = vld [vmem:[%s7164_s28 + $0xb4] sm:$0xe]  ;;  %v5622_v20 = vcombine.low %v1425_v61, %v1428_v33  ;;  %v2249_v8 = vshrl.u32 %v7702_v32, 16  ;;  %v7793_v61 = vld [vmem:[%s7164_s28 + $0x1c] sm:$0xf] }
  0x74   : > { %6682 = vmatprep.subr.bf16.mxu0 %v7000_v23  ;;  %v7780_v57 = vld [vmem:[%s7164_s28 + $0x6c] sm:$0xf]  ;;  %v2260_v33 = vshrl.u32 %v5713_v45, 16  ;;  %v2269_v51 = vshll.u32 %v7793_v61, 16  ;;  %v2273_v39 = vshrl.u32 %v7793_v61, 16  ;;  %v2284_v59 = vshrl.u32 %v5716_v53, 16 }
  0x75   : > { %6553 = vmatmul.mubr.bf16.gmra.mxu1 %v5563_v35  ;;  %v1441_v35 = vrot.slane %v7077_v54, 5  ;;  %v5567_v54 = vcombine.low %v7780_v57, %v7654_v16  ;;  %v2251_v3 = vrot.slane %v2249_v8, 4  ;;  %v2287_v46 = vshll.u32 %v5716_v53, 16  ;;  %v7081_v8 = vld [vmem:[%s7164_s28 + $0x7c] sm:$0xf] }
  0x76   : > { %6556 = vmatprep.mubr.bf16.mxu1 %v5564_v60  ;;  %6633 = vmatpush3.bf16.msra.mxu1 %v6995_v36  ;;  %v5566_v60 = vcombine.low %v7078_v17, %v7636_v48  ;;  %v1440_v36 = vrot.slane %v1438_v47, 4  ;;  %v7790_v48 = vsel %vm7506_vm5, %v5591_v62, %v1431_v58  ;;  %v2263_v17 = vshll.u32 %v5713_v45, 16  ;;  %v7007_v58 = vld [vmem:[%s9807_s1 + $0xc0] sm:$0xff]   ;;  %v7820_v45 = vld [vmem:[%s7164_s28 + $0x28] sm:$0xf] }
  0x77   : > { %6634 = vmatprep.subr.bf16.mxu1 %v6999_v0  ;;  %6683 = vmatpush3.bf16.msra.mxu0 %v7000_v23  ;;  %v9820_v62 = vrot.slane %v9849_v40, 5  ;;  %v7807_v23 = vld [vmem:[%s7164_s28 + $0x20] sm:$0x1]  ;;  %v2262_v12 = vrot.slane %v2260_v33, 4  ;;  %9851 = vst [vmem:[#allocation2_spill] sm:$0xff] %v7820_v45  ;;  %v5623_v34 = vcombine.low %v7790_v48, %v1435_v11  ;;  %v2293_v53 = vshll.u32 %v7820_v45, 16 }
  0x78   : > { %6684 = vmatprep.subr.bf16.mxu0 %v7004_v14  ;;  %v2265_v10 = vrot.slane %v2263_v17, 5  ;;  %v1442_v7 = vsel %vm7506_vm5, %v1440_v36, %v1441_v35  ;;  %v2242_v35 = vor.u32 %v2241_v49, %v2238_v63  ;;  %v7833_v36 = vld [vmem:[%s9807_s1 + $0x178] sm:$0xff]   ;;  %v5719_v63 = vld [vmem:[%s7164_s28 + $0x30] sm:$0xf]  ;;  %v7854_v48 = vld [vmem:[%s7164_s28 + $0x34] sm:$0xf] }
  0x79   : > { %6605 = vmatmul.mubr.bf16.gmra.mxu0 %v5621_v38  ;;  %v2255_v38 = vshll.u32 %v7776_v42, 16  ;;  %v5624_v17 = vcombine.low %v1439_v4, %v1442_v7  ;;  %9854 = vst [vmem:[#allocation5_spill] sm:$0xff] %v7854_v48  ;;  %v7856_v11 = vrot.slane %v2269_v51, 5  ;;  %v2289_v47 = vrot.slane %v2287_v46, 5  ;;  %v7875_v46 = vld [vmem:[%s7164_s28 + $0x40] sm:$0xf] }
  0x7a   : > { %6635 = vmatpush3.bf16.msra.mxu1 %v6999_v0  ;;  %6608 = vmatprep.mubr.bf16.mxu0 %v5622_v20  ;;  %v2252_v20 = vor.u32 %v2251_v3, %v7795_v19  ;;  %v2266_v49 = vor.u32 %v2265_v10, %v2262_v12  ;;  %v7080_v3 = vld [vmem:[%s7164_s28 + $0x78] sm:$0xf]  ;;  %v2275_v12 = vrot.slane %v2273_v39, 4  ;;  %v2286_v10 = vrot.slane %v2284_v59, 4  ;;  %9855 = vst [vmem:[#allocation4_spill] sm:$0xff] %v7875_v46 }
  0x7b   : > { %6636 = vmatprep.subr.bf16.mxu1 %v7003_v50  ;;  %6685 = vmatpush3.bf16.msra.mxu0 %v7004_v14  ;;  %v2279_v14 = vshll.u32 %v7807_v23, 16  ;;  %v5568_v33 = vcombine.low %v7080_v3, %v7081_v8  ;;  %v7847_v25 = vrot.slane %v2255_v38, 5  ;;  %v7859_v0 = vld [vmem:[%s7164_s28 + $0x38] sm:$0x1]  ;;  %v7861_v4 = vrot.slane %v2242_v35, 4 }
  0x7c   : > { %6686 = vmatprep.subr.bf16.mxu0 %v7008_v30  ;;  %v7863_v7 = vrot.slane %v2252_v20, 4  ;;  %v2308_v3 = vshrl.u32 %v5719_v63, 16  ;;  %v5722_v8 = vld [vmem:[%s7164_s28 + $0x3c] sm:$0xf]  ;;  %v7871_v51 = vrot.slane %v2293_v53, 5  ;;  %v2311_v39 = vshll.u32 %v5719_v63, 16 }
  0x7d   : > { %6557 = vmatmul.mubr.bf16.gmra.mxu1 %v5565_v55  ;;  %v1475_v55 = vrot.slane %v9820_v62, 4  ;;  %v7865_v38 = vrot.slane %v2279_v14, 5  ;;  %v2317_v59 = vshll.u32 %v7854_v48, 16  ;;  %v2321_v20 = vshrl.u32 %v7854_v48, 16 }
  0x7e   : > { %6560 = vmatprep.mubr.bf16.mxu1 %v5566_v60  ;;  %6637 = vmatpush3.bf16.msra.mxu1 %v7003_v50  ;;  %v7850_v60 = vld [vmem:[%s7164_s28 + $0x2c] sm:$0x1]  ;;  %v2297_v50 = vshrl.u32 %v7820_v45, 16  ;;  %v2276_v14 = vor.u32 %v2275_v12, %v7856_v11  ;;  %v2310_v53 = vrot.slane %v2308_v3, 4  ;;  %v2313_v63 = vrot.slane %v2311_v39, 5 }
  0x7f   : > { %6638 = vmatprep.subr.bf16.mxu1 %v7007_v58  ;;  %9853 = vst [vmem:[#allocation3_spill] sm:$0xff] %v7850_v60  ;;  %6687 = vmatpush3.bf16.msra.mxu0 %v7008_v30  ;;  %v7869_v30 = vrot.slane %v2266_v49, 4  ;;  %v2332_v49 = vshrl.u32 %v5722_v8, 16  ;;  %v2335_v62 = vshll.u32 %v5722_v8, 16  ;;  %v2323_v48 = vrot.slane %v2321_v20, 4 }
  0x80   : > { %6768 = vmatprep.subr.bf16.mxu0 %v7838_v15  ;;  %v2299_v35 = vrot.slane %v2297_v50, 4  ;;  %v7885_v50 = vrot.slane %v2317_v59, 5  ;;  %v7888_v45 = vld [vmem:[%s7164_s28 + $0x44] sm:$0x1]  ;;  %v2345_v12 = vshrl.u32 %v7875_v46, 16  ;;  %v9856_v16 = vrot.slane %v9849_v40, 5 }
  0x81   : > { %6609 = vmatmul.mubr.bf16.gmra.mxu0 %v5623_v34  ;;  %v2303_v34 = vshll.u32 %v7850_v60, 16  ;;  %v9857_v57 = vrot.slane %v7765_v1, 9  ;;  %v7909_v39 = vld [vmem:[%s7164_s28 + $0x4c] sm:$0xf]  ;;  %v2334_v59 = vrot.slane %v2332_v49, 4  ;;  %v2337_v20 = vrot.slane %v2335_v62, 5 }
  0x82   : > { %6639 = vmatpush3.bf16.msra.mxu1 %v7007_v58  ;;  %6612 = vmatprep.mubr.bf16.mxu0 %v5624_v17  ;;  %v2290_v58 = vor.u32 %v2289_v47, %v2286_v10  ;;  %v2327_v17 = vshll.u32 %v7859_v0, 16  ;;  %v2341_v47 = vshll.u32 %v7875_v46, 16  ;;  %v5725_v10 = vld [vmem:[%s7164_s28 + $0x48] sm:$0xf]  ;;  %v2300_v8 = vor.u32 %v2299_v35, %v7871_v51 }
  0x83   : > { %6720 = vmatprep.subr.bf16.mxu1 %v7833_v36  ;;  %v2347_v1 = vrot.slane %v2345_v12, 4  ;;  %v7913_v46 = vrot.slane %v2276_v14, 4  ;;  %v2248_v62 = vsel %vm7195_vm2, %v7861_v4, %v7795_v19  ;;  %v2258_v35 = vsel %vm7195_vm2, %v7863_v7, %v7847_v25  ;;  %v5728_v4 = vld [vmem:[%s7164_s28 + $0x54] sm:$0xf] }
  0x84   : > { %v7911_v60 = vrot.slane %v2341_v47, 5  ;;  %v2359_v14 = vshll.u32 %v5725_v10, 16  ;;  %v2351_v49 = vshll.u32 %v7888_v45, 16  ;;  %v2369_v19 = vshrl.u32 %v7909_v39, 16 }
  0x85   : > { %6561 = vmatmul.mubr.bf16.gmra.mxu1 %v5567_v54  ;;  %v7899_v54 = vsel %vm7506_vm5, %v9857_v57, %v9856_v16  ;;  %v7915_v16 = vrot.slane %v2290_v58, 4  ;;  %v7917_v57 = vrot.slane %v2303_v34, 5  ;;  %v2365_v58 = vshll.u32 %v7909_v39, 16 }
  0x86   : > { %6564 = vmatprep.mubr.bf16.mxu1 %v5568_v33  ;;  %v9858_v33 = vrot.slane %v9852_v5, 5  ;;  %v2356_v5 = vshrl.u32 %v5725_v10, 16  ;;  %v9860_v34 = vcombine.low %v7690_v44, %v7706_v41  ;;  %v7938_v47 = vrot.slane %v2300_v8, 4  ;;  %v7944_v10 = vld [vmem:[%s7164_s28 + $0x58] sm:$0xf] }
  0x87   : > { %v7940_v12 = vrot.slane %v2327_v17, 5  ;;  %v2338_v25 = vor.u32 %v2337_v20, %v2334_v59  ;;  %v2348_v7 = vor.u32 %v2347_v1, %v7911_v60  ;;  %v9861_v44 = vcombine.low %v7285_v13, %v7292_v22  ;;  %v7950_v41 = vld [vmem:[%s7164_s28 + $0x50] sm:$0x1] }
  0x88   : > { %v7905_v3 = vsel %vm7506_vm5, %v1475_v55, %v9858_v33  ;;  %v9859_v55 = vcombine.low %v7670_v6, %v7682_v21  ;;  %v2314_v6 = vor.u32 %v2313_v63, %v2310_v53  ;;  %v2324_v21 = vor.u32 %v2323_v48, %v7885_v50 }
  0x89   : > { %v2358_v48 = vrot.slane %v2356_v5, 4  ;;  %v2361_v53 = vrot.slane %v2359_v14, 5  ;;  %v7952_v63 = vrot.slane %v2365_v58, 5  ;;  %v2371_v17 = vrot.slane %v2369_v19, 4  ;;  %v5731_v5 = vld [vmem:[%s7164_s28 + $0x60] sm:$0xf] }
  0x8a   : > { %6613 = vmatmul.mubr.bf16.gmra.mxu0 %v9859_v55  ;;  %v9862_v33 = vcombine.low %v7337_v18, %v7343_v31  ;;  %v2380_v8 = vshrl.u32 %v5728_v4, 16  ;;  %v2383_v59 = vshll.u32 %v5728_v4, 16  ;;  %v7957_v20 = vrot.slane %v2314_v6, 4  ;;  %v7974_v31 = vld [vmem:[%s7164_s28 + $0x64] sm:$0xf] }
  0x8b   : > { %6616 = vmatprep.mubr.bf16.mxu0 %v9860_v34  ;;  %v7959_v1 = vrot.slane %v2324_v21, 4  ;;  %v7961_v13 = vrot.slane %v2351_v49, 5  ;;  %v2389_v22 = vshll.u32 %v7944_v10, 16  ;;  %v5629_v55 = vcombine.low %v7899_v54, %v7905_v3  ;;  %v7970_v34 = vld [vmem:[%s7164_s28 + $0x5c] sm:$0x1] }
  0x8c   : > { %v5774_v14 = vcombine.low %v2248_v62, %v2258_v35  ;;  %v7967_v58 = vrot.slane %v2338_v25, 4  ;;  %v2393_v18 = vshrl.u32 %v7944_v10, 16  ;;  %v7976_v6 = vrot.slane %v2348_v7, 4 }
  0x8d   : > { %6565 = vmatmul.mubr.bf16.gmra.mxu1 %v9861_v44  ;;  %v2375_v21 = vshll.u32 %v7950_v41, 16  ;;  %v2404_v49 = vshrl.u32 %v5731_v5, 16  ;;  %v2407_v19 = vshll.u32 %v5731_v5, 16  ;;  %v9863_v4 = vcombine.low %v7710_v26, %v7738_v37 }
  0x8e   : > { %6568 = vmatprep.mubr.bf16.mxu1 %v9862_v33  ;;  %v2362_v54 = vor.u32 %v2361_v53, %v2358_v48  ;;  %v2372_v3 = vor.u32 %v2371_v17, %v7952_v63  ;;  %v2382_v62 = vrot.slane %v2380_v8, 4  ;;  %v2385_v35 = vrot.slane %v2383_v59, 5  ;;  %v8014_v8 = vld [vmem:[%s7164_s28 + $0x70] sm:$0xf] }
  0x8f   : > { %v9864_v25 = vcombine.low %v7720_v2, %v7750_v29  ;;  %v7986_v7 = vrot.slane %v2389_v22, 5  ;;  %v2395_v44 = vrot.slane %v2393_v18, 4  ;;  %v2399_v33 = vshll.u32 %v7970_v34, 16 }
  0x90   : > { %v2413_v26 = vshll.u32 %v7974_v31, 16  ;;  %v2272_v37 = vsel %vm7195_vm2, %v7869_v30, %v7856_v11  ;;  %v2282_v2 = vsel %vm7195_vm2, %v7913_v46, %v7865_v38  ;;  %v2406_v29 = vrot.slane %v2404_v49, 4  ;;  %v5734_v46 = vld [vmem:[%s7164_s28 + $0x6c] sm:$0xf] }
  0x91   : > { %v2409_v48 = vrot.slane %v2407_v19, 5  ;;  %v9865_v53 = vcombine.low %v7379_v9, %v7388_v28  ;;  %v2296_v17 = vsel %vm7195_vm2, %v7915_v16, %v7871_v51  ;;  %v2306_v11 = vsel %vm7195_vm2, %v7938_v47, %v7917_v57  ;;  %v8022_v16 = vld [vmem:[%s7164_s28 + $0x68] sm:$0x1] }
  0x92   : > { %6617 = vmatmul.mubr.bf16.gmra.mxu0 %v9863_v4  ;;  %v8009_v30 = vrot.slane %v2375_v21, 5  ;;  %v2417_v38 = vshrl.u32 %v7974_v31, 16  ;;  %v9866_v9 = vcombine.low %v9847_v24, %v7443_v52  ;;  %v8019_v28 = vrot.slane %v2362_v54, 4  ;;  %v7009_v52 = vld [vmem:[%s7164_s28 + $0xc] sm:$0xff]  }
  0x93   : > { %6620 = vmatprep.mubr.bf16.mxu0 %v9864_v25  ;;  %v2386_v51 = vor.u32 %v2385_v35, %v2382_v62  ;;  %v2428_v59 = vshrl.u32 %v5734_v46, 16  ;;  %v2431_v57 = vshll.u32 %v5734_v46, 16  ;;  %v8024_v47 = vrot.slane %v2372_v3, 4  ;;  %v8035_v62 = vld [vmem:[%s7164_s28 + $0x74] sm:$0x1] }
  0x94   : > { %v2396_v22 = vor.u32 %v2395_v44, %v7986_v7  ;;  %v8027_v5 = vrot.slane %v2399_v33, 5  ;;  %v2437_v18 = vshll.u32 %v8014_v8, 16  ;;  %v2410_v24 = vor.u32 %v2409_v48, %v2406_v29  ;;  %v5737_v25 = vld [vmem:[%s7164_s28 + $0x78] sm:$0xf]  ;;  %v8039_v44 = vld [vmem:[%s7164_s28 + $0x7c] sm:$0xf] }
  0x95   : > { %6569 = vmatmul.mubr.bf16.gmra.mxu1 %v9865_v53  ;;  %v8031_v21 = vrot.slane %v2413_v26, 5  ;;  %v2419_v49 = vrot.slane %v2417_v38, 4  ;;  %v2441_v19 = vshrl.u32 %v8014_v8, 16  ;;  %v5775_v4 = vcombine.low %v2272_v37, %v2282_v2  ;;  %v8046_v26 = vld [vmem:[%s7164_s28 + $0x80] sm:$0x1] }
  0x96   : > { %6572 = vmatprep.mubr.bf16.mxu1 %v9866_v9  ;;  %v5776_v54 = vcombine.low %v2296_v17, %v2306_v11  ;;  %v2430_v3 = vrot.slane %v2428_v59, 4  ;;  %v2433_v35 = vrot.slane %v2431_v57, 5  ;;  %v8041_v33 = vrot.slane %v2386_v51, 4 }
  0x97   : > { %v8043_v53 = vrot.slane %v2437_v18, 5  ;;  %v2443_v29 = vrot.slane %v2441_v19, 4  ;;  %v2452_v48 = vshrl.u32 %v5737_v25, 16  ;;  %v2423_v37 = vshll.u32 %v8022_v16, 16  ;;  %v5740_v19 = vld [vmem:[%s7164_s28 + $0x84] sm:$0xf] }
  0x98   : > { %v2455_v2 = vshll.u32 %v5737_v25, 16  ;;  %v2461_v17 = vshll.u32 %v8039_v44, 16  ;;  %v2465_v11 = vshrl.u32 %v8039_v44, 16  ;;  %v8051_v38 = vrot.slane %v2396_v22, 4  ;;  %v7013_v25 = vld [vmem:[%s7164_s28 + $0x24] sm:$0xff]  }
  0x99   : > { %v8053_v46 = vrot.slane %v2410_v24, 4  ;;  %v2454_v9 = vrot.slane %v2452_v48, 4  ;;  %v9867_v51 = vcombine.low %v9850_v43, %v9849_v40  ;;  %v2320_v22 = vsel %vm7195_vm2, %v7957_v20, %v7885_v50 }
  0x9a   : > { %6621 = vmatmul.mubr.bf16.gmra.mxu0 %v5629_v55  ;;  %v2420_v55 = vor.u32 %v2419_v49, %v8031_v21  ;;  %v2457_v59 = vrot.slane %v2455_v2, 5  ;;  %v8059_v57 = vrot.slane %v2461_v17, 5  ;;  %v2467_v18 = vrot.slane %v2465_v11, 4  ;;  %v8108_v17 = vld [vmem:[%s7164_s28 + $0x8c] sm:$0x1] }
  0x9b   : > { %6688 = vmatprep.mubr.bf16.mxu0 %v5774_v14  ;;  %v2434_v14 = vor.u32 %v2433_v35, %v2430_v3  ;;  %v2444_v24 = vor.u32 %v2443_v29, %v8043_v53  ;;  %v2447_v49 = vshll.u32 %v8035_v62, 16  ;;  %v2471_v40 = vshll.u32 %v8046_v26, 16  ;;  %v8082_v3 = vld [vmem:[%s7164_s28 + $0x88] sm:$0xf]  ;;  %v7010_v35 = vld [vmem:[%s7164_s28 + $0x18] sm:$0xff]  }
  0x9c   : > { %v2330_v43 = vsel %vm7195_vm2, %v7959_v1, %v7940_v12  ;;  %v2354_v50 = vsel %vm7195_vm2, %v7976_v6, %v7961_v13  ;;  %v2458_v20 = vor.u32 %v2457_v59, %v2454_v9  ;;  %v7016_v12 = vld [vmem:[%s9807_s1 + $0x1b0] sm:$0xff]   ;;  %v8089_v1 = vrot.slane %v2423_v37, 5  ;;  %v8113_v11 = vld [vmem:[%s9807_s1 + $0x1a8] sm:$0xff]  }
  0x9d   : > { %6573 = vmatmul.mubr.bf16.gmra.mxu1 %v9867_v51  ;;  %v2479_v29 = vshll.u32 %v5740_v19, 16  ;;  %v7015_v13 = vld [vmem:[%s9807_s1 + $0x170] sm:$0xff]   ;;  %v2368_v6 = vsel %vm7195_vm2, %v8019_v28, %v7952_v63  ;;  %v2378_v48 = vsel %vm7195_vm2, %v8024_v47, %v8009_v30  ;;  %v8103_v37 = vrot.slane %v2420_v55, 4 }
  0x9e   : > { %6640 = vmatprep.mubr.bf16.mxu1 %v7009_v52  ;;  %v2344_v52 = vsel %vm7195_vm2, %v7967_v58, %v7911_v60  ;;  %v2468_v60 = vor.u32 %v2467_v18, %v8059_v57  ;;  %v2476_v58 = vshrl.u32 %v5740_v19, 16  ;;  %v8105_v2 = vrot.slane %v2434_v14, 4  ;;  %v5743_v14 = vld [vmem:[%s7164_s28 + $0x90] sm:$0xf]  ;;  %v8136_v59 = vld [vmem:[%s7164_s28 + $0x94] sm:$0xf] }
  0x9f   : > { %v8115_v63 = vrot.slane %v2444_v24, 4  ;;  %v8117_v28 = vrot.slane %v2447_v49, 5  ;;  %v2485_v30 = vshll.u32 %v8082_v3, 16  ;;  %v2489_v47 = vshrl.u32 %v8082_v3, 16  ;;  %9868 = vst [vmem:[#allocation6_spill] sm:$0xff] %v8136_v59 }
  0xa0   : > { %v2402_v55 = vsel %vm7195_vm2, %v8051_v38, %v8027_v5  ;;  %v8130_v9 = vrot.slane %v2458_v20, 4  ;;  %v8132_v51 = vrot.slane %v2471_v40, 5  ;;  %v2481_v18 = vrot.slane %v2479_v29, 5  ;;  %v7019_v5 = vld [vmem:[%s9807_s1 + $0x168] sm:$0xff]  }
  0xa1   : > { %v2503_v38 = vshll.u32 %v5743_v14, 16  ;;  %v2509_v24 = vshll.u32 %v8136_v59, 16  ;;  %v2513_v49 = vshrl.u32 %v8136_v59, 16  ;;  %v5777_v40 = vcombine.low %v2320_v22, %v2330_v43 }
  0xa2   : > { %6689 = vmatmul.mubr.bf16.vlgmr.msra.gmra.mxu0 %v5775_v4  ;;  %v2392_v4 = vsel %vm7195_vm2, %v8041_v33, %v7986_v7  ;;  %v2495_v7 = vshll.u32 %v8108_v17, 16  ;;  %v2500_v33 = vshrl.u32 %v5743_v14, 16  ;;  %v5778_v20 = vcombine.low %v2344_v52, %v2354_v50 }
  0xa3   : > { %6769 = vmatpush3.bf16.msra.mxu0 %v7838_v15  ;;  %6692 = vmatprep.mubr.bf16.mxu0 %v5776_v54  ;;  %v8138_v15 = vrot.slane %v2468_v60, 4  ;;  %v2478_v54 = vrot.slane %v2476_v58, 4  ;;  %v8147_v19 = vrot.slane %v2485_v30, 5  ;;  %v7014_v60 = vld [vmem:[%s7164_s28 + $0x30] sm:$0xff]   ;;  %v7024_v58 = vld [vmem:[%s9807_s1 + $0x1a0] sm:$0xff]   ;;  %v2505_v14 = vrot.slane %v2503_v38, 5 }
  0xa4   : > { %6770 = vmatprep.subr.bf16.mxu0 %v7016_v12  ;;  %v2502_v29 = vrot.slane %v2500_v33, 4  ;;  %v2515_v22 = vrot.slane %v2513_v49, 4  ;;  %v8155_v43 = vcombine.low %v2368_v6, %v2378_v48  ;;  %v8158_v52 = vcombine.low %v2392_v4, %v2402_v55  ;;  %v5746_v30 = vld [vmem:[%s7164_s28 + $0x9c] sm:$0xf]  ;;  %v8180_v4 = vld [vmem:[%s7164_s28 + $0xa4] sm:$0x1] }
  0xa5   : > { %6641 = vmatmul.mubr.bf16.vlgmr.msra.gmra.mxu1 %v7010_v35  ;;  %v2491_v35 = vrot.slane %v2489_v47, 4  ;;  %v2482_v48 = vor.u32 %v2481_v18, %v2478_v54  ;;  %v8177_v47 = vld [vmem:[%s7164_s28 + $0xa0] sm:$0xf]  ;;  %9871 = vst [vmem:[#allocation9_spill] sm:$0xff] %v8180_v4  ;;  %v2524_v55 = vshrl.u32 %v5746_v30, 16  ;;  %v2527_v33 = vshll.u32 %v5746_v30, 16 }
  0xa6   : > { %6721 = vmatpush3.bf16.msra.mxu1 %v7833_v36  ;;  %6644 = vmatprep.mubr.bf16.mxu1 %v7013_v25  ;;  %v8153_v36 = vrot.slane %v2509_v24, 5  ;;  %v2426_v25 = vsel %vm7195_vm2, %v8103_v37, %v8089_v1  ;;  %9870 = vst [vmem:[#allocation8_spill] sm:$0xff] %v8177_v47  ;;  %v7017_v38 = vld [vmem:[%s7164_s28 + $0x3c] sm:$0xff]   ;;  %v2533_v37 = vshll.u32 %v8177_v47, 16  ;;  %v2537_v24 = vshrl.u32 %v8177_v47, 16 }
  0xa7   : > { %6722 = vmatprep.subr.bf16.mxu1 %v7015_v13  ;;  %6771 = vmatpush3.bf16.msra.mxu0 %v7016_v12  ;;  %v8169_v12 = vld [vmem:[%s7164_s28 + $0x98] sm:$0x1]  ;;  %v2492_v1 = vor.u32 %v2491_v35, %v8147_v19  ;;  %v7023_v54 = vld [vmem:[%s9807_s1 + $0x160] sm:$0xff]   ;;  %v2506_v18 = vor.u32 %v2505_v14, %v2502_v29  ;;  %v2526_v30 = vrot.slane %v2524_v55, 4  ;;  %v2529_v49 = vrot.slane %v2527_v33, 5 }
  0xa8   : > { %6772 = vmatprep.subr.bf16.mxu0 %v8113_v11  ;;  %9869 = vst [vmem:[#allocation7_spill] sm:$0xff] %v8169_v12  ;;  %v2519_v35 = vshll.u32 %v8169_v12, 16  ;;  %v2539_v6 = vrot.slane %v2537_v24, 4  ;;  %v2543_v50 = vshll.u32 %v8180_v4, 16  ;;  %v5749_v47 = vld [vmem:[%s7164_s28 + $0xa8] sm:$0xf] }
  0xa9   : > { %v7027_v29 = vld [vmem:[%s9807_s1 + $0x158] sm:$0xff]   ;;  %v8203_v14 = vrot.slane %v2482_v48, 4  ;;  %v2548_v55 = vshrl.u32 %v5749_v47, 16  ;;  %v2551_v33 = vshll.u32 %v5749_v47, 16  ;;  %v8216_v4 = vld [vmem:[%s7164_s28 + $0xb0] sm:$0x1] }
  0xaa   : > { %6693 = vmatmul.mubr.bf16.gmra.mxu0 %v5777_v40  ;;  %6723 = vmatpush3.bf16.msra.mxu1 %v7015_v13  ;;  %v7028_v13 = vld [vmem:[%s9807_s1 + $0x198] sm:$0xff]   ;;  %v2516_v40 = vor.u32 %v2515_v22, %v8153_v36  ;;  %v8205_v22 = vrot.slane %v2495_v7, 5  ;;  %v7018_v48 = vld [vmem:[%s7164_s28 + $0x48] sm:$0xff]   ;;  %v8219_v7 = vrot.slane %v2492_v1, 4  ;;  %v8221_v12 = vrot.slane %v2506_v18, 4 }
  0xab   : > { %6696 = vmatprep.mubr.bf16.mxu0 %v5778_v20  ;;  %6724 = vmatprep.subr.bf16.mxu1 %v7019_v5  ;;  %v8196_v20 = vrot.slane %v2533_v37, 5  ;;  %v2530_v37 = vor.u32 %v2529_v49, %v2526_v30  ;;  %v8223_v59 = vrot.slane %v2519_v35, 5  ;;  %v7031_v49 = vld [vmem:[%s9807_s1 + $0x150] sm:$0xff]   ;;  %v8240_v18 = vrot.slane %v2551_v33, 5 }
  0xac   : > { %6773 = vmatpush3.bf16.msra.mxu0 %v8113_v11  ;;  %v8208_v11 = vld [vmem:[%s7164_s28 + $0xac] sm:$0xf]  ;;  %v2567_v35 = vshll.u32 %v8216_v4, 16 }
  0xad   : > { %6645 = vmatmul.mubr.bf16.gmra.mxu1 %v7014_v60  ;;  %6774 = vmatprep.subr.bf16.mxu0 %v7024_v58  ;;  %9872 = vst [vmem:[#allocation10_spill] sm:$0xff] %v8208_v11  ;;  %v2450_v60 = vsel %vm7195_vm2, %v8115_v63, %v8117_v28  ;;  %v2540_v24 = vor.u32 %v2539_v6, %v8196_v20  ;;  %v2557_v47 = vshll.u32 %v8208_v11, 16  ;;  %v7021_v63 = vld [vmem:[%s7164_s28 + $0x54] sm:$0xff]   ;;  %v8230_v28 = vrot.slane %v2516_v40, 4 }
  0xae   : > { %6648 = vmatprep.mubr.bf16.mxu1 %v7017_v38  ;;  %6725 = vmatpush3.bf16.msra.mxu1 %v7019_v5  ;;  %v7032_v5 = vld [vmem:[%s9807_s1 + $0x190] sm:$0xff]   ;;  %v8232_v6 = vrot.slane %v2543_v50, 5  ;;  %v8234_v38 = vrot.slane %v2548_v55, 4  ;;  %v2561_v1 = vshrl.u32 %v8208_v11, 16  ;;  %v8249_v40 = vrot.slane %v2530_v37, 4 }
  0xaf   : > { %6726 = vmatprep.subr.bf16.mxu1 %v7023_v54  ;;  %v8251_v30 = vrot.slane %v2540_v24, 4  ;;  %v5752_v55 = vld [vmem:[%s7164_s28 + $0xb4] sm:$0xf]  ;;  %v8255_v11 = vld [vmem:[%s7164_s28 + $0xb8] sm:$0xf]  ;;  %v7035_v24 = vld [vmem:[%s9807_s1 + $0x148] sm:$0xff]  }
  0xb0   : > { %6775 = vmatpush3.bf16.msra.mxu0 %v7024_v58  ;;  %v9873_v58 = vsel %vm7195_vm2, %v8053_v46, %v8031_v21  ;;  %9874 = vst [vmem:[#allocation11_spill] sm:$0xff] %v8255_v11  ;;  %v2464_v21 = vsel %vm7195_vm2, %v8130_v9, %v8059_v57  ;;  %v8267_v46 = vrot.slane %v2557_v47, 5  ;;  %v5755_v37 = vld [vmem:[%s7164_s28 + $0xc0] sm:$0xf]  ;;  %v2474_v57 = vsel %vm7195_vm2, %v8138_v15, %v8132_v51  ;;  %v8294_v47 = vld [vmem:[%s7164_s28 + $0xc4] sm:$0xf] }
  0xb1   : > { %6776 = vmatprep.subr.bf16.mxu0 %v7028_v13  ;;  %v5781_v50 = vcombine.low %v9873_v58, %v2426_v25  ;;  %v2572_v25 = vshrl.u32 %v5752_v55, 16  ;;  %v2488_v9 = vsel %vm7195_vm2, %v8203_v14, %v8147_v19  ;;  %9877 = vst [vmem:[#allocation13_spill] sm:$0xff] %v8294_v47  ;;  %v8297_v51 = vld [vmem:[%s7164_s28 + $0xc8] sm:$0x1]  ;;  %v2605_v58 = vshll.u32 %v8294_v47, 16 }
  0xb2   : > { %6697 = vmatmul.mubr.bf16.gmra.mxu0 %v8155_v43  ;;  %6727 = vmatpush3.bf16.msra.mxu1 %v7023_v54  ;;  %v9875_v43 = vsel %vm7195_vm2, %v8105_v2, %v8043_v53  ;;  %v2563_v54 = vrot.slane %v2561_v1, 4  ;;  %v2575_v53 = vshll.u32 %v5752_v55, 16  ;;  %v2581_v2 = vshll.u32 %v8255_v11, 16 }
  0xb3   : > { %6700 = vmatprep.mubr.bf16.mxu0 %v8158_v52  ;;  %v5782_v33 = vcombine.low %v9875_v43, %v2450_v60  ;;  %6728 = vmatprep.subr.bf16.mxu1 %v7027_v29  ;;  %v7036_v52 = vld [vmem:[%s9807_s1 + $0x188] sm:$0xff]   ;;  %v2585_v60 = vshrl.u32 %v8255_v11, 16  ;;  %v2574_v15 = vrot.slane %v2572_v25, 4  ;;  %v9878_v55 = vrot.slane %v7702_v32, 5 }
  0xb4   : > { %6777 = vmatpush3.bf16.msra.mxu0 %v7028_v13  ;;  %v2498_v13 = vsel %vm7195_vm2, %v8219_v7, %v8205_v22  ;;  %v2577_v19 = vrot.slane %v2575_v53, 5  ;;  %v8299_v14 = vrot.slane %v2581_v2, 5  ;;  %v2596_v22 = vshrl.u32 %v5755_v37, 16  ;;  %v7022_v2 = vld [vmem:[%s7164_s28 + $0x60] sm:$0xff]  }
  0xb5   : > { %6649 = vmatmul.mubr.bf16.gmra.mxu1 %v7018_v48  ;;  %6778 = vmatprep.subr.bf16.mxu0 %v7032_v5  ;;  %v8291_v48 = vld [vmem:[%s7164_s28 + $0xbc] sm:$0x1]  ;;  %v2587_v1 = vrot.slane %v2585_v60, 4  ;;  %v2599_v7 = vshll.u32 %v5755_v37, 16  ;;  %v8304_v43 = vrot.slane %v9878_v55, 4  ;;  %v8309_v25 = vrot.slane %v2567_v35, 5 }
  0xb6   : > { %9876 = vst [vmem:[#allocation12_spill] sm:$0xff] %v8291_v48  ;;  %6652 = vmatprep.mubr.bf16.mxu1 %v7021_v63  ;;  %6729 = vmatpush3.bf16.msra.mxu1 %v7027_v29  ;;  %v2554_v63 = vor.u32 %v8240_v18, %v8234_v38  ;;  %v2564_v29 = vor.u32 %v2563_v54, %v8267_v46  ;;  %v2609_v53 = vshrl.u32 %v8294_v47, 16  ;;  %v2591_v60 = vshll.u32 %v8291_v48, 16  ;;  %v7025_v38 = vld [vmem:[%s7164_s28 + $0x6c] sm:$0xff]   ;;  %v8329_v48 = vld [vmem:[%s7164_s28 + $0x18] sm:$0xe] }
  0xb7   : > { %6730 = vmatprep.subr.bf16.mxu1 %v7031_v49  ;;  %v2598_v37 = vrot.slane %v2596_v22, 4  ;;  %v2601_v11 = vrot.slane %v2599_v7, 5  ;;  %v8314_v55 = vrot.slane %v2605_v58, 5  ;;  %v2578_v18 = vor.u32 %v2577_v19, %v2574_v15  ;;  %v7039_v22 = vld [vmem:[%s9807_s1 + $0x140] sm:$0xff]   ;;  %v8326_v58 = vld [vmem:[%s7164_s28 + $0xc] sm:$0xe] }
  0xb8   : > { %6779 = vmatpush3.bf16.msra.mxu0 %v7032_v5  ;;  %v7040_v5 = vld [vmem:[%s9807_s1 + $0x180] sm:$0xff]   ;;  %v2588_v35 = vor.u32 %v2587_v1, %v8299_v14  ;;  %v2611_v54 = vrot.slane %v2609_v53, 4  ;;  %v2615_v47 = vshll.u32 %v8297_v51, 16  ;;  %v5783_v15 = vcombine.low %v2464_v21, %v2474_v57 }
  0xb9   : > { %6780 = vmatprep.subr.bf16.mxu0 %v7036_v52  ;;  %v2602_v7 = vor.u32 %v2601_v11, %v2598_v37  ;;  %v5784_v19 = vcombine.low %v2488_v9, %v2498_v13  ;;  %v8337_v1 = vrot.slane %v2554_v63, 4  ;;  %v8339_v11 = vrot.slane %v2564_v29, 4  ;;  %v7026_v9 = vld [vmem:[%s7164_s28 + $0x78] sm:$0xff]   ;;  %v7029_v37 = vld [vmem:[%s7164_s28 + $0x84] sm:$0xff]  }
  0xba   : > { %6701 = vmatmul.mubr.bf16.gmra.mxu0 %v5781_v50  ;;  %6731 = vmatpush3.bf16.msra.mxu1 %v7031_v49  ;;  %v8334_v49 = vld [vmem:[%s9807_s1 + $0x238] sm:$0xff]   ;;  %v2612_v50 = vor.u32 %v2611_v54, %v8314_v55  ;;  %v8348_v53 = vrot.slane %v2588_v35, 4  ;;  %v8350_v21 = vrot.slane %v2591_v60, 5  ;;  %v8356_v63 = vrot.slane %v2615_v47, 5  ;;  %v5801_v60 = vld [vmem:[%s7164_s28 + $0x30] sm:$0xe] }
  0xbb   : > { %6704 = vmatprep.mubr.bf16.mxu0 %v5782_v33  ;;  %6732 = vmatprep.subr.bf16.mxu1 %v7035_v24  ;;  %v8344_v33 = vld [vmem:[%s9807_s1 + $0x1f8] sm:$0xff]   ;;  %v8354_v13 = vrot.slane %v2602_v7, 4  ;;  %v3010_v29 = vrot.slane %v7776_v42, 5  ;;  %v9879_v35 = vld [vmem:[#allocation2_spill] sm:$0xff]  ;;  %v5817_v47 = vrot.slane %v5801_v60, 9  ;;  %v9882_v60 = vld [vmem:[#allocation3_spill] sm:$0xff] }
  0xbc   : > { %6781 = vmatpush3.bf16.msra.mxu0 %v7036_v52  ;;  %v8346_v52 = vrot.slane %v2578_v18, 4  ;;  %v9880_v7 = vld [vmem:[#allocation5_spill] sm:$0xff]  ;;  %v3031_v18 = vrot.slane %v7859_v0, 5  ;;  %v2546_v0 = vsel %vm7195_vm2, %v8251_v30, %v8232_v6  ;;  %v3045_v30 = vrot.slane %v7950_v41, 5 }
  0xbd   : > { %6653 = vmatmul.mubr.bf16.gmra.mxu1 %v7022_v2  ;;  %6782 = vmatprep.subr.bf16.mxu0 %v7040_v5  ;;  %v3028_v57 = vrot.slane %v9880_v7, 5  ;;  %v9881_v2 = vld [vmem:[#allocation4_spill] sm:$0xff] }
  0xbe   : > { %6656 = vmatprep.mubr.bf16.mxu1 %v7025_v38  ;;  %6733 = vmatpush3.bf16.msra.mxu1 %v7035_v24  ;;  %v8361_v24 = vrot.slane %v2612_v50, 4  ;;  %v3014_v38 = vrot.slane %v7793_v61, 5  ;;  %v2512_v50 = vsel %vm7195_vm2, %v8221_v12, %v8153_v36  ;;  %v3035_v54 = vrot.slane %v9881_v2, 5  ;;  %v5802_v12 = vld [vmem:[%s7164_s28 + $0x3c] sm:$0xe] }
  0xbf   : > { %6734 = vmatprep.subr.bf16.mxu1 %v7039_v22  ;;  %v8383_v7 = vsel %vm7506_vm5, %v5817_v47, %v3028_v57  ;;  %v3030_v36 = vrot.slane %v3028_v57, 4  ;;  %v5818_v2 = vrot.slane %v5802_v12, 9  ;;  %v7030_v47 = vld [vmem:[%s7164_s28 + $0x90] sm:$0xff]   ;;  %v3052_v12 = vrot.slane %v7970_v34, 5 }
  0xc0   : > { %6783 = vmatpush3.bf16.msra.mxu0 %v7040_v5  ;;  %v2522_v5 = vsel %vm7195_vm2, %v8230_v28, %v8223_v59  ;;  %v2536_v59 = vsel %vm7195_vm2, %v8249_v40, %v8196_v20  ;;  %v3037_v28 = vrot.slane %v3035_v54, 4  ;;  %v3042_v20 = vrot.slane %v7909_v39, 5 }
  0xc1   : > { %6864 = vmatprep.subr.bf16.mxu0 %v8334_v49  ;;  %v8397_v57 = vsel %vm7506_vm5, %v3030_v36, %v3031_v18  ;;  %v5786_v18 = vcombine.low %v2536_v59, %v2546_v0  ;;  %v8412_v39 = vsel %vm7506_vm5, %v5818_v2, %v3035_v54  ;;  %v2560_v36 = vsel %vm7195_vm2, %v8337_v1, %v8267_v46  ;;  %v5804_v54 = vld [vmem:[%s7164_s28 + $0x54] sm:$0xe] }
  0xc2   : > { %6705 = vmatmul.mubr.bf16.gmra.mxu0 %v5783_v15  ;;  %6735 = vmatpush3.bf16.msra.mxu1 %v7039_v22  ;;  %v3024_v15 = vrot.slane %v9882_v60, 5  ;;  %v3038_v22 = vrot.slane %v7888_v45, 5  ;;  %v5849_v40 = vcombine.low %v8383_v7, %v8397_v57  ;;  %v5803_v45 = vld [vmem:[%s7164_s28 + $0x48] sm:$0xe]  ;;  %v2570_v46 = vsel %vm7195_vm2, %v8339_v11, %v8309_v25  ;;  %v7050_v7 = vld [vmem:[%s7164_s28 + $0x54] sm:$0xff]  }
  0xc3   : > { %6708 = vmatprep.mubr.bf16.mxu0 %v5784_v19  ;;  %6816 = vmatprep.subr.bf16.mxu1 %v8344_v33  ;;  %v5785_v19 = vcombine.low %v2512_v50, %v2522_v5  ;;  %v3044_v50 = vrot.slane %v3042_v20, 4  ;;  %v7033_v5 = vld [vmem:[%s7164_s28 + $0x9c] sm:$0xff]   ;;  %v3056_v2 = vrot.slane %v7974_v31, 5  ;;  %v2584_v34 = vsel %vm7195_vm2, %v8346_v52, %v8299_v14 }
  0xc4   : > { %v8404_v6 = vsel %vm7506_vm5, %v3037_v28, %v3038_v22  ;;  %v5820_v28 = vrot.slane %v5804_v54, 9  ;;  %v5805_v22 = vld [vmem:[%s7164_s28 + $0x60] sm:$0xe]  ;;  %v3059_v25 = vrot.slane %v8022_v16, 5  ;;  %v2594_v11 = vsel %vm7195_vm2, %v8348_v53, %v8350_v21 }
  0xc5   : > { %6657 = vmatmul.mubr.bf16.gmra.mxu1 %v7026_v9  ;;  %v3049_v9 = vrot.slane %v7944_v10, 5  ;;  %v5850_v41 = vcombine.low %v8412_v39, %v8404_v6  ;;  %v8427_v59 = vsel %vm7506_vm5, %v3044_v50, %v3045_v30  ;;  %v3063_v14 = vrot.slane %v8014_v8, 5  ;;  %v6031_v6 = vld [vmem:[%s7164_s28 + $0x24] sm:$0xe] }
  0xc6   : > { %6660 = vmatprep.mubr.bf16.mxu1 %v7029_v37  ;;  %v5819_v37 = vrot.slane %v5803_v45, 9  ;;  %v3058_v45 = vrot.slane %v3056_v2, 4  ;;  %v5787_v52 = vcombine.low %v2560_v36, %v2570_v46  ;;  %v3066_v8 = vrot.slane %v8035_v62, 5  ;;  %v5807_v36 = vld [vmem:[%s7164_s28 + $0x78] sm:$0xe] }
  0xc7   : > { %v3051_v0 = vrot.slane %v3049_v9, 4  ;;  %v8454_v31 = vsel %vm7506_vm5, %v5820_v28, %v3049_v9  ;;  %v3065_v9 = vrot.slane %v3063_v14, 4  ;;  %v3070_v54 = vrot.slane %v8039_v44, 5 }
  0xc8   : > { %v8423_v10 = vsel %vm7506_vm5, %v5819_v37, %v3042_v20  ;;  %v5821_v20 = vrot.slane %v5805_v22, 9  ;;  %v8466_v53 = vsel %vm7506_vm5, %v3058_v45, %v3059_v25  ;;  %v5788_v37 = vcombine.low %v2584_v34, %v2594_v11 }
  0xc9   : > { %v8482_v46 = vsel %vm7506_vm5, %v3065_v9, %v3066_v8  ;;  %v5823_v62 = vrot.slane %v5807_v36, 9  ;;  %v3077_v28 = vrot.slane %v8082_v3, 5  ;;  %v3072_v44 = vrot.slane %v3070_v54, 4  ;;  %v7041_v8 = vld [vmem:[%s7164_s28 + $0x18] sm:$0xff]   ;;  %v9887_v36 = vld [vmem:[#allocation8_spill] sm:$0xff] }
  0xca   : > { %6709 = vmatmul.mubr.bf16.gmra.mxu0 %v5785_v19  ;;  %v8445_v19 = vsel %vm7506_vm5, %v3051_v0, %v3052_v12  ;;  %v8461_v16 = vsel %vm7506_vm5, %v5821_v20, %v3056_v2  ;;  %v3073_v0 = vrot.slane %v8046_v26, 5  ;;  %v3080_v26 = vrot.slane %v8108_v17, 5  ;;  %v5808_v20 = vld [vmem:[%s7164_s28 + $0x84] sm:$0xe] }
  0xcb   : > { %6712 = vmatprep.mubr.bf16.mxu0 %v5786_v18  ;;  %v5806_v18 = vld [vmem:[%s7164_s28 + $0x6c] sm:$0xe]  ;;  %v2608_v2 = vsel %vm7195_vm2, %v8354_v13, %v8314_v55  ;;  %v8494_v34 = vsel %vm7506_vm5, %v5823_v62, %v3070_v54  ;;  %v2618_v3 = vsel %vm7195_vm2, %v8361_v24, %v8356_v63  ;;  %v5824_v25 = vrot.slane %v5808_v20, 9  ;;  %v9885_v63 = vld [vmem:[#allocation6_spill] sm:$0xff] }
  0xcc   : > { %v5822_v21 = vrot.slane %v5806_v18, 9  ;;  %v8503_v17 = vsel %vm7506_vm5, %v3072_v44, %v3073_v0  ;;  %v3079_v11 = vrot.slane %v3077_v28, 4  ;;  %v9883_v45 = vrot.slane %v7702_v32, 5  ;;  %v5809_v18 = vld [vmem:[%s7164_s28 + $0x90] sm:$0xe]  ;;  %v7053_v62 = vld [vmem:[%s7164_s28 + $0x60] sm:$0xff]  }
  0xcd   : > { %6661 = vmatmul.mubr.bf16.gmra.mxu1 %v7030_v47  ;;  %v7034_v47 = vld [vmem:[%s7164_s28 + $0xa8] sm:$0xff]   ;;  %v9884_v55 = vrot.slane %v8326_v58, 9  ;;  %v3084_v24 = vrot.slane %v9885_v63, 5  ;;  %v8520_v32 = vsel %vm7506_vm5, %v5824_v25, %v3077_v28  ;;  %v3091_v54 = vrot.slane %v9887_v36, 5 }
  0xce   : > { %6664 = vmatprep.mubr.bf16.mxu1 %v7033_v5  ;;  %v7037_v5 = vld [vmem:[%s7164_s28 + $0xb4] sm:$0xff]   ;;  %v8478_v12 = vsel %vm7506_vm5, %v5822_v21, %v3063_v14  ;;  %v5800_v14 = vld [vmem:[%s7164_s28 + $0x24] sm:$0xe]  ;;  %v9886_v21 = vld [vmem:[#allocation7_spill] sm:$0xff]  ;;  %v8524_v58 = vsel %vm7506_vm5, %v3079_v11, %v3080_v26  ;;  %v5789_v0 = vcombine.low %v2608_v2, %v2618_v3  ;;  %v3011_v28 = vsel %vm7506_vm5, %v8304_v43, %v3010_v29 }
  0xcf   : > { %v3008_v13 = vsel %vm7506_vm5, %v9884_v55, %v9883_v45  ;;  %v3087_v9 = vrot.slane %v9886_v21, 5  ;;  %v3086_v44 = vrot.slane %v3084_v24, 4  ;;  %v7038_v45 = vld [vmem:[%s7164_s28 + $0xc0] sm:$0xff]   ;;  %v3016_v26 = vrot.slane %v3014_v38, 4  ;;  %v5810_v2 = vld [vmem:[%s7164_s28 + $0x9c] sm:$0xe] }
  0xd0   : > { %v3093_v3 = vrot.slane %v3091_v54, 4  ;;  %v5826_v11 = vrot.slane %v5810_v2, 9  ;;  %v9889_v55 = vld [vmem:[#allocation10_spill] sm:$0xff]  ;;  %v5811_v63 = vld [vmem:[%s7164_s28 + $0xa8] sm:$0xe]  ;;  %v5846_v21 = vcombine.low %v3008_v13, %v3011_v28  ;;  %v9893_v28 = vrot.slane %v8329_v48, 9 }
  0xd1   : > { %v8545_v25 = vsel %vm7506_vm5, %v3086_v44, %v3087_v9  ;;  %v3098_v42 = vrot.slane %v9889_v55, 5  ;;  %v8668_v43 = vld [vmem:[%s7164_s28 + $0x34] sm:$0xf] }
  0xd2   : > { %6713 = vmatmul.mubr.bf16.gmra.mxu0 %v5787_v52  ;;  %v8558_v9 = vsel %vm7506_vm5, %v5826_v11, %v3091_v54  ;;  %v5812_v54 = vld [vmem:[%s7164_s28 + $0xb4] sm:$0xe]  ;;  %v3932_v39 = vshll.u32 %v8668_v43, 16 }
  0xd3   : > { %6716 = vmatprep.mubr.bf16.mxu0 %v5788_v37  ;;  %v5825_v37 = vrot.slane %v5809_v18, 9  ;;  %v5816_v18 = vrot.slane %v5800_v14, 9  ;;  %v3100_v36 = vrot.slane %v3098_v42, 4  ;;  %v9890_v14 = vrot.slane %v9879_v35, 5 }
  0xd4   : > { %v5828_v55 = vrot.slane %v5812_v54, 9 }
  0xd5   : > { %6665 = vmatmul.mubr.bf16.gmra.mxu1 %v7034_v47  ;;  %v9888_v47 = vld [vmem:[#allocation9_spill] sm:$0xff]  ;;  %v3023_v44 = vrot.slane %v9890_v14, 4  ;;  %v9895_v61 = vmov %v9890_v14  ;;  %v3115_v14 = vrot.slane %v8297_v51, 5  ;;  %v5948_v51 = vld [vmem:[%s7164_s28 + $0x30] sm:$0xf] }
  0xd6   : > { %6668 = vmatprep.mubr.bf16.mxu1 %v7037_v5  ;;  %v3094_v20 = vrot.slane %v9888_v47, 5  ;;  %v8540_v5 = vsel %vm7506_vm5, %v5825_v37, %v3084_v24  ;;  %v3101_v24 = vrot.slane %v8216_v4, 5  ;;  %v5827_v37 = vrot.slane %v5811_v63, 9 }
  0xd7   : > { %v9894_v63 = vrot.slane %v7807_v23, 5  ;;  %v3022_v48 = vsel %vm7506_vm5, %v5816_v18, %v9895_v61  ;;  %v3025_v23 = vsel %vm7506_vm5, %v3023_v44, %v3024_v15  ;;  %v8638_v61 = vld [vmem:[%s7164_s28 + $0x28] sm:$0xf] }
  0xd8   : > { %v8552_v29 = vsel %vm7506_vm5, %v3093_v3, %v3094_v20  ;;  %v9891_v20 = vld [vmem:[#allocation11_spill] sm:$0xff]  ;;  %v8567_v4 = vsel %vm7506_vm5, %v5827_v37, %v3098_v42  ;;  %v8571_v13 = vsel %vm7506_vm5, %v3100_v36, %v3101_v24  ;;  %v3015_v3 = vsel %vm7506_vm5, %v9893_v28, %v3014_v38  ;;  %v5813_v37 = vld [vmem:[%s7164_s28 + $0xc0] sm:$0xe]  ;;  %v9896_v38 = vld [vmem:[#allocation13_spill] sm:$0xff] }
  0xd9   : > { %v3105_v2 = vrot.slane %v9891_v20, 5  ;;  %v3018_v24 = vsel %vm7506_vm5, %v3016_v26, %v9894_v63  ;;  %v3112_v36 = vrot.slane %v9896_v38, 5  ;;  %v5829_v18 = vrot.slane %v5813_v37, 9  ;;  %v7048_v20 = vld [vmem:[%s9807_s1 + $0x230] sm:$0xff]   ;;  %v5945_v63 = vld [vmem:[%s7164_s28 + $0x24] sm:$0xf] }
  0xda   : > { %6717 = vmatmul.mubr.bf16.gmra.mxu0 %v5789_v0  ;;  %v5847_v15 = vcombine.low %v3015_v3, %v3018_v24  ;;  %v5848_v54 = vcombine.low %v3022_v48, %v3025_v23  ;;  %v7047_v28 = vld [vmem:[%s9807_s1 + $0x1f0] sm:$0xff]   ;;  %v7046_v48 = vld [vmem:[%s7164_s28 + $0x3c] sm:$0xff]   ;;  %v3899_v37 = vshrl.u32 %v5945_v63, 16  ;;  %v7049_v38 = vld [vmem:[%s7164_s28 + $0x48] sm:$0xff]   ;;  %v3908_v23 = vshll.u32 %v8638_v61, 16 }
  0xdb   : > { %6784 = vmatprep.mubr.bf16.mxu0 %v7041_v8  ;;  %v9892_v8 = vld [vmem:[#allocation12_spill] sm:$0xff]  ;;  %v3107_v42 = vrot.slane %v3105_v2, 4  ;;  %v8602_v26 = vsel %vm7506_vm5, %v5828_v55, %v3105_v2  ;;  %v3114_v60 = vrot.slane %v3112_v36, 4  ;;  %v8615_v44 = vsel %vm7506_vm5, %v5829_v18, %v3112_v36  ;;  %v5942_v2 = vld [vmem:[%s7164_s28 + $0x18] sm:$0xf]  ;;  %v7052_v55 = vld [vmem:[%s9807_s1 + $0x228] sm:$0xff]  }
  0xdc   : > { %v3108_v0 = vrot.slane %v9892_v8, 5  ;;  %v3878_v24 = vshll.u32 %v5942_v2, 16  ;;  %v7051_v36 = vld [vmem:[%s9807_s1 + $0x1e8] sm:$0xff]   ;;  %v5944_v18 = vld [vmem:[%s7164_s28 + $0x20] sm:$0x1]  ;;  %v3901_v11 = vrot.slane %v3899_v37, 4 }
  0xdd   : > { %6669 = vmatmul.mubr.bf16.gmra.mxu1 %v7038_v45  ;;  %v7042_v45 = vld [vmem:[%s7164_s28 + $0x24] sm:$0xff]   ;;  %v8620_v8 = vsel %vm7506_vm5, %v3114_v60, %v3115_v14  ;;  %v3902_v14 = vshll.u32 %v5945_v63, 16  ;;  %v8658_v63 = vld [vmem:[%s7164_s28 + $0x2c] sm:$0x1]  ;;  %v3923_v37 = vshrl.u32 %v5948_v51, 16 }
  0xde   : > { %6736 = vmatprep.mubr.bf16.mxu1 %v5846_v21  ;;  %v7045_v21 = vld [vmem:[%s7164_s28 + $0x30] sm:$0xff]   ;;  %v8606_v35 = vsel %vm7506_vm5, %v3107_v42, %v3108_v0  ;;  %v8623_v0 = vld [vmem:[%s7164_s28 + $0x1c] sm:$0xf]  ;;  %v3875_v42 = vshrl.u32 %v5942_v2, 16 }
  0xdf   : > { %v4646_v3 = vrot.slane %v8623_v0, 5  ;;  %v3904_v47 = vrot.slane %v3902_v14, 5 }
  0xe0   : > { %v3877_v60 = vrot.slane %v3875_v42, 4  ;;  %v7055_v42 = vld [vmem:[%s9807_s1 + $0x1e0] sm:$0xff]  }
  0xe2   : > { %6785 = vmatmul.mubr.bf16.vlgmr.msra.gmra.mxu0 %v7042_v45  ;;  %v3888_v45 = vshrl.u32 %v8623_v0, 16 }
  0xe3   : > { %6865 = vmatpush3.bf16.msra.mxu0 %v8334_v49  ;;  %6788 = vmatprep.mubr.bf16.mxu0 %v7045_v21  ;;  %v3884_v49 = vshll.u32 %v8623_v0, 16  ;;  %v3912_v21 = vshrl.u32 %v8638_v61, 16 }
  0xe4   : > { %6866 = vmatprep.subr.bf16.mxu0 %v7048_v20 }
  0xe5   : > { %6737 = vmatmul.mubr.bf16.vlgmr.msra.gmra.mxu1 %v5847_v15  ;;  %v6030_v15 = vld [vmem:[%s7164_s28 + $0x18] sm:$0xe]  ;;  %v8653_v2 = vrot.slane %v3884_v49, 5  ;;  %v3894_v49 = vshll.u32 %v5944_v18, 16  ;;  %v3914_v0 = vrot.slane %v3912_v21, 4 }
  0xe6   : > { %6817 = vmatpush3.bf16.msra.mxu1 %v8344_v33  ;;  %6740 = vmatprep.mubr.bf16.mxu1 %v5848_v54  ;;  %v7056_v33 = vld [vmem:[%s9807_s1 + $0x220] sm:$0xff]   ;;  %v3890_v54 = vrot.slane %v3888_v45, 4  ;;  %v8665_v45 = vrot.slane %v3908_v23, 5  ;;  %v7060_v23 = vld [vmem:[%s9807_s1 + $0x218] sm:$0xff]  }
  0xe7   : > { %6818 = vmatprep.subr.bf16.mxu1 %v7047_v28  ;;  %6867 = vmatpush3.bf16.msra.mxu0 %v7048_v20  ;;  %v3880_v20 = vrot.slane %v3878_v24, 5 }
  0xe8   : > { %6868 = vmatprep.subr.bf16.mxu0 %v7052_v55  ;;  %v3891_v21 = vor.u32 %v3890_v54, %v8653_v2  ;;  %v3915_v54 = vor.u32 %v3914_v0, %v8665_v45 }
  0xea   : > { %6789 = vmatmul.mubr.bf16.gmra.mxu0 %v7046_v48  ;;  %6819 = vmatpush3.bf16.msra.mxu1 %v7047_v28  ;;  %v6046_v48 = vrot.slane %v6030_v15, 9  ;;  %v4649_v28 = vrot.slane %v5944_v18, 5  ;;  %v4648_v18 = vrot.slane %v4646_v3, 4  ;;  %v3918_v15 = vshll.u32 %v8658_v63, 16 }
  0xeb   : > { %6792 = vmatprep.mubr.bf16.mxu0 %v7049_v38  ;;  %6820 = vmatprep.subr.bf16.mxu1 %v7051_v36  ;;  %v3926_v38 = vshll.u32 %v5948_v51, 16  ;;  %v4653_v51 = vrot.slane %v8638_v61, 5  ;;  %v3936_v61 = vshrl.u32 %v8668_v43, 16 }
  0xec   : > { %6869 = vmatpush3.bf16.msra.mxu0 %v7052_v55  ;;  %v3881_v55 = vor.u32 %v3880_v20, %v3877_v60  ;;  %v7059_v60 = vld [vmem:[%s9807_s1 + $0x1d8] sm:$0xff]   ;;  %v8691_v20 = vrot.slane %v3894_v49, 5  ;;  %v7064_v49 = vld [vmem:[%s9807_s1 + $0x210] sm:$0xff]  }
  0xed   : > { %v8663_v24 = vpop.f32.mrf.mxu0  ;;  %6741 = vmatmul.mubr.bf16.gmra.mxu1 %v5849_v40  ;;  %6870 = vmatprep.subr.bf16.mxu0 %v7056_v33  ;;  %v8673_v14 = vpop.f32.mrf.mxu1  ;;  %v3905_v40 = vor.u32 %v3904_v47, %v3901_v11  ;;  %v3925_v47 = vrot.slane %v3923_v37, 4  ;;  %v3928_v11 = vrot.slane %v3926_v38, 5  ;;  %v8718_v37 = vld [vmem:[%s7164_s28 + $0x40] sm:$0xf]  ;;  %v4655_v50 = vrot.slane %v4653_v51, 4 }
  0xee   : > { %9897 = vst [vmem:[#allocation2_spill] sm:$0xff] %v8673_v14  ;;  %6744 = vmatprep.mubr.bf16.mxu1 %v5850_v41  ;;  %6821 = vmatpush3.bf16.msra.mxu1 %v7051_v36  ;;  %v8698_v41 = vsel %vm7506_vm5, %v6046_v48, %v4646_v3  ;;  %v5951_v36 = vld [vmem:[%s7164_s28 + $0x3c] sm:$0xf]  ;;  %v8707_v0 = vrot.slane %v3881_v55, 4  ;;  %v8713_v3 = vsel %vm7506_vm5, %v4648_v18, %v4649_v28  ;;  %v8715_v48 = vrot.slane %v3918_v15, 5  ;;  %v7063_v55 = vld [vmem:[%s9807_s1 + $0x1d0] sm:$0xff]  }
  0xef   : > { %v8684_v57 = vpop.f32.mrf.mxu0  ;;  %6822 = vmatprep.subr.bf16.mxu1 %v7055_v42  ;;  %v8702_v52 = vpop.f32.mrf.mxu1  ;;  %v8725_v22 = vrot.slane %v3905_v40, 4  ;;  %v4656_v28 = vrot.slane %v8658_v63, 5  ;;  %v3916_v18 = vrot.slane %v3915_v54, 4  ;;  %v8729_v15 = vld [vmem:[%s7164_s28 + $0x38] sm:$0x1]  ;;  %v3950_v30 = vshll.u32 %v5951_v36, 16 }
  0xf0   : > { %6871 = vmatpush3.bf16.msra.mxu0 %v7056_v33  ;;  %9898 = vst [vmem:[#allocation5_spill] sm:$0xff] %v8702_v52  ;;  %v8709_v33 = vrot.slane %v3891_v21, 4  ;;  %v6047_v21 = vrot.slane %v6031_v6, 9  ;;  %v3929_v1 = vor.u32 %v3928_v11, %v3925_v47  ;;  %v8733_v52 = vrot.slane %v3936_v61, 4  ;;  %v6032_v40 = vld [vmem:[%s7164_s28 + $0x30] sm:$0xe] }
  0xf1   : > { %6872 = vmatprep.subr.bf16.mxu0 %v7060_v23  ;;  %v8720_v38 = vpop.f32.mrf.mxu0  ;;  %v3956_v6 = vshll.u32 %v8718_v37, 16  ;;  %v3960_v63 = vshrl.u32 %v8718_v37, 16  ;;  %v8741_v54 = vpop.f32.mrf.mxu1  ;;  %v9901_v11 = vcombine.low %v8454_v31, %v8445_v19  ;;  %v7054_v61 = vld [vmem:[%s7164_s28 + $0x6c] sm:$0xff]   ;;  %v8774_v19 = vsel %vm7506_vm5, %v4655_v50, %v4656_v28  ;;  %v8792_v28 = vld [vmem:[%s7164_s28 + $0x44] sm:$0x1] }
  0xf2   : > { %6793 = vmatmul.mubr.bf16.gmra.mxu0 %v7050_v7  ;;  %6823 = vmatpush3.bf16.msra.mxu1 %v7055_v42  ;;  %v8731_v7 = vrot.slane %v3932_v39, 5  ;;  %v3947_v42 = vshrl.u32 %v5951_v36, 16  ;;  %9900 = vst [vmem:[#allocation4_spill] sm:$0xff] %v8741_v54  ;;  %v3887_v39 = vsel %vm7195_vm2, %v8707_v0, %v8653_v2  ;;  %v3897_v47 = vsel %vm7195_vm2, %v8709_v33, %v8691_v20  ;;  %v7057_v36 = vld [vmem:[%s7164_s28 + $0x78] sm:$0xff]   ;;  %v8785_v33 = vld [vmem:[%s7164_s28 + $0x4c] sm:$0xf] }
  0xf3   : > { %6796 = vmatprep.mubr.bf16.mxu0 %v7053_v62  ;;  %6824 = vmatprep.subr.bf16.mxu1 %v7059_v60  ;;  %v9899_v62 = vcombine.low %v8423_v10, %v8427_v59  ;;  %v4660_v59 = vrot.slane %v8668_v43, 5  ;;  %v3911_v2 = vsel %vm7195_vm2, %v8725_v22, %v8665_v45  ;;  %v8770_v20 = vsel %vm7506_vm5, %v6047_v21, %v4653_v51  ;;  %v5954_v43 = vld [vmem:[%s7164_s28 + $0x48] sm:$0xf]  ;;  %v8796_v54 = vpop.f32.mrf.mxu1  ;;  %v6033_v14 = vld [vmem:[%s7164_s28 + $0x3c] sm:$0xe] }
  0xf4   : > { %6873 = vmatpush3.bf16.msra.mxu0 %v7060_v23  ;;  %v7068_v23 = vld [vmem:[%s9807_s1 + $0x208] sm:$0xff]   ;;  %v3942_v31 = vshll.u32 %v8729_v15, 16  ;;  %v3921_v22 = vsel %vm7195_vm2, %v3916_v18, %v8715_v48  ;;  %v6048_v45 = vrot.slane %v6032_v40, 9  ;;  %v3949_v0 = vrot.slane %v3947_v42, 4  ;;  %9903 = vst [vmem:[#allocation6_spill] sm:$0xff] %v8796_v54  ;;  %v7071_v42 = vld [vmem:[%s9807_s1 + $0x1c0] sm:$0xff]  }
  0xf5   : > { %6745 = vmatmul.mubr.bf16.gmra.mxu1 %v9899_v62  ;;  %6874 = vmatprep.subr.bf16.mxu0 %v7064_v49  ;;  %v8762_v62 = vpop.f32.mrf.mxu0  ;;  %v3952_v51 = vrot.slane %v3950_v30, 5  ;;  %v8787_v50 = vrot.slane %v3929_v1, 4  ;;  %v3939_v21 = vor.u32 %v8733_v52, %v8731_v7  ;;  %v3962_v10 = vrot.slane %v3960_v63, 4  ;;  %v7072_v30 = vld [vmem:[%s9807_s1 + $0x200] sm:$0xff]  }
  0xf6   : > { %6748 = vmatprep.mubr.bf16.mxu1 %v9901_v11  ;;  %6825 = vmatpush3.bf16.msra.mxu1 %v7059_v60  ;;  %9902 = vst [vmem:[#allocation3_spill] sm:$0xff] %v8762_v62  ;;  %v7067_v60 = vld [vmem:[%s9807_s1 + $0x1c8] sm:$0xff]   ;;  %v8794_v11 = vrot.slane %v3956_v6, 5  ;;  %v4662_v48 = vrot.slane %v4660_v59, 4  ;;  %v3971_v1 = vshrl.u32 %v5954_v43, 16  ;;  %v3974_v18 = vshll.u32 %v5954_v43, 16 }
  0xf7   : > { %6826 = vmatprep.subr.bf16.mxu1 %v7063_v55  ;;  %v8807_v40 = vcombine.low %v3887_v39, %v3897_v47  ;;  %v3984_v63 = vshrl.u32 %v8785_v33, 16  ;;  %v8815_v43 = vrot.slane %v3942_v31, 5  ;;  %v3966_v54 = vshll.u32 %v8792_v28, 16  ;;  %v5957_v39 = vld [vmem:[%s7164_s28 + $0x54] sm:$0xf]  ;;  %v7058_v6 = vld [vmem:[%s7164_s28 + $0x84] sm:$0xff]  }
  0xf8   : > { %6875 = vmatpush3.bf16.msra.mxu0 %v7064_v49  ;;  %v4663_v49 = vrot.slane %v8729_v15, 5  ;;  %v8802_v52 = vpop.f32.mrf.mxu0  ;;  %v3980_v15 = vshll.u32 %v8785_v33, 16  ;;  %v4667_v31 = vrot.slane %v8718_v37, 5  ;;  %v9907_v37 = vcombine.low %v8478_v12, %v8482_v46  ;;  %v7061_v47 = vld [vmem:[%s7164_s28 + $0x90] sm:$0xff]  }
  0xf9   : > { %6876 = vmatprep.subr.bf16.mxu0 %v7068_v23  ;;  %9904 = vst [vmem:[#allocation7_spill] sm:$0xff] %v8802_v52 }
  0xfa   : > { %6797 = vmatmul.mubr.bf16.gmra.mxu0 %v7054_v61  ;;  %6827 = vmatpush3.bf16.msra.mxu1 %v7063_v55  ;;  %v8813_v61 = vcombine.low %v3911_v2, %v3921_v22  ;;  %v3953_v55 = vor.u32 %v3952_v51, %v3949_v0  ;;  %v3963_v2 = vor.u32 %v3962_v10, %v8794_v11  ;;  %v8831_v22 = vld [vmem:[%s7164_s28 + $0x58] sm:$0xf]  ;;  %v8838_v51 = vrot.slane %v3939_v21, 4 }
  0xfb   : > { %6800 = vmatprep.mubr.bf16.mxu0 %v7057_v36  ;;  %6828 = vmatprep.subr.bf16.mxu1 %v7067_v60  ;;  %v8826_v36 = vsel %vm7506_vm5, %v6048_v45, %v4660_v59  ;;  %v9905_v0 = vcombine.low %v8461_v16, %v8466_v53  ;;  %v8842_v59 = vsel %vm7506_vm5, %v4662_v48, %v4663_v49  ;;  %v3973_v45 = vrot.slane %v3971_v1, 4  ;;  %v8849_v16 = vpop.f32.mrf.mxu0  ;;  %v5956_v1 = vld [vmem:[%s7164_s28 + $0x50] sm:$0x1] }
  0xfc   : > { %6877 = vmatpush3.bf16.msra.mxu0 %v7068_v23  ;;  %v8836_v23 = vpop.f32.mrf.mxu1  ;;  %v3976_v10 = vrot.slane %v3974_v18, 5  ;;  %9908 = vst [vmem:[#allocation9_spill] sm:$0xff] %v8849_v16  ;;  %v6049_v53 = vrot.slane %v6033_v14, 9  ;;  %v3986_v21 = vrot.slane %v3984_v63, 4  ;;  %v3954_v48 = vrot.slane %v3953_v55, 4 }
  0xfd   : > { %6749 = vmatmul.mubr.bf16.gmra.mxu1 %v9905_v0  ;;  %9906 = vst [vmem:[#allocation8_spill] sm:$0xff] %v8836_v23  ;;  %6878 = vmatprep.subr.bf16.mxu0 %v7072_v30  ;;  %v8851_v0 = vrot.slane %v3980_v15, 5  ;;  %v3995_v23 = vshrl.u32 %v5957_v39, 16  ;;  %v3968_v49 = vrot.slane %v3966_v54, 5  ;;  %v3998_v18 = vshll.u32 %v5957_v39, 16  ;;  %v8867_v39 = vpop.f32.mrf.mxu0 }
  0xfe   : > { %6752 = vmatprep.mubr.bf16.mxu1 %v9907_v37  ;;  %6829 = vmatpush3.bf16.msra.mxu1 %v7067_v60  ;;  %v4004_v52 = vshll.u32 %v8831_v22, 16  ;;  %v3964_v12 = vrot.slane %v3963_v2, 4  ;;  %v4669_v46 = vrot.slane %v4667_v31, 4  ;;  %v4670_v37 = vrot.slane %v8792_v28, 5  ;;  %v8857_v60 = vpop.f32.mrf.mxu1  ;;  %v5960_v55 = vld [vmem:[%s7164_s28 + $0x60] sm:$0xf] }
  0xff   : > { %6830 = vmatprep.subr.bf16.mxu1 %v7071_v42  ;;  %v4008_v14 = vshrl.u32 %v8831_v22, 16  ;;  %9909 = vst [vmem:[#allocation10_spill] sm:$0xff] %v8857_v60  ;;  %v3945_v15 = vsel %vm7195_vm2, %v8838_v51, %v8815_v43  ;;  %v3977_v63 = vor.u32 %v3976_v10, %v3973_v45  ;;  %v3987_v28 = vor.u32 %v3986_v21, %v8851_v0  ;;  %v6034_v60 = vld [vmem:[%s7164_s28 + $0x48] sm:$0xe] }
 0x100   : > { %6879 = vmatpush3.bf16.msra.mxu0 %v7072_v30  ;;  %v4674_v30 = vrot.slane %v8785_v33, 5  ;;  %v3990_v2 = vshll.u32 %v5956_v1, 16  ;;  %v3997_v16 = vrot.slane %v3995_v23, 4  ;;  %v4000_v62 = vrot.slane %v3998_v18, 5  ;;  %v8892_v10 = vpop.f32.mrf.mxu1 }
 0x101   : > { %v3959_v43 = vsel %vm7195_vm2, %v3954_v48, %v8794_v11  ;;  %v8876_v33 = vsel %vm7506_vm5, %v6049_v53, %v4667_v31  ;;  %v3969_v51 = vsel %vm7195_vm2, %v3964_v12, %v3968_v49  ;;  %v8884_v23 = vsel %vm7506_vm5, %v4669_v46, %v4670_v37  ;;  %9911 = vst [vmem:[#allocation11_spill] sm:$0xff] %v8892_v10  ;;  %v8895_v49 = vld [vmem:[%s7164_s28 + $0x64] sm:$0xf]  ;;  %v7062_v12 = vld [vmem:[%s7164_s28 + $0x9c] sm:$0xff]   ;;  %v8901_v46 = vpop.f32.mrf.mxu0 }
 0x102   : > { %6801 = vmatmul.mubr.bf16.gmra.mxu0 %v7058_v6  ;;  %6831 = vmatpush3.bf16.msra.mxu1 %v7071_v42  ;;  %v8878_v6 = vrot.slane %v4004_v52, 5  ;;  %v4010_v42 = vrot.slane %v4008_v14, 4  ;;  %v4019_v45 = vshrl.u32 %v5960_v55, 16  ;;  %v4022_v11 = vshll.u32 %v5960_v55, 16  ;;  %v7065_v55 = vld [vmem:[%s7164_s28 + $0xa8] sm:$0xff]  }
 0x103   : > { %6804 = vmatprep.mubr.bf16.mxu0 %v7061_v47  ;;  %v8887_v47 = vld [vmem:[%s7164_s28 + $0x5c] sm:$0x1]  ;;  %v9910_v31 = vcombine.low %v8494_v34, %v8503_v17  ;;  %v3978_v52 = vrot.slane %v3977_v63, 4  ;;  %v6050_v53 = vrot.slane %v6034_v60, 9  ;;  %v4676_v21 = vrot.slane %v4674_v30, 4 }
 0x104   : > { %v4677_v48 = vrot.slane %v5956_v1, 5  ;;  %v9912_v18 = vcombine.low %v8520_v32, %v8524_v58  ;;  %v3988_v37 = vrot.slane %v3987_v28, 4  ;;  %v3992_v14 = vrot.slane %v3990_v2, 5  ;;  %v6035_v63 = vld [vmem:[%s7164_s28 + $0x54] sm:$0xe]  ;;  %v8919_v28 = vpop.f32.mrf.mxu1 }
 0x105   : > { %6753 = vmatmul.mubr.bf16.gmra.mxu1 %v9910_v31  ;;  %v4001_v34 = vor.u32 %v4000_v62, %v3997_v16  ;;  %v4681_v17 = vrot.slane %v8831_v22, 5  ;;  %v4011_v60 = vor.u32 %v4010_v42, %v8878_v6  ;;  %v4014_v1 = vshll.u32 %v8887_v47, 16  ;;  %9914 = vst [vmem:[#allocation12_spill] sm:$0xff] %v8919_v28  ;;  %v6036_v62 = vld [vmem:[%s7164_s28 + $0x60] sm:$0xe] }
 0x106   : > { %6756 = vmatprep.mubr.bf16.mxu1 %v9912_v18  ;;  %v4021_v31 = vrot.slane %v4019_v45, 4  ;;  %v4024_v54 = vrot.slane %v4022_v11, 5  ;;  %v9913_v32 = vsel %vm7195_vm2, %v8787_v50, %v8731_v7  ;;  %v4028_v22 = vshll.u32 %v8895_v49, 16 }
 0x107   : > { %v8913_v58 = vcombine.low %v9913_v32, %v3945_v15  ;;  %v4032_v16 = vshrl.u32 %v8895_v49, 16  ;;  %v8921_v2 = vcombine.low %v3959_v43, %v3969_v51  ;;  %v3983_v42 = vsel %vm7195_vm2, %v3978_v52, %v8851_v0  ;;  %v5963_v15 = vld [vmem:[%s7164_s28 + $0x6c] sm:$0xf]  ;;  %v8939_v32 = vld [vmem:[%s7164_s28 + $0x70] sm:$0xf] }
 0x108   : > { %v8928_v7 = vsel %vm7506_vm5, %v6050_v53, %v4674_v30  ;;  %v8932_v50 = vsel %vm7506_vm5, %v4676_v21, %v4677_v48  ;;  %v8935_v45 = vpop.f32.mrf.mxu0  ;;  %v4002_v43 = vrot.slane %v4001_v34, 4  ;;  %v6051_v51 = vrot.slane %v6035_v63, 9  ;;  %v5962_v53 = vld [vmem:[%s7164_s28 + $0x68] sm:$0x1] }
 0x109   : > { %9915 = vst [vmem:[#allocation13_spill] sm:$0xff] %v8935_v45  ;;  %v4683_v11 = vrot.slane %v4681_v17, 4  ;;  %v4684_v18 = vrot.slane %v8887_v47, 5  ;;  %v3993_v0 = vsel %vm7195_vm2, %v3988_v37, %v3992_v14  ;;  %v4012_v30 = vrot.slane %v4011_v60, 4  ;;  %v6038_v45 = vld [vmem:[%s7164_s28 + $0x78] sm:$0xe] }
 0x10a   : > { %6805 = vmatmul.mubr.bf16.gmra.mxu0 %v7062_v12  ;;  %v4016_v52 = vrot.slane %v4014_v1, 5  ;;  %v4025_v21 = vor.u32 %v4024_v54, %v4021_v31  ;;  %v8944_v48 = vrot.slane %v4028_v22, 5  ;;  %v4034_v12 = vrot.slane %v4032_v16, 4  ;;  %v7066_v31 = vld [vmem:[%s7164_s28 + $0xb4] sm:$0xff]  }
 0x10b   : > { %6808 = vmatprep.mubr.bf16.mxu0 %v7065_v55  ;;  %v4043_v34 = vshrl.u32 %v5963_v15, 16  ;;  %v4046_v63 = vshll.u32 %v5963_v15, 16  ;;  %v9916_v47 = vcombine.low %v8540_v5, %v8545_v25  ;;  %v4688_v14 = vrot.slane %v8895_v49, 5  ;;  %v8961_v5 = vpop.f32.mrf.mxu0 }
 0x10c   : > { %v4052_v54 = vshll.u32 %v8939_v32, 16  ;;  %v4056_v60 = vshrl.u32 %v8939_v32, 16  ;;  %v9918_v1 = vcombine.low %v8558_v9, %v8552_v29  ;;  %9919 = vst [vmem:[#allocation15_spill] sm:$0xff] %v8961_v5  ;;  %v8963_v25 = vcombine.low %v3983_v42, %v3993_v0  ;;  %v5966_v29 = vld [vmem:[%s7164_s28 + $0x78] sm:$0xf]  ;;  %v7069_v9 = vld [vmem:[%s7164_s28 + $0xc0] sm:$0xff]  }
 0x10d   : > { %6757 = vmatmul.mubr.bf16.gmra.mxu1 %v9916_v47  ;;  %v8950_v55 = vpop.f32.mrf.mxu1  ;;  %v4007_v22 = vsel %vm7195_vm2, %v4002_v43, %v8878_v6  ;;  %v8970_v49 = vsel %vm7506_vm5, %v6051_v51, %v4681_v17  ;;  %v8974_v16 = vsel %vm7506_vm5, %v4683_v11, %v4684_v18  ;;  %v4017_v15 = vsel %vm7195_vm2, %v4012_v30, %v4016_v52  ;;  %v8987_v43 = vld [vmem:[%s7164_s28 + $0x74] sm:$0x1]  ;;  %v9044_v5 = vld [vmem:[%s7164_s28 + $0x8c] sm:$0x1] }
 0x10e   : > { %9917 = vst [vmem:[#allocation14_spill] sm:$0xff] %v8950_v55  ;;  %6760 = vmatprep.mubr.bf16.mxu1 %v9918_v1  ;;  %v8980_v47 = vrot.slane %v4025_v21, 4  ;;  %v4038_v42 = vshll.u32 %v5962_v53, 16  ;;  %v6052_v0 = vrot.slane %v6036_v62, 9  ;;  %v8983_v1 = vld [vmem:[%s7164_s28 + $0x7c] sm:$0xf]  ;;  %v4035_v6 = vor.u32 %v4034_v12, %v8944_v48  ;;  %v8993_v21 = vpop.f32.mrf.mxu0 }
 0x10f   : > { %v4691_v17 = vrot.slane %v5962_v53, 5  ;;  %v4045_v51 = vrot.slane %v4043_v34, 4  ;;  %v4048_v11 = vrot.slane %v4046_v63, 5  ;;  %v8989_v18 = vpop.f32.mrf.mxu1  ;;  %v4690_v37 = vrot.slane %v4688_v14, 4  ;;  %9921 = vst [vmem:[#allocation17_spill] sm:$0xff] %v8993_v21 }
 0x110   : > { %9920 = vst [vmem:[#allocation16_spill] sm:$0xff] %v8989_v18  ;;  %v8991_v55 = vrot.slane %v4052_v54, 5  ;;  %v4058_v30 = vrot.slane %v4056_v60, 4  ;;  %v4067_v52 = vshrl.u32 %v5966_v29, 16  ;;  %v6037_v53 = vld [vmem:[%s7164_s28 + $0x6c] sm:$0xe]  ;;  %v9000_v18 = vcombine.low %v4007_v22, %v4017_v15 }
 0x111   : > { %v4070_v12 = vshll.u32 %v5966_v29, 16  ;;  %v4076_v34 = vshll.u32 %v8983_v1, 16  ;;  %v4080_v63 = vshrl.u32 %v8983_v1, 16  ;;  %v9002_v54 = vrot.slane %v4038_v42, 5  ;;  %v5969_v62 = vld [vmem:[%s7164_s28 + $0x84] sm:$0xf]  ;;  %v9023_v42 = vpop.f32.mrf.mxu1 }
 0x112   : > { %6809 = vmatmul.mubr.bf16.gmra.mxu0 %v7066_v31  ;;  %9922 = vst [vmem:[#allocation18_spill] sm:$0xff] %v9000_v18  ;;  %v9006_v60 = vsel %vm7506_vm5, %v6052_v0, %v4688_v14  ;;  %v4062_v31 = vshll.u32 %v8987_v43, 16  ;;  %v9014_v28 = vrot.slane %v4035_v6, 4  ;;  %v4695_v22 = vrot.slane %v8939_v32, 5  ;;  %v9018_v15 = vld [vmem:[%s7164_s28 + $0x88] sm:$0xf] }
 0x113   : > { %6812 = vmatprep.mubr.bf16.mxu0 %v7069_v9  ;;  %v4049_v9 = vor.u32 %v4048_v11, %v4045_v51  ;;  %v9923_v14 = vcombine.low %v8567_v4, %v8571_v13  ;;  %9924 = vst [vmem:[#allocation19_spill] sm:$0xff] %v9023_v42  ;;  %v7070_v0 = vld [vmem:[%s7164_s28 + $0xcc] sm:$0xff]   ;;  %v9028_v10 = vsel %vm7506_vm5, %v4690_v37, %v4691_v17  ;;  %v6053_v6 = vrot.slane %v6037_v53, 9  ;;  %v9031_v11 = vpop.f32.mrf.mxu0  ;;  %v9037_v4 = vld [vmem:[%s7164_s28 + $0x80] sm:$0x1] }
 0x114   : > { %v4059_v29 = vor.u32 %v4058_v30, %v8991_v55  ;;  %v4069_v51 = vrot.slane %v4067_v52, 4  ;;  %9925 = vst [vmem:[#allocation20_spill] sm:$0xff] %v9031_v11  ;;  %v9926_v32 = vcombine.low %v8602_v26, %v8606_v35  ;;  %v4072_v13 = vrot.slane %v4070_v12, 5 }
 0x115   : > { %6761 = vmatmul.mubr.bf16.gmra.mxu1 %v9923_v14  ;;  %v9039_v14 = vrot.slane %v4076_v34, 5  ;;  %v4082_v42 = vrot.slane %v4080_v63, 4  ;;  %v4091_v21 = vshrl.u32 %v5969_v62, 16  ;;  %v4064_v37 = vrot.slane %v4062_v31, 5 }
 0x116   : > { %6764 = vmatprep.mubr.bf16.mxu1 %v9926_v32  ;;  %v4698_v17 = vrot.slane %v8987_v43, 5  ;;  %v4094_v30 = vshll.u32 %v5969_v62, 16  ;;  %v4100_v52 = vshll.u32 %v9018_v15, 16  ;;  %v4050_v53 = vrot.slane %v4049_v9, 4  ;;  %v9047_v32 = vpop.f32.mrf.mxu1 }
 0x117   : > { %v4697_v11 = vrot.slane %v4695_v22, 4  ;;  %v4093_v26 = vrot.slane %v4091_v21, 4  ;;  %v4104_v35 = vshrl.u32 %v9018_v15, 16  ;;  %v4060_v12 = vrot.slane %v4059_v29, 4 }
 0x118   : > { %v4086_v34 = vshll.u32 %v9037_v4, 16  ;;  %v4096_v63 = vrot.slane %v4094_v30, 5  ;;  %v9050_v31 = vrot.slane %v4100_v52, 5  ;;  %v4073_v62 = vor.u32 %v4072_v13, %v4069_v51  ;;  %v6039_v52 = vld [vmem:[%s7164_s28 + $0x84] sm:$0xe] }
 0x119   : > { %v9052_v43 = vpop.f32.mrf.mxu0  ;;  %v4083_v9 = vor.u32 %v4082_v42, %v9039_v14  ;;  %v4702_v21 = vrot.slane %v8983_v1, 5  ;;  %v4106_v18 = vrot.slane %v4104_v35, 4  ;;  %v9927_v29 = vcombine.low %v8698_v41, %v8713_v3 }
 0x11a   : > { %6813 = vmatmul.mubr.bf16.gmra.mxu0 %v7070_v0  ;;  %v4041_v30 = vsel %vm7195_vm2, %v9014_v28, %v9002_v54  ;;  %v9068_v51 = vsel %vm7506_vm5, %v6053_v6, %v4695_v22  ;;  %v4110_v42 = vshll.u32 %v9044_v5, 16  ;;  %v4055_v41 = vsel %vm7195_vm2, %v4050_v53, %v8991_v55  ;;  %v5972_v54 = vld [vmem:[%s7164_s28 + $0x90] sm:$0xf] }
 0x11b   : > { %6880 = vmatprep.mubr.bf16.mxu0 %v9927_v29  ;;  %v9071_v1 = vpop.f32.mrf.mxu0  ;;  %v4097_v3 = vor.u32 %v4096_v63, %v4093_v26  ;;  %v4107_v13 = vor.u32 %v4106_v18, %v9050_v31  ;;  %v4709_v28 = vrot.slane %v9018_v15, 5  ;;  %v9929_v22 = vcombine.low %v8615_v44, %v8620_v8 }
 0x11c   : > { %v4065_v6 = vsel %vm7195_vm2, %v4060_v12, %v4064_v37  ;;  %v9089_v55 = vsel %vm7506_vm5, %v4697_v11, %v4698_v17  ;;  %v4088_v53 = vrot.slane %v4086_v34, 5  ;;  %v6054_v18 = vrot.slane %v6038_v45, 9  ;;  %v9098_v12 = vld [vmem:[%s7164_s28 + $0x94] sm:$0xf] }
 0x11d   : > { %v9080_v35 = vpop.f32.mrf.mxu1  ;;  %6765 = vmatmul.mubr.bf16.gmra.mxu1 %v9929_v22  ;;  %v9091_v26 = vpop.f32.mrf.mxu0  ;;  %v4074_v15 = vrot.slane %v4073_v62, 4  ;;  %v4084_v63 = vrot.slane %v4083_v9, 4  ;;  %v4704_v29 = vrot.slane %v4702_v21, 4  ;;  %v4705_v0 = vrot.slane %v9037_v4, 5 }
 0x11e   : > { %9928 = vst [vmem:[#allocation21_spill] sm:$0xff] %v9080_v35  ;;  %6832 = vmatprep.mubr.bf16.mxu1 %v8807_v40  ;;  %v4112_v8 = vrot.slane %v4110_v42, 5  ;;  %v6055_v37 = vrot.slane %v6039_v52, 9  ;;  %v4115_v11 = vshrl.u32 %v5972_v54, 16  ;;  %v4118_v17 = vshll.u32 %v5972_v54, 16 }
 0x11f   : > { %v9095_v44 = vpop.f32.mrf.mxu1  ;;  %v9100_v34 = vpop.f32.mrf.mxu0  ;;  %v4098_v45 = vrot.slane %v4097_v3, 4  ;;  %v4108_v22 = vrot.slane %v4107_v13, 4  ;;  %v4711_v40 = vrot.slane %v4709_v28, 4  ;;  %v4712_v62 = vrot.slane %v9044_v5, 5  ;;  %v9121_v54 = vld [vmem:[%s7164_s28 + $0x98] sm:$0x1] }
 0x120   : > { %9930 = vst [vmem:[#allocation22_spill] sm:$0xff] %v9095_v44  ;;  %v9932_v4 = vsel %vm7195_vm2, %v8980_v47, %v8944_v48  ;;  %v9112_v52 = vcombine.low %v4055_v41, %v4065_v6  ;;  %v9118_v13 = vsel %vm7506_vm5, %v6054_v18, %v4702_v21  ;;  %v4079_v48 = vsel %vm7195_vm2, %v4074_v15, %v9039_v14  ;;  %v5975_v41 = vld [vmem:[%s7164_s28 + $0x9c] sm:$0xf]  ;;  %v9138_v6 = vld [vmem:[%s7164_s28 + $0xa0] sm:$0xf] }
 0x121   : > { %v9103_v9 = vpop.f32.mrf.mxu1  ;;  %v9110_v42 = vcombine.low %v9932_v4, %v4041_v30  ;;  %v6594_v5 = vpop.f32.mrf.mxu0  ;;  %v4089_v47 = vsel %vm7195_vm2, %v4084_v63, %v4088_v53  ;;  %v9133_v30 = vsel %vm7506_vm5, %v4704_v29, %v4705_v0  ;;  %v4124_v21 = vshll.u32 %v9098_v12, 16  ;;  %v9225_v35 = vld [vmem:[%s7164_s28 + $0xb0] sm:$0x1] }
 0x122   : > { %9931 = vst [vmem:[#allocation23_spill] sm:$0xff] %v9103_v9  ;;  %v9933_v9 = vcombine.low %v8770_v20, %v8774_v19  ;;  %v9935_v20 = vcombine.low %v8826_v36, %v8842_v59  ;;  %v9147_v19 = vsel %vm7506_vm5, %v6055_v37, %v4709_v28  ;;  %v4117_v14 = vrot.slane %v4115_v11, 4  ;;  %v9162_v37 = vld [vmem:[%s7164_s28 + $0x90] sm:$0xe] }
 0x123   : > { %v9140_v18 = vpop.f32.mrf.mxu1  ;;  %v4120_v53 = vrot.slane %v4118_v17, 5  ;;  %v4128_v0 = vshrl.u32 %v9098_v12, 16  ;;  %v1641_v15 = vpop.f32.mrf.mxu0  ;;  %v4103_v63 = vsel %vm7195_vm2, %v4098_v45, %v9050_v31  ;;  %v4113_v29 = vsel %vm7195_vm2, %v4108_v22, %v4112_v8 }
 0x124   : > { %6881 = vmatmul.mubr.bf16.vlgmr.msra.gmra.mxu0 %v9933_v9  ;;  %9934 = vst [vmem:[#allocation24_spill] sm:$0xff] %v9140_v18  ;;  %v9157_v36 = vsel %vm7506_vm5, %v4711_v40, %v4712_v62  ;;  %v4134_v59 = vshll.u32 %v9121_v54, 16  ;;  %v4139_v11 = vshrl.u32 %v5975_v41, 16  ;;  %v4142_v17 = vshll.u32 %v5975_v41, 16 }
 0x125   : > { %6884 = vmatprep.mubr.bf16.mxu0 %v9935_v20  ;;  %v6546_v28 = vpop.f32.mrf.mxu1  ;;  %6833 = vmatmul.mubr.bf16.vlgmr.msra.gmra.mxu1 %v8813_v61  ;;  %v4148_v9 = vshll.u32 %v9138_v6, 16  ;;  %v4152_v31 = vshrl.u32 %v9138_v6, 16  ;;  %v6595_v45 = vpop.f32.mrf.mxu0  ;;  %v9168_v22 = vcombine.low %v4079_v48, %v4089_v47  ;;  %v9172_v40 = vrot.slane %v4124_v21, 5  ;;  %v9186_v61 = vld [vmem:[%s7164_s28 + $0xa4] sm:$0x1] }
 0x126   : > { %v1197_v8 = vadd.f32 %v6546_v28, %v8663_v24  ;;  %6836 = vmatprep.mubr.bf16.mxu1 %v8913_v58  ;;  %v9174_v4 = vcombine.low %v4103_v63, %v4113_v29  ;;  %v4121_v20 = vor.u32 %v4120_v53, %v4117_v14  ;;  %v4130_v24 = vrot.slane %v4128_v0, 4  ;;  %v5978_v28 = vld [vmem:[%s7164_s28 + $0xa8] sm:$0xf]  ;;  %v9191_v14 = vld [vmem:[%s7164_s28 + $0xac] sm:$0xf] }
 0x127   : > { %v1188_v62 = vpop.f32.mrf.mxu1  ;;  %v1644_v48 = vpop.f32.mrf.mxu0  ;;  %v9182_v47 = vrot.slane %v4134_v59, 5  ;;  %v6056_v21 = vrot.slane %v9162_v37, 9  ;;  %v4141_v29 = vrot.slane %v4139_v11, 4  ;;  %v4144_v18 = vrot.slane %v4142_v17, 5 }
 0x128   : > { %v9179_v3 = vadd.f32 %v6594_v5, %v1197_v8  ;;  %v1189_v58 = vadd.f32 %v1188_v62, %v8684_v57  ;;  %v9188_v44 = vrot.slane %v4148_v9, 5  ;;  %v4154_v41 = vrot.slane %v4152_v31, 4  ;;  %v9941_v62 = vld [vmem:[#allocation3_spill] sm:$0xff] }
 0x129   : > { %v6547_v63 = vpop.f32.mrf.mxu1  ;;  %v6598_v5 = vpop.f32.mrf.mxu0  ;;  %v9938_v0 = vcombine.low %v8876_v33, %v8884_v23  ;;  %v4163_v59 = vshrl.u32 %v5978_v28, 16  ;;  %v4166_v37 = vshll.u32 %v5978_v28, 16  ;;  %v9939_v11 = vcombine.low %v8928_v7, %v8932_v50 }
 0x12a   : > { %9936 = vst [vmem:[#allocation25_spill] sm:$0xff] %v9179_v3  ;;  %v9193_v53 = vadd.f32 %v1641_v15, %v1189_v58  ;;  %v1200_v57 = vadd.f32 %v6547_v63, %v8720_v38  ;;  %v9202_v17 = vrot.slane %v4121_v20, 4  ;;  %v4131_v15 = vor.u32 %v4130_v24, %v9172_v40  ;;  %v6041_v58 = vld [vmem:[%s7164_s28 + $0x9c] sm:$0xe] }
 0x12b   : > { %v1191_v8 = vpop.f32.mrf.mxu1  ;;  %v4716_v9 = vrot.slane %v9098_v12, 5  ;;  %v4158_v38 = vshll.u32 %v9186_v61, 16  ;;  %v1657_v23 = vpop.f32.mrf.mxu0  ;;  %v4719_v28 = vrot.slane %v9121_v54, 5  ;;  %v4172_v63 = vshll.u32 %v9191_v14, 16 }
 0x12c   : > { %9937 = vst [vmem:[#allocation26_spill] sm:$0xff] %v9193_v53  ;;  %6885 = vmatmul.mubr.bf16.gmra.mxu0 %v9938_v0  ;;  %v9207_v31 = vadd.f32 %v6595_v45, %v1200_v57  ;;  %v1192_v33 = vadd.f32 %v1191_v8, %v9941_v62  ;;  %v4145_v50 = vor.u32 %v4144_v18, %v4141_v29  ;;  %v4723_v12 = vrot.slane %v9138_v6, 5  ;;  %v9942_v57 = vld [vmem:[#allocation7_spill] sm:$0xff]  ;;  %v9943_v6 = vld [vmem:[#allocation9_spill] sm:$0xff] }
 0x12d   : > { %6888 = vmatprep.mubr.bf16.mxu0 %v9939_v11  ;;  %v6550_v7 = vpop.f32.mrf.mxu1  ;;  %6837 = vmatmul.mubr.bf16.gmra.mxu1 %v8921_v2  ;;  %v4155_v20 = vor.u32 %v4154_v41, %v9188_v44  ;;  %v4176_v45 = vshrl.u32 %v9191_v14, 16  ;;  %v6599_v8 = vpop.f32.mrf.mxu0  ;;  %v4165_v54 = vrot.slane %v4163_v59, 4  ;;  %v4168_v11 = vrot.slane %v4166_v37, 5 }
 0x12e   : > { %9940 = vst [vmem:[#allocation27_spill] sm:$0xff] %v9207_v31  ;;  %v9217_v24 = vadd.f32 %v1644_v48, %v1192_v33  ;;  %v1213_v0 = vadd.f32 %v6550_v7, %v9942_v57  ;;  %6840 = vmatprep.mubr.bf16.mxu1 %v8963_v25  ;;  %v4132_v31 = vrot.slane %v4131_v15, 4  ;;  %v4718_v2 = vrot.slane %v4716_v9, 4 }
 0x12f   : > { %v1204_v62 = vpop.f32.mrf.mxu1  ;;  %v4160_v18 = vrot.slane %v4158_v38, 5  ;;  %v6057_v29 = vrot.slane %v6041_v58, 9  ;;  %v1660_v3 = vpop.f32.mrf.mxu0  ;;  %v9227_v48 = vrot.slane %v4172_v63, 5  ;;  %v4178_v33 = vrot.slane %v4176_v45, 4 }
 0x130   : > { %v9221_v41 = vadd.f32 %v6598_v5, %v1213_v0  ;;  %v1205_v53 = vadd.f32 %v1204_v62, %v9943_v6  ;;  %v4146_v57 = vrot.slane %v4145_v50, 4  ;;  %v4156_v25 = vrot.slane %v4155_v20, 4 }
 0x131   : > { %v6551_v7 = vpop.f32.mrf.mxu1  ;;  %v4725_v59 = vrot.slane %v4723_v12, 4  ;;  %v4726_v37 = vrot.slane %v9186_v61, 5  ;;  %v6602_v38 = vpop.f32.mrf.mxu0  ;;  %v9944_v58 = vcombine.low %v8970_v49, %v8974_v16  ;;  %v9238_v63 = vsel %vm7506_vm5, %v6056_v21, %v4716_v9  ;;  %v6042_v21 = vld [vmem:[%s7164_s28 + $0xa8] sm:$0xe] }
 0x132   : > { %v9230_v15 = vadd.f32 %v1657_v23, %v1205_v53  ;;  %v1216_v5 = vadd.f32 %v6551_v7, %v8867_v39  ;;  %v4169_v50 = vor.u32 %v4168_v11, %v4165_v54  ;;  %v9945_v20 = vcombine.low %v9006_v60, %v9028_v10 }
 0x133   : > { %v1207_v45 = vpop.f32.mrf.mxu1  ;;  %v4127_v39 = vsel %vm7195_vm2, %v9202_v17, %v9172_v40  ;;  %v4137_v49 = vsel %vm7195_vm2, %v4132_v31, %v9182_v47  ;;  %v9252_v16 = vsel %vm7506_vm5, %v4718_v2, %v4719_v28  ;;  %v4182_v61 = vshll.u32 %v9225_v35, 16  ;;  %v1673_v60 = vpop.f32.mrf.mxu0  ;;  %v5981_v17 = vld [vmem:[%s7164_s28 + $0xb4] sm:$0xf]  ;;  %v9946_v47 = vld [vmem:[#allocation18_spill] sm:$0xff]  ;;  %v9281_v2 = vld [vmem:[%s7164_s28 + $0xb8] sm:$0xf] }
 0x134   : > { %6889 = vmatmul.mubr.bf16.gmra.mxu0 %v9944_v58  ;;  %v9256_v53 = vadd.f32 %v6599_v8, %v1216_v5  ;;  %v1208_v10 = vadd.f32 %v1207_v45, %v8901_v46  ;;  %v4179_v9 = vor.u32 %v4178_v33, %v9227_v48  ;;  %v4730_v40 = vrot.slane %v9191_v14, 5  ;;  %v9947_v8 = vld [vmem:[#allocation13_spill] sm:$0xff] }
 0x135   : > { %6892 = vmatprep.mubr.bf16.mxu0 %v9945_v20  ;;  %v6554_v23 = vpop.f32.mrf.mxu1  ;;  %6841 = vmatmul.mubr.bf16.gmra.mxu1 %v9946_v47  ;;  %v4151_v31 = vsel %vm7195_vm2, %v4146_v57, %v9188_v44  ;;  %v4161_v28 = vsel %vm7195_vm2, %v4156_v25, %v4160_v18  ;;  %v9270_v46 = vsel %vm7506_vm5, %v6057_v29, %v4723_v12  ;;  %v6603_v11 = vpop.f32.mrf.mxu0  ;;  %v4170_v62 = vrot.slane %v4169_v50, 4  ;;  %v9948_v57 = vld [vmem:[#allocation15_spill] sm:$0xff]  ;;  %v9952_v47 = vld [vmem:[#allocation20_spill] sm:$0xff] }
 0x136   : > { %v9274_v0 = vsel %vm7506_vm5, %v4725_v59, %v4726_v37  ;;  %v9276_v14 = vadd.f32 %v1660_v3, %v1208_v10  ;;  %v1229_v54 = vadd.f32 %v6554_v23, %v9947_v8  ;;  %6844 = vmatprep.mubr.bf16.mxu1 %v9110_v42  ;;  %v6058_v44 = vrot.slane %v6042_v21, 9 }
 0x137   : > { %v1220_v18 = vpop.f32.mrf.mxu1  ;;  %v4184_v6 = vrot.slane %v4182_v61, 5  ;;  %v4733_v12 = vrot.slane %v9225_v35, 5  ;;  %v4187_v29 = vshrl.u32 %v5981_v17, 16  ;;  %v4190_v33 = vshll.u32 %v5981_v17, 16  ;;  %v1676_v25 = vpop.f32.mrf.mxu0 }
 0x138   : > { %v9284_v7 = vadd.f32 %v6602_v38, %v1229_v54  ;;  %v1221_v3 = vadd.f32 %v1220_v18, %v9948_v57  ;;  %v4180_v59 = vrot.slane %v4179_v9, 4  ;;  %v4732_v37 = vrot.slane %v4730_v40, 4  ;;  %v9949_v38 = vld [vmem:[#allocation17_spill] sm:$0xff] }
 0x139   : > { %v6555_v42 = vpop.f32.mrf.mxu1  ;;  %v9287_v5 = vcombine.low %v4127_v39, %v4137_v49  ;;  %v6088_v58 = vcombine.low %v9238_v63, %v9252_v16  ;;  %v9291_v50 = vcombine.low %v4151_v31, %v4161_v28  ;;  %v4196_v35 = vshll.u32 %v9281_v2, 16  ;;  %v6606_v61 = vpop.f32.mrf.mxu0  ;;  %v5984_v49 = vld [vmem:[%s7164_s28 + $0xc0] sm:$0xf]  ;;  %v9305_v16 = vld [vmem:[%s7164_s28 + $0xc4] sm:$0xf] }
 0x13a   : > { %v9294_v45 = vadd.f32 %v1673_v60, %v1221_v3  ;;  %v1232_v20 = vadd.f32 %v6555_v42, %v9949_v38  ;;  %v9950_v21 = vcombine.low %v9068_v51, %v9089_v55  ;;  %v6089_v39 = vcombine.low %v9270_v46, %v9274_v0  ;;  %v9957_v46 = vld [vmem:[#allocation6_spill] sm:$0xff] }
 0x13b   : > { %v4200_v63 = vshrl.u32 %v9281_v2, 16  ;;  %v1223_v10 = vpop.f32.mrf.mxu1  ;;  %v9951_v60 = vcombine.low %v9118_v13, %v9133_v30  ;;  %v4175_v51 = vsel %vm7195_vm2, %v4170_v62, %v9227_v48  ;;  %v9315_v55 = vsel %vm7506_vm5, %v6058_v44, %v4730_v40  ;;  %v1689_v28 = vpop.f32.mrf.mxu0  ;;  %v9327_v30 = vld [vmem:[%s7164_s28 + $0xbc] sm:$0x1]  ;;  %v6043_v48 = vld [vmem:[%s7164_s28 + $0xb4] sm:$0xe] }
 0x13c   : > { %6893 = vmatmul.mubr.bf16.gmra.mxu0 %v9950_v21  ;;  %v4189_v9 = vrot.slane %v4187_v29, 4  ;;  %v4192_v17 = vrot.slane %v4190_v33, 5  ;;  %v9317_v23 = vadd.f32 %v6603_v11, %v1232_v20  ;;  %v1224_v31 = vadd.f32 %v1223_v10, %v9952_v47  ;;  %v9349_v20 = vld [vmem:[%s7164_s28 + $0xc8] sm:$0x1] }
 0x13d   : > { %6896 = vmatprep.mubr.bf16.mxu0 %v9951_v60  ;;  %v4185_v8 = vsel %vm7195_vm2, %v4180_v59, %v4184_v6  ;;  %v9324_v13 = vsel %vm7506_vm5, %v4732_v37, %v4733_v12  ;;  %v6558_v54 = vpop.f32.mrf.mxu1  ;;  %6845 = vmatmul.mubr.bf16.gmra.mxu1 %v9112_v52  ;;  %v9331_v40 = vrot.slane %v4196_v35, 5  ;;  %v4211_v11 = vshrl.u32 %v5984_v49, 16  ;;  %v6607_v29 = vpop.f32.mrf.mxu0 }
 0x13e   : > { %v4214_v62 = vshll.u32 %v5984_v49, 16  ;;  %v4220_v44 = vshll.u32 %v9305_v16, 16  ;;  %v9334_v18 = vadd.f32 %v1676_v25, %v1224_v31  ;;  %v1245_v6 = vadd.f32 %v6558_v54, %v9052_v43  ;;  %6848 = vmatprep.mubr.bf16.mxu1 %v9168_v22 }
 0x13f   : > { %v4202_v12 = vrot.slane %v4200_v63, 4  ;;  %v4224_v33 = vshrl.u32 %v9305_v16, 16  ;;  %v1236_v57 = vpop.f32.mrf.mxu1  ;;  %v4193_v3 = vor.u32 %v4192_v17, %v4189_v9  ;;  %v4206_v52 = vshll.u32 %v9327_v30, 16  ;;  %v1692_v43 = vpop.f32.mrf.mxu0  ;;  %v5987_v9 = vld [vmem:[%s7164_s28 + $0xcc] sm:$0xf] }
 0x140   : > { %v6059_v59 = vrot.slane %v6043_v48, 9  ;;  %v4737_v37 = vrot.slane %v9281_v2, 5  ;;  %v9341_v42 = vadd.f32 %v6606_v61, %v1245_v6  ;;  %v1237_v25 = vadd.f32 %v1236_v57, %v9071_v1  ;;  %v6044_v48 = vld [vmem:[%s7164_s28 + $0xc0] sm:$0xe] }
 0x141   : > { %v9344_v35 = vcombine.low %v4175_v51, %v4185_v8  ;;  %v6090_v22 = vcombine.low %v9315_v55, %v9324_v13  ;;  %v6559_v38 = vpop.f32.mrf.mxu1  ;;  %v4213_v21 = vrot.slane %v4211_v11, 4  ;;  %v4216_v63 = vrot.slane %v4214_v62, 5  ;;  %v6610_v10 = vpop.f32.mrf.mxu0  ;;  %v9371_v8 = vld [vmem:[%s7164_s28 + $0xd0] sm:$0xf] }
 0x142   : > { %v9351_v49 = vrot.slane %v4220_v44, 5  ;;  %v4226_v2 = vrot.slane %v4224_v33, 4  ;;  %v9353_v61 = vadd.f32 %v1689_v28, %v1237_v25  ;;  %v1248_v1 = vadd.f32 %v6559_v38, %v9091_v26 }
 0x143   : > { %v9953_v60 = vcombine.low %v9147_v19, %v9157_v36  ;;  %v4203_v51 = vor.u32 %v4202_v12, %v9331_v40  ;;  %v4740_v55 = vrot.slane %v9327_v30, 5  ;;  %v1239_v17 = vpop.f32.mrf.mxu1  ;;  %v9362_v47 = vrot.slane %v4193_v3, 4  ;;  %v1705_v13 = vpop.f32.mrf.mxu0 }
 0x144   : > { %v9364_v31 = vrot.slane %v4206_v52, 5  ;;  %v9368_v26 = vsel %vm7506_vm5, %v6059_v59, %v4737_v37  ;;  %v4739_v28 = vrot.slane %v4737_v37, 4  ;;  %v9373_v19 = vadd.f32 %v6607_v29, %v1248_v1  ;;  %v9954_v29 = vld [vmem:[#allocation2_spill] sm:$0xff] }
 0x145   : > { %6897 = vmatmul.mubr.bf16.gmra.mxu0 %v9953_v60  ;;  %v1240_v36 = vadd.f32 %v1239_v17, %v9100_v34  ;;  %v4230_v30 = vshll.u32 %v9349_v20, 16  ;;  %v6562_v54 = vpop.f32.mrf.mxu1  ;;  %6849 = vmatmul.mubr.bf16.gmra.mxu1 %v9174_v4  ;;  %v4217_v11 = vor.u32 %v4216_v63, %v4213_v21  ;;  %v4227_v62 = vor.u32 %v4226_v2, %v9351_v49  ;;  %v6611_v57 = vpop.f32.mrf.mxu0 }
 0x146   : > { %6900 = vmatprep.mubr.bf16.mxu0 %v6088_v58  ;;  %v4744_v58 = vrot.slane %v9305_v16, 5  ;;  %v4235_v44 = vshrl.u32 %v5987_v9, 16  ;;  %v4238_v6 = vshll.u32 %v5987_v9, 16  ;;  %v1261_v33 = vadd.f32 %v6562_v54, %v9954_v29  ;;  %6852 = vmatprep.mubr.bf16.mxu1 %v9287_v5 }
 0x147   : > { %v9381_v12 = vadd.f32 %v1692_v43, %v1240_v36  ;;  %v4244_v34 = vshll.u32 %v9371_v8, 16  ;;  %v4248_v3 = vshrl.u32 %v9371_v8, 16  ;;  %v1252_v16 = vpop.f32.mrf.mxu1  ;;  %v4204_v52 = vrot.slane %v4203_v51, 4  ;;  %v9955_v43 = vld [vmem:[#allocation5_spill] sm:$0xff]  ;;  %v1708_v21 = vpop.f32.mrf.mxu0  ;;  %v9956_v36 = vld [vmem:[#allocation4_spill] sm:$0xff] }
 0x148   : > { %v4741_v4 = vsel %vm7506_vm5, %v4739_v28, %v4740_v55  ;;  %v6060_v59 = vrot.slane %v6044_v48, 9  ;;  %v4747_v37 = vrot.slane %v9349_v20, 5  ;;  %v9390_v25 = vadd.f32 %v6610_v10, %v1261_v33  ;;  %v5989_v20 = vld [vmem:[%s7164_s28 + $0xd4] sm:$0x1] }
 0x149   : > { %v1253_v38 = vadd.f32 %v1252_v16, %v9955_v43  ;;  %v4232_v63 = vrot.slane %v4230_v30, 5  ;;  %v4746_v5 = vrot.slane %v4744_v58, 4  ;;  %v6563_v2 = vpop.f32.mrf.mxu1  ;;  %v4218_v1 = vrot.slane %v4217_v11, 4 }
 0x14a   : > { %v4228_v60 = vrot.slane %v4227_v62, 4  ;;  %v4237_v9 = vrot.slane %v4235_v44, 4  ;;  %v4240_v17 = vrot.slane %v4238_v6, 5  ;;  %v1264_v55 = vadd.f32 %v6563_v2, %v9956_v36  ;;  %v6614_v28 = vpop.f32.mrf.mxu0  ;;  %v6045_v6 = vld [vmem:[%s7164_s28 + $0xcc] sm:$0xe]  ;;  %s6136_s28 = sshll.u32 %s10035_s15, 7 }
 0x14b   : > { %v9393_v51 = vadd.f32 %v1705_v13, %v1253_v38  ;;  %v9400_v10 = vrot.slane %v4244_v34, 5  ;;  %v4250_v30 = vrot.slane %v4248_v3, 4  ;;  %v1255_v48 = vpop.f32.mrf.mxu1  ;;  %v4199_v13 = vsel %vm7195_vm2, %v9362_v47, %v9331_v40  ;;  %s9707_s21 = scalar_lea.vmem %s9808_s2, %s6136_s28 }
 0x14c   : > { %v4209_v54 = vsel %vm7195_vm2, %v4204_v52, %v9364_v31  ;;  %v4751_v11 = vrot.slane %v9371_v8, 5  ;;  %v9410_v62 = vadd.f32 %v6611_v57, %v1264_v55  ;;  %v1256_v0 = vadd.f32 %v1255_v48, %v9957_v46  ;;  %v9958_v57 = vld [vmem:[#allocation8_spill] sm:$0xff] }
 0x14d   : > { %6901 = vmatmul.mubr.bf16.gmra.mxu0 %v6089_v39  ;;  %v1721_v39 = vpop.f32.mrf.mxu0  ;;  %v4745_v44 = vsel %vm7506_vm5, %v6060_v59, %v4744_v58  ;;  %v6566_v29 = vpop.f32.mrf.mxu1  ;;  %6853 = vmatmul.mubr.bf16.gmra.mxu1 %v9291_v50  ;;  %v6091_v40 = vcombine.low %v9368_v26, %v4741_v4  ;;  %v4223_v47 = vsel %vm7195_vm2, %v4218_v1, %v9351_v49  ;;  %v4254_v8 = vshll.u32 %v5989_v20, 16  ;;  %v9961_v48 = vld [vmem:[#allocation12_spill] sm:$0xff] }
 0x14e   : > { %6904 = vmatprep.mubr.bf16.mxu0 %v6090_v22  ;;  %v4748_v22 = vsel %vm7506_vm5, %v4746_v5, %v4747_v37  ;;  %v4241_v31 = vor.u32 %v4240_v17, %v4237_v9  ;;  %v9423_v33 = vadd.f32 %v1708_v21, %v1256_v0  ;;  %v1277_v34 = vadd.f32 %v6566_v29, %v9958_v57  ;;  %v9959_v37 = vld [vmem:[#allocation10_spill] sm:$0xff]  ;;  %v9960_v9 = vld [vmem:[#allocation11_spill] sm:$0xff] }
 0x14f   : > { %v6615_v58 = vpop.f32.mrf.mxu0  ;;  %6856 = vmatprep.mubr.bf16.mxu1 %v9344_v35  ;;  %v4233_v3 = vsel %vm7195_vm2, %v4228_v60, %v4232_v63  ;;  %v4251_v50 = vor.u32 %v4250_v30, %v9400_v10  ;;  %v1268_v16 = vpop.f32.mrf.mxu1  ;;  %v6092_v26 = vcombine.low %v4745_v44, %v4748_v22  ;;  %v6061_v52 = vrot.slane %v6045_v6, 9  ;;  %v9962_v44 = vld [vmem:[#allocation14_spill] sm:$0xff] }
 0x150   : > { %v4753_v4 = vrot.slane %v4751_v11, 4  ;;  %v4754_v59 = vrot.slane %v5989_v20, 5  ;;  %v9430_v49 = vadd.f32 %v6614_v28, %v1277_v34  ;;  %v1269_v43 = vadd.f32 %v1268_v16, %v9959_v37  ;;  %v9965_v37 = vld [vmem:[#allocation21_spill] sm:$0xff] }
 0x151   : > { %v1724_v38 = vpop.f32.mrf.mxu0  ;;  %v6567_v21 = vpop.f32.mrf.mxu1  ;;  %v6019_v5 = vcombine.low %v4199_v13, %v4209_v54  ;;  %v6020_v2 = vcombine.low %v4223_v47, %v4233_v3  ;;  %v4242_v1 = vrot.slane %v4241_v31, 4  ;;  %v4252_v17 = vrot.slane %v4251_v50, 4  ;;  %v9963_v47 = vld [vmem:[#allocation16_spill] sm:$0xff] }
 0x152   : > { %v9433_v35 = vadd.f32 %v1721_v39, %v1269_v43  ;;  %v1280_v63 = vadd.f32 %v6567_v21, %v9960_v9  ;;  %v4256_v36 = vrot.slane %v4254_v8, 5  ;;  %v4752_v28 = vsel %vm7506_vm5, %v6061_v52, %v4751_v11 }
 0x153   : > { %v6618_v60 = vpop.f32.mrf.mxu0  ;;  %v1271_v55 = vpop.f32.mrf.mxu1  ;;  %v4755_v20 = vsel %vm7506_vm5, %v4753_v4, %v4754_v59  ;;  %v4247_v0 = vsel %vm7195_vm2, %v4242_v1, %v9400_v10  ;;  %v9964_v10 = vld [vmem:[#allocation19_spill] sm:$0xff] }
 0x154   : > { %v9440_v30 = vadd.f32 %v6615_v58, %v1280_v63  ;;  %v1272_v13 = vadd.f32 %v1271_v55, %v9961_v48  ;;  %v4257_v56 = vsel %vm7195_vm2, %v4252_v17, %v4256_v36  ;;  %v6093_v11 = vcombine.low %v4752_v28, %v4755_v20  ;;  %v9967_v17 = vld [vmem:[#allocation23_spill] sm:$0xff]  ;;  %v9968_v20 = vld [vmem:[#allocation24_spill] sm:$0xff] }
 0x155   : > { %6905 = vmatmul.mubr.bf16.gmra.mxu0 %v6091_v40  ;;  %v1737_v54 = vpop.f32.mrf.mxu0  ;;  %v6570_v46 = vpop.f32.mrf.mxu1  ;;  %6857 = vmatmul.mubr.bf16.gmra.mxu1 %v6019_v5  ;;  %v6021_v34 = vcombine.low %v4247_v0, %v4257_v56  ;;  %v9969_v0 = vld [vmem:[#allocation25_spill] sm:$0xff] }
 0x156   : > { %6908 = vmatprep.mubr.bf16.mxu0 %v6092_v26  ;;  %v9446_v39 = vadd.f32 %v1724_v38, %v1272_v13  ;;  %v1293_v22 = vadd.f32 %v6570_v46, %v9962_v44  ;;  %6860 = vmatprep.mubr.bf16.mxu1 %v6020_v2  ;;  %v9966_v2 = vld [vmem:[#allocation22_spill] sm:$0xff] }
 0x157   : > { %v6619_v6 = vpop.f32.mrf.mxu0  ;;  %v1284_v29 = vpop.f32.mrf.mxu1 }
 0x158   : > { %v9451_v40 = vadd.f32 %v6618_v60, %v1293_v22  ;;  %v1285_v31 = vadd.f32 %v1284_v29, %v9963_v47 }
 0x159   : > { %v1740_v8 = vpop.f32.mrf.mxu0  ;;  %v6571_v57 = vpop.f32.mrf.mxu1 }
 0x15a   : > { %v9454_v58 = vadd.f32 %v1737_v54, %v1285_v31  ;;  %v1296_v3 = vadd.f32 %v6571_v57, %v9964_v10  ;;  %v9971_v57 = vld [vmem:[#allocation27_spill] sm:$0xff] }
 0x15b   : > { %v6622_v50 = vpop.f32.mrf.mxu0  ;;  %v1287_v16 = vpop.f32.mrf.mxu1 }
 0x15c   : > { %v9457_v26 = vadd.f32 %v6619_v6, %v1296_v3  ;;  %v1288_v27 = vadd.f32 %v1287_v16, %v9047_v32 }
 0x15d   : > { %6909 = vmatmul.mubr.bf16.gmra.mxu0 %v6093_v11  ;;  %v1753_v52 = vpop.f32.mrf.mxu0  ;;  %v6574_v4 = vpop.f32.mrf.mxu1  ;;  %6861 = vmatmul.mubr.bf16.gmra.mxu1 %v6021_v34  ;;  %v9970_v11 = vld [vmem:[#allocation26_spill] sm:$0xff] }
 0x15e   : > { %v9460_v59 = vadd.f32 %v1740_v8, %v1288_v27  ;;  %v1309_v43 = vadd.f32 %v6574_v4, %v9965_v37 }
 0x15f   : > { %v6623_v38 = vpop.f32.mrf.mxu0  ;;  %v1300_v21 = vpop.f32.mrf.mxu1 }
 0x160   : > { %v9463_v5 = vadd.f32 %v6622_v50, %v1309_v43  ;;  %v1301_v1 = vadd.f32 %v1300_v21, %v9966_v2 }
 0x161   : > { %v1756_v9 = vpop.f32.mrf.mxu0  ;;  %v6575_v63 = vpop.f32.mrf.mxu1 }
 0x162   : > { %v9466_v60 = vadd.f32 %v1753_v52, %v1301_v1  ;;  %v1312_v36 = vadd.f32 %v6575_v63, %v9967_v17 }
 0x163   : > { %v6690_v32 = vpop.f32.mrf.mxu0  ;;  %v1303_v55 = vpop.f32.mrf.mxu1 }
 0x164   : > { %v9469_v28 = vadd.f32 %v6623_v38, %v1312_v36  ;;  %v1304_v48 = vadd.f32 %v1303_v55, %v9968_v20 }
 0x165   : > { %v2782_v13 = vpop.f32.mrf.mxu0  ;;  %v6642_v54 = vpop.f32.mrf.mxu1 }
 0x166   : > { %v9472_v46 = vadd.f32 %v1756_v9, %v1304_v48  ;;  %v2157_v44 = vadd.f32 %v6642_v54, %v9969_v0 }
 0x167   : > { %v6691_v22 = vpop.f32.mrf.mxu0  ;;  %v2028_v6 = vpop.f32.mrf.mxu1 }
 0x168   : > { %v9475_v56 = vadd.f32 %v6690_v32, %v2157_v44  ;;  %v2155_v29 = vadd.f32 %v2028_v6, %v9970_v11 }
 0x169   : > { %v2785_v47 = vpop.f32.mrf.mxu0  ;;  %v6643_v31 = vpop.f32.mrf.mxu1 }
 0x16a   : > { %v9478_v8 = vadd.f32 %v2782_v13, %v2155_v29  ;;  %v2158_v34 = vadd.f32 %v6643_v31, %v9971_v57 }
 0x16b   : > { %v6694_v10 = vpop.f32.mrf.mxu0  ;;  %v2031_v3 = vpop.f32.mrf.mxu1 }
 0x16c   : > { %v9481_v50 = vadd.f32 %v6691_v22, %v2158_v34  ;;  %v2156_v16 = vadd.f32 %v2031_v3, %v9217_v24 }
 0x16d   : > { %v2798_v27 = vpop.f32.mrf.mxu0  ;;  %v6646_v52 = vpop.f32.mrf.mxu1 }
 0x16e   : > { %v9484_v4 = vadd.f32 %v2785_v47, %v2156_v16  ;;  %v2161_v37 = vadd.f32 %v6646_v52, %v9221_v41 }
 0x16f   : > { %v6695_v43 = vpop.f32.mrf.mxu0  ;;  %v2044_v38 = vpop.f32.mrf.mxu1 }
 0x170   : > { %v9487_v21 = vadd.f32 %v6694_v10, %v2161_v37  ;;  %v2159_v2 = vadd.f32 %v2044_v38, %v9230_v15 }
 0x171   : > { %v2801_v1 = vpop.f32.mrf.mxu0  ;;  %v6647_v9 = vpop.f32.mrf.mxu1 }
 0x172   : > { %v9490_v63 = vadd.f32 %v2798_v27, %v2159_v2  ;;  %v2162_v17 = vadd.f32 %v6647_v9, %v9256_v53 }
 0x173   : > { %v6698_v36 = vpop.f32.mrf.mxu0  ;;  %v2047_v24 = vpop.f32.mrf.mxu1 }
 0x174   : > { %v9493_v32 = vadd.f32 %v6695_v43, %v2162_v17  ;;  %v2160_v55 = vadd.f32 %v2047_v24, %v9276_v14 }
 0x175   : > { %v2814_v20 = vpop.f32.mrf.mxu0  ;;  %v6650_v41 = vpop.f32.mrf.mxu1 }
 0x176   : > { %v9496_v48 = vadd.f32 %v2801_v1, %v2160_v55  ;;  %v2165_v13 = vadd.f32 %v6650_v41, %v9284_v7 }
 0x177   : > { %v6699_v54 = vpop.f32.mrf.mxu0  ;;  %v2060_v15 = vpop.f32.mrf.mxu1 }
 0x178   : > { %v9499_v0 = vadd.f32 %v6698_v36, %v2165_v13  ;;  %v2163_v44 = vadd.f32 %v2060_v15, %v9294_v45 }
 0x179   : > { %v2817_v22 = vpop.f32.mrf.mxu0  ;;  %v6651_v53 = vpop.f32.mrf.mxu1 }
 0x17a   : > { %v9502_v6 = vadd.f32 %v2814_v20, %v2163_v44  ;;  %v2166_v11 = vadd.f32 %v6651_v53, %v9317_v23 }
 0x17b   : > { %v6702_v29 = vpop.f32.mrf.mxu0  ;;  %v2063_v14 = vpop.f32.mrf.mxu1 }
 0x17c   : > { %v9505_v47 = vadd.f32 %v6699_v54, %v2166_v11  ;;  %v2164_v31 = vadd.f32 %v2063_v14, %v9334_v18 }
 0x17d   : > { %v2830_v57 = vpop.f32.mrf.mxu0  ;;  %v6654_v7 = vpop.f32.mrf.mxu1 }
 0x17e   : > { %v9508_v34 = vadd.f32 %v2817_v22, %v2164_v31  ;;  %v2169_v10 = vadd.f32 %v6654_v7, %v9341_v42 }
 0x17f   : > { %v6703_v3 = vpop.f32.mrf.mxu0  ;;  %v2076_v45 = vpop.f32.mrf.mxu1 }
 0x180   : > { %v9511_v16 = vadd.f32 %v6702_v29, %v2169_v10  ;;  %v2167_v27 = vadd.f32 %v2076_v45, %v9353_v61 }
 0x181   : > { %v2833_v52 = vpop.f32.mrf.mxu0  ;;  %v6655_v23 = vpop.f32.mrf.mxu1 }
 0x182   : > { %v9514_v37 = vadd.f32 %v2830_v57, %v2167_v27  ;;  %v2170_v43 = vadd.f32 %v6655_v23, %v9373_v19 }
 0x183   : > { %v6706_v38 = vpop.f32.mrf.mxu0  ;;  %v2079_v18 = vpop.f32.mrf.mxu1 }
 0x184   : > { %v9517_v2 = vadd.f32 %v6703_v3, %v2170_v43  ;;  %v2168_v1 = vadd.f32 %v2079_v18, %v9381_v12 }
 0x185   : > { %v2846_v9 = vpop.f32.mrf.mxu0  ;;  %v6658_v42 = vpop.f32.mrf.mxu1 }
 0x186   : > { %v9520_v17 = vadd.f32 %v2833_v52, %v2168_v1  ;;  %v2173_v36 = vadd.f32 %v6658_v42, %v9390_v25 }
 0x187   : > { %v6707_v24 = vpop.f32.mrf.mxu0  ;;  %v2092_v61 = vpop.f32.mrf.mxu1 }
 0x188   : > { %v9523_v55 = vadd.f32 %v6706_v38, %v2173_v36  ;;  %v2171_v20 = vadd.f32 %v2092_v61, %v9393_v51 }
 0x189   : > { %v2849_v41 = vpop.f32.mrf.mxu0  ;;  %v6659_v19 = vpop.f32.mrf.mxu1 }
 0x18a   : > { %v9526_v13 = vadd.f32 %v2846_v9, %v2171_v20  ;;  %v2174_v54 = vadd.f32 %v6659_v19, %v9410_v62 }
 0x18b   : > { %v6710_v15 = vpop.f32.mrf.mxu0  ;;  %v2095_v12 = vpop.f32.mrf.mxu1 }
 0x18c   : > { %v9529_v44 = vadd.f32 %v6707_v24, %v2174_v54  ;;  %v2172_v22 = vadd.f32 %v2095_v12, %v9423_v33 }
 0x18d   : > { %v2862_v53 = vpop.f32.mrf.mxu0  ;;  %v6662_v25 = vpop.f32.mrf.mxu1 }
 0x18e   : > { %v9532_v11 = vadd.f32 %v2849_v41, %v2172_v22  ;;  %v2177_v29 = vadd.f32 %v6662_v25, %v9430_v49 }
 0x18f   : > { %v6711_v14 = vpop.f32.mrf.mxu0  ;;  %v2108_v51 = vpop.f32.mrf.mxu1 }
 0x190   : > { %v9535_v31 = vadd.f32 %v6710_v15, %v2177_v29  ;;  %v2175_v57 = vadd.f32 %v2108_v51, %v9433_v35 }
 0x191   : > { %v2865_v7 = vpop.f32.mrf.mxu0  ;;  %v6663_v62 = vpop.f32.mrf.mxu1 }
 0x192   : > { %v9538_v10 = vadd.f32 %v2862_v53, %v2175_v57  ;;  %v2178_v3 = vadd.f32 %v6663_v62, %v9440_v30 }
 0x193   : > { %v6714_v45 = vpop.f32.mrf.mxu0  ;;  %v2111_v33 = vpop.f32.mrf.mxu1 }
 0x194   : > { %9972 = vst [vmem:[#allocation3_spill] sm:$0xff] %v9538_v10  ;;  %v9541_v27 = vadd.f32 %v6711_v14, %v2178_v3  ;;  %v2176_v52 = vadd.f32 %v2111_v33, %v9446_v39 }
 0x195   : > { %v2878_v23 = vpop.f32.mrf.mxu0  ;;  %v6666_v49 = vpop.f32.mrf.mxu1 }
 0x196   : > { %9973 = vst [vmem:[#allocation7_spill] sm:$0xff] %v9541_v27  ;;  %v9544_v43 = vadd.f32 %v2865_v7, %v2176_v52  ;;  %v2181_v38 = vadd.f32 %v6666_v49, %v9451_v40 }
 0x197   : > { %v6715_v18 = vpop.f32.mrf.mxu0  ;;  %v2124_v35 = vpop.f32.mrf.mxu1 }
 0x198   : > { %9974 = vst [vmem:[#allocation9_spill] sm:$0xff] %v9544_v43  ;;  %v9547_v1 = vadd.f32 %v6714_v45, %v2181_v38  ;;  %v2179_v9 = vadd.f32 %v2124_v35, %v9454_v58 }
 0x199   : > { %v2881_v42 = vpop.f32.mrf.mxu0  ;;  %v6667_v30 = vpop.f32.mrf.mxu1 }
 0x19a   : > { %v9550_v36 = vadd.f32 %v2878_v23, %v2179_v9  ;;  %v2182_v24 = vadd.f32 %v6667_v30, %v9457_v26 }
 0x19b   : > { %v6718_v61 = vpop.f32.mrf.mxu0  ;;  %v2127_v39 = vpop.f32.mrf.mxu1 }
 0x19c   : > { %9975 = vst [vmem:[#allocation18_spill] sm:$0xff] %v9550_v36  ;;  %v9553_v20 = vadd.f32 %v6715_v18, %v2182_v24  ;;  %v2180_v41 = vadd.f32 %v2127_v39, %v9460_v59 }
 0x19d   : > { %v2894_v19 = vpop.f32.mrf.mxu0  ;;  %v6670_v40 = vpop.f32.mrf.mxu1 }
 0x19e   : > { %9976 = vst [vmem:[#allocation13_spill] sm:$0xff] %v9553_v20  ;;  %v9556_v54 = vadd.f32 %v2881_v42, %v2180_v41  ;;  %v2185_v15 = vadd.f32 %v6670_v40, %v9463_v5 }
 0x19f   : > { %v6719_v12 = vpop.f32.mrf.mxu0  ;;  %v2140_v58 = vpop.f32.mrf.mxu1 }
 0x1a0   : > { %9977 = vst [vmem:[#allocation15_spill] sm:$0xff] %v9556_v54  ;;  %v9559_v22 = vadd.f32 %v6718_v61, %v2185_v15  ;;  %v2183_v53 = vadd.f32 %v2140_v58, %v9466_v60 }
 0x1a1   : > { %v2897_v25 = vpop.f32.mrf.mxu0  ;;  %v6671_v26 = vpop.f32.mrf.mxu1 }
 0x1a2   : > { %v9562_v29 = vadd.f32 %v2894_v19, %v2183_v53  ;;  %v2186_v14 = vadd.f32 %v6671_v26, %v9469_v28 }
 0x1a3   : > { %v6786_v51 = vpop.f32.mrf.mxu0  ;;  %v2143_v59 = vpop.f32.mrf.mxu1 }
 0x1a4   : > { %9978 = vst [vmem:[#allocation17_spill] sm:$0xff] %v9562_v29  ;;  %v9565_v57 = vadd.f32 %v6719_v12, %v2186_v14  ;;  %v2184_v7 = vadd.f32 %v2143_v59, %v9472_v46 }
 0x1a5   : > { %v3667_v62 = vpop.f32.mrf.mxu0  ;;  %v6738_v5 = vpop.f32.mrf.mxu1 }
 0x1a6   : > { %9979 = vst [vmem:[#allocation20_spill] sm:$0xff] %v9565_v57  ;;  %v9568_v3 = vadd.f32 %v2897_v25, %v2184_v7  ;;  %v3409_v45 = vadd.f32 %v6738_v5, %v9475_v56 }
 0x1a7   : > { %v9571_v33 = vpop.f32.mrf.mxu0  ;;  %v3280_v60 = vpop.f32.mrf.mxu1 }
 0x1a8   : > { %9980 = vst [vmem:[#allocation2_spill] sm:$0xff] %v9568_v3  ;;  %v9573_v52 = vadd.f32 %v6786_v51, %v3409_v45  ;;  %v3407_v23 = vadd.f32 %v3280_v60, %v9478_v8 }
 0x1a9   : > { %v9576_v28 = vpop.f32.mrf.mxu0  ;;  %v9578_v49 = vpop.f32.mrf.mxu1 }
 0x1aa   : > { %v9580_v38 = vadd.f32 %v3667_v62, %v3407_v23 }
 0x1ab   : > { %v6790_v46 = vpop.f32.mrf.mxu0  ;;  %v9582_v18 = vpop.f32.mrf.mxu1 }
 0x1ad   : > { %v9584_v35 = vpop.f32.mrf.mxu0  ;;  %v6742_v9 = vpop.f32.mrf.mxu1 }
 0x1ae   : > { %v3413_v56 = vadd.f32 %v6742_v9, %v9487_v21 }
 0x1af   : > { %v9587_v42 = vpop.f32.mrf.mxu0  ;;  %v9589_v30 = vpop.f32.mrf.mxu1 }
 0x1b0   : > { %v9591_v24 = vadd.f32 %v6790_v46, %v3413_v56 }
 0x1b1   : > { %v9593_v8 = vpop.f32.mrf.mxu0  ;;  %v9595_v61 = vpop.f32.mrf.mxu1 }
 0x1b3   : > { %v6794_v39 = vpop.f32.mrf.mxu0  ;;  %v9597_v41 = vpop.f32.mrf.mxu1 }
 0x1b5   : > { %v9599_v19 = vpop.f32.mrf.mxu0  ;;  %v6746_v40 = vpop.f32.mrf.mxu1 }
 0x1b6   : > { %v3417_v15 = vadd.f32 %v6746_v40, %v9499_v0 }
 0x1b7   : > { %v9602_v12 = vpop.f32.mrf.mxu0  ;;  %v9604_v21 = vpop.f32.mrf.mxu1 }
 0x1b8   : > { %v9606_v58 = vadd.f32 %v6794_v39, %v3417_v15 }
 0x1b9   : > { %v9608_v53 = vpop.f32.mrf.mxu0  ;;  %v9610_v25 = vpop.f32.mrf.mxu1 }
 0x1bb   : > { %v6798_v26 = vpop.f32.mrf.mxu0  ;;  %v9612_v14 = vpop.f32.mrf.mxu1 }
 0x1bd   : > { %v9614_v51 = vpop.f32.mrf.mxu0  ;;  %v6750_v59 = vpop.f32.mrf.mxu1 }
 0x1be   : > { %v3421_v7 = vadd.f32 %v6750_v59, %v9511_v16 }
 0x1bf   : > { %v9617_v62 = vpop.f32.mrf.mxu0  ;;  %v9619_v0 = vpop.f32.mrf.mxu1 }
 0x1c0   : > { %v9621_v5 = vadd.f32 %v6798_v26, %v3421_v7 }
 0x1c1   : > { %v9623_v45 = vpop.f32.mrf.mxu0  ;;  %v9625_v60 = vpop.f32.mrf.mxu1 }
 0x1c3   : > { %v6802_v23 = vpop.f32.mrf.mxu0  ;;  %v9627_v46 = vpop.f32.mrf.mxu1 }
 0x1c5   : > { %v9629_v9 = vpop.f32.mrf.mxu0  ;;  %v6754_v56 = vpop.f32.mrf.mxu1 }
 0x1c6   : > { %v3425_v39 = vadd.f32 %v6754_v56, %v9523_v55 }
 0x1c7   : > { %v9632_v40 = vpop.f32.mrf.mxu0  ;;  %v9634_v16 = vpop.f32.mrf.mxu1 }
 0x1c8   : > { %v9636_v15 = vadd.f32 %v6802_v23, %v3425_v39 }
 0x1c9   : > { %v9638_v26 = vpop.f32.mrf.mxu0  ;;  %v9640_v59 = vpop.f32.mrf.mxu1 }
 0x1ca   : > { %9981 = vst [vmem:[#allocation5_spill] sm:$0xff] %v9638_v26 }
 0x1cb   : > { %v6806_v7 = vpop.f32.mrf.mxu0  ;;  %v9642_v3 = vpop.f32.mrf.mxu1 }
 0x1cd   : > { %v9644_v57 = vpop.f32.mrf.mxu0  ;;  %v6758_v29 = vpop.f32.mrf.mxu1 }
 0x1ce   : > { %9982 = vst [vmem:[#allocation4_spill] sm:$0xff] %v9644_v57  ;;  %v3429_v54 = vadd.f32 %v6758_v29, %v9535_v31 }
 0x1cf   : > { %v9647_v20 = vpop.f32.mrf.mxu0  ;;  %v9649_v55 = vpop.f32.mrf.mxu1 }
 0x1d0   : > { %9983 = vst [vmem:[#allocation6_spill] sm:$0xff] %v9647_v20  ;;  %v9651_v56 = vadd.f32 %v6806_v7, %v3429_v54 }
 0x1d1   : > { %v9653_v23 = vpop.f32.mrf.mxu0  ;;  %v9655_v39 = vpop.f32.mrf.mxu1 }
 0x1d2   : > { %9984 = vst [vmem:[#allocation8_spill] sm:$0xff] %v9651_v56  ;;  %9985 = vst [vmem:[#allocation10_spill] sm:$0xff] %v9653_v23 }
 0x1d3   : > { %9986 = vst [vmem:[#allocation11_spill] sm:$0xff] %v9655_v39  ;;  %v6810_v36 = vpop.f32.mrf.mxu0  ;;  %v9657_v43 = vpop.f32.mrf.mxu1 }
 0x1d4   : > { %9987 = vst [vmem:[#allocation12_spill] sm:$0xff] %v9657_v43 }
 0x1d5   : > { %v9659_v27 = vpop.f32.mrf.mxu0  ;;  %v6762_v10 = vpop.f32.mrf.mxu1 }
 0x1d6   : > { %9988 = vst [vmem:[#allocation14_spill] sm:$0xff] %v9659_v27  ;;  %v3433_v57 = vadd.f32 %v6762_v10, %v9547_v1 }
 0x1d7   : > { %v9662_v26 = vpop.f32.mrf.mxu0  ;;  %v9664_v31 = vpop.f32.mrf.mxu1 }
 0x1d8   : > { %9989 = vst [vmem:[#allocation16_spill] sm:$0xff] %v9662_v26  ;;  %v9666_v29 = vadd.f32 %v6810_v36, %v3433_v57 }
 0x1d9   : > { %v9668_v54 = vpop.f32.mrf.mxu0  ;;  %v9670_v7 = vpop.f32.mrf.mxu1 }
 0x1da   : > { %9990 = vst [vmem:[#allocation19_spill] sm:$0xff] %v9666_v29  ;;  %9991 = vst [vmem:[#allocation21_spill] sm:$0xff] %v9668_v54 }
 0x1db   : > { %9992 = vst [vmem:[#allocation22_spill] sm:$0xff] %v9670_v7  ;;  %v6814_v23 = vpop.f32.mrf.mxu0  ;;  %v9672_v56 = vpop.f32.mrf.mxu1 }
 0x1dc   : > { %9993 = vst [vmem:[#allocation23_spill] sm:$0xff] %v9672_v56 }
 0x1dd   : > { %v9674_v20 = vpop.f32.mrf.mxu0  ;;  %v6766_v43 = vpop.f32.mrf.mxu1 }
 0x1de   : > { %9994 = vst [vmem:[#allocation24_spill] sm:$0xff] %v9674_v20  ;;  %v3437_v27 = vadd.f32 %v6766_v43, %v9559_v22  ;;  %v3410_v20 = vadd.f32 %v9578_v49, %v9481_v50  ;;  %v3408_v43 = vadd.f32 %v9582_v18, %v9484_v4  ;;  %v3411_v49 = vadd.f32 %v9589_v30, %v9490_v63 }
 0x1df   : > { %v9677_v39 = vpop.f32.mrf.mxu0  ;;  %v9679_v10 = vpop.f32.mrf.mxu1  ;;  %v3414_v4 = vadd.f32 %v9595_v61, %v9493_v32 }
 0x1e0   : > { %9995 = vst [vmem:[#allocation25_spill] sm:$0xff] %v9677_v39  ;;  %9996 = vst [vmem:[#allocation26_spill] sm:$0xff] %v9679_v10  ;;  %v9681_v1 = vadd.f32 %v6814_v23, %v3437_v27  ;;  %v3797_v27 = vadd.f32 %v9571_v33, %v3410_v20  ;;  %v3798_v32 = vadd.f32 %v9584_v35, %v3411_v49 }
 0x1e1   : > { %v9683_v36 = vpop.f32.mrf.mxu0  ;;  %v9685_v57 = vpop.f32.mrf.mxu1  ;;  %v3801_v61 = vadd.f32 %v9587_v42, %v3414_v4  ;;  %v3418_v49 = vadd.f32 %v9610_v25, %v9505_v47 }
 0x1e2   : > { %9997 = vst [vmem:[#allocation27_spill] sm:$0xff] %v9681_v1  ;;  %9998 = vst [vmem:[#allocation28_spill] sm:$0xff] %v9683_v36 }
 0x1e3   : > { %9999 = vst [vmem:[#allocation29_spill] sm:$0xff] %v9685_v57  ;;  %v9687_v29 = vpop.f32.mrf.mxu1 }
 0x1e4   : > { %v6882_v54 = vpop.f32.mrf.mxu0  ;;  %10000 = vst [vmem:[#allocation30_spill] sm:$0xff] %v9687_v29  ;;  %v3795_v29 = vadd.f32 %v9576_v28, %v3408_v43 }
 0x1e5   : > { %v6834_v56 = vpop.f32.mrf.mxu1 }
 0x1e6   : > { %v4919_v26 = vpop.f32.mrf.mxu0  ;;  %v4550_v23 = vadd.f32 %v6834_v56, %v9573_v52 }
 0x1e7   : > { %v4421_v39 = vpop.f32.mrf.mxu1 }
 0x1e8   : > { %v6883_v22 = vpop.f32.mrf.mxu0  ;;  %v4548_v36 = vadd.f32 %v4421_v39, %v9580_v38  ;;  %v5048_v7 = vadd.f32 %v6882_v54, %v4550_v23  ;;  %v3412_v38 = vadd.f32 %v9597_v41, %v9496_v48 }
 0x1e9   : > { %v6835_v57 = vpop.f32.mrf.mxu1 }
 0x1ea   : > { %v4922_v1 = vpop.f32.mrf.mxu0  ;;  %v4551_v10 = vadd.f32 %v6835_v57, %v3797_v27  ;;  %v5046_v20 = vadd.f32 %v4919_v26, %v4548_v36  ;;  %v3799_v57 = vadd.f32 %v9593_v8, %v3412_v38  ;;  %v5278_v27 = vmul.f32 %v5048_v7, %v5048_v7 }
 0x1eb   : > { %v4424_v18 = vpop.f32.mrf.mxu1 }
 0x1ec   : > { %v6886_v50 = vpop.f32.mrf.mxu0  ;;  %v5049_v33 = vadd.f32 %v6883_v22, %v4551_v10  ;;  %v4549_v52 = vadd.f32 %v4424_v18, %v3795_v29  ;;  %v5276_v54 = vmul.f32 %v5046_v20, %v5046_v20 }
 0x1ed   : > { %v6838_v28 = vpop.f32.mrf.mxu1 }
 0x1ee   : > { %v4935_v56 = vpop.f32.mrf.mxu0  ;;  %v6177_v63 = vpack.c.bf16 %v5049_v33, %v5048_v7  ;;  %v5047_v30 = vadd.f32 %v4922_v1, %v4549_v52  ;;  %v4554_v26 = vadd.f32 %v6838_v28, %v9591_v24  ;;  %v3415_v1 = vadd.f32 %v9604_v21, %v9502_v6 }
 0x1ef   : > { %v4437_v29 = vpop.f32.mrf.mxu1  ;;  %v5279_v4 = vmul.f32 %v5049_v33, %v5049_v33 }
 0x1f0   : > { %v6887_v39 = vpop.f32.mrf.mxu0  ;;  %6249 = vst [vmem:[%s9707_s21 + $0x8] sm:$0xff] %v6177_v63   ;;  %v6172_v48 = vpack.c.bf16 %v5047_v30, %v5046_v20  ;;  %v5238_v41 = vadd.f32 %v5047_v30, %v5046_v20  ;;  %v5277_v10 = vmul.f32 %v5047_v30, %v5047_v30  ;;  %v4552_v43 = vadd.f32 %v4437_v29, %v3798_v32 }
 0x1f1   : > { %v6839_v22 = vpop.f32.mrf.mxu1  ;;  %v5052_v18 = vadd.f32 %v6886_v50, %v4554_v26  ;;  %v3802_v63 = vadd.f32 %v9599_v19, %v3415_v1  ;;  %v3805_v26 = vadd.f32 %v9602_v12, %v3418_v49 }
 0x1f2   : > { %v4938_v36 = vpop.f32.mrf.mxu0  ;;  %6173 = vst [vmem:[%s9707_s21] sm:$0xff] %v6172_v48   ;;  %v5239_v35 = vadd.f32 %v5238_v41, %v5048_v7  ;;  %v5308_v42 = vadd.f32 %v5277_v10, %v5276_v54  ;;  %v4555_v23 = vadd.f32 %v6839_v22, %v3801_v61  ;;  %v5050_v20 = vadd.f32 %v4935_v56, %v4552_v43 }
 0x1f3   : > { %v4440_v52 = vpop.f32.mrf.mxu1  ;;  %v3416_v7 = vadd.f32 %v9612_v14, %v9508_v34  ;;  %v5282_v43 = vmul.f32 %v5052_v18, %v5052_v18 }
 0x1f4   : > { %v6890_v24 = vpop.f32.mrf.mxu0  ;;  %v5309_v28 = vadd.f32 %v5308_v42, %v5278_v27  ;;  %v5240_v8 = vadd.f32 %v5239_v35, %v5049_v33  ;;  %v5053_v38 = vadd.f32 %v6887_v39, %v4555_v23  ;;  %v4553_v6 = vadd.f32 %v4440_v52, %v3799_v57 }
 0x1f5   : > { %v6842_v30 = vpop.f32.mrf.mxu1  ;;  %v5280_v61 = vmul.f32 %v5050_v20, %v5050_v20  ;;  %v3803_v10 = vadd.f32 %v9608_v53, %v3416_v7  ;;  %v3419_v57 = vadd.f32 %v9619_v0, %v9514_v37 }
 0x1f6   : > { %v4951_v21 = vpop.f32.mrf.mxu0  ;;  %v5241_v32 = vadd.f32 %v5240_v8, %v5050_v20  ;;  %v5310_v29 = vadd.f32 %v5309_v28, %v5279_v4  ;;  %v6187_v47 = vpack.c.bf16 %v5053_v38, %v5052_v18  ;;  %v5051_v50 = vadd.f32 %v4938_v36, %v4553_v6 }
 0x1f7   : > { %v4453_v56 = vpop.f32.mrf.mxu1  ;;  %v4558_v39 = vadd.f32 %v6842_v30, %v9606_v58  ;;  %v3422_v36 = vadd.f32 %v9625_v60, %v9517_v2  ;;  %v5283_v53 = vmul.f32 %v5053_v38, %v5053_v38  ;;  %v3806_v0 = vadd.f32 %v9614_v51, %v3419_v57 }
 0x1f8   : > { %v6891_v25 = vpop.f32.mrf.mxu0  ;;  %v5311_v33 = vadd.f32 %v5310_v29, %v5280_v61  ;;  %6251 = vst [vmem:[%s9707_s21 + $0x18] sm:$0xff] %v6187_v47   ;;  %v4556_v54 = vadd.f32 %v4453_v56, %v3802_v63  ;;  %v6182_v48 = vpack.c.bf16 %v5051_v50, %v5050_v20  ;;  %v5242_v41 = vadd.f32 %v5241_v32, %v5051_v50 }
 0x1f9   : > { %v5281_v34 = vmul.f32 %v5051_v50, %v5051_v50  ;;  %v6843_v14 = vpop.f32.mrf.mxu1  ;;  %v5056_v42 = vadd.f32 %v6890_v24, %v4558_v39  ;;  %v3420_v2 = vadd.f32 %v9627_v46, %v9520_v17  ;;  %v3809_v8 = vadd.f32 %v9617_v62, %v3422_v36 }
 0x1fa   : > { %v4954_v19 = vpop.f32.mrf.mxu0  ;;  %v4559_v12 = vadd.f32 %v6843_v14, %v3805_v26  ;;  %6250 = vst [vmem:[%s9707_s21 + $0x10] sm:$0xff] %v6182_v48   ;;  %v5243_v22 = vadd.f32 %v5242_v41, %v5052_v18  ;;  %v5054_v27 = vadd.f32 %v4951_v21, %v4556_v54  ;;  %v3423_v62 = vadd.f32 %v9634_v16, %v9526_v13 }
 0x1fb   : > { %v5312_v58 = vadd.f32 %v5311_v33, %v5281_v34  ;;  %v4456_v35 = vpop.f32.mrf.mxu1  ;;  %v3807_v46 = vadd.f32 %v9623_v45, %v3420_v2  ;;  %v3426_v47 = vadd.f32 %v9640_v59, %v9529_v44  ;;  %v5286_v56 = vmul.f32 %v5056_v42, %v5056_v42 }
 0x1fc   : > { %v6894_v1 = vpop.f32.mrf.mxu0  ;;  %v5057_v23 = vadd.f32 %v6891_v25, %v4559_v12  ;;  %v4557_v49 = vadd.f32 %v4456_v35, %v3803_v10  ;;  %v5244_v52 = vadd.f32 %v5243_v22, %v5053_v38  ;;  %v5284_v24 = vmul.f32 %v5054_v27, %v5054_v27 }
 0x1fd   : > { %v5313_v20 = vadd.f32 %v5312_v58, %v5282_v43  ;;  %v6846_v37 = vpop.f32.mrf.mxu1  ;;  %v3810_v16 = vadd.f32 %v9629_v9, %v3423_v62  ;;  %v3424_v44 = vadd.f32 %v9642_v3, %v9532_v11  ;;  %v3813_v36 = vadd.f32 %v9632_v40, %v3426_v47  ;;  %v10001_v3 = vld [vmem:[#allocation5_spill] sm:$0xff] }
 0x1fe   : > { %v4967_v4 = vpop.f32.mrf.mxu0  ;;  %v6197_v60 = vpack.c.bf16 %v5057_v23, %v5056_v42  ;;  %v5055_v28 = vadd.f32 %v4954_v19, %v4557_v49  ;;  %v5245_v6 = vadd.f32 %v5244_v52, %v5054_v27  ;;  %v4562_v38 = vadd.f32 %v6846_v37, %v9621_v5  ;;  %v10004_v52 = vld [vmem:[#allocation11_spill] sm:$0xff] }
 0x1ff   : > { %v5314_v21 = vadd.f32 %v5313_v20, %v5283_v53  ;;  %v4469_v63 = vpop.f32.mrf.mxu1  ;;  %v5287_v45 = vmul.f32 %v5057_v23, %v5057_v23  ;;  %v10002_v53 = vld [vmem:[#allocation3_spill] sm:$0xff] }
 0x200   : > { %v6895_v18 = vpop.f32.mrf.mxu0  ;;  %6253 = vst [vmem:[%s9707_s21 + $0x28] sm:$0xff] %v6197_v60   ;;  %v6192_v7 = vpack.c.bf16 %v5055_v28, %v5054_v27  ;;  %v5285_v30 = vmul.f32 %v5055_v28, %v5055_v28  ;;  %v4560_v32 = vadd.f32 %v4469_v63, %v3806_v0  ;;  %v5246_v29 = vadd.f32 %v5245_v6, %v5055_v28  ;;  %v10003_v20 = vld [vmem:[#allocation7_spill] sm:$0xff] }
 0x201   : > { %v5315_v61 = vadd.f32 %v5314_v21, %v5284_v24  ;;  %v6847_v17 = vpop.f32.mrf.mxu1  ;;  %v5060_v54 = vadd.f32 %v6894_v1, %v4562_v38  ;;  %v3427_v40 = vadd.f32 %v9649_v55, %v10002_v53  ;;  %v3430_v37 = vadd.f32 %v10004_v52, %v10003_v20  ;;  %v10015_v52 = vld [vmem:[#allocation15_spill] sm:$0xff] }
 0x202   : > { %v4970_v51 = vpop.f32.mrf.mxu0  ;;  %6252 = vst [vmem:[%s9707_s21 + $0x20] sm:$0xff] %v6192_v7   ;;  %v4563_v25 = vadd.f32 %v6847_v17, %v3809_v8  ;;  %v5247_v26 = vadd.f32 %v5246_v29, %v5056_v42  ;;  %v5058_v5 = vadd.f32 %v4967_v4, %v4560_v32  ;;  %v3811_v4 = vadd.f32 %v10001_v3, %v3424_v44  ;;  %v10005_v32 = vld [vmem:[#allocation4_spill] sm:$0xff] }
 0x203   : > { %v5316_v33 = vadd.f32 %v5315_v61, %v5285_v30  ;;  %v4472_v39 = vpop.f32.mrf.mxu1  ;;  %v5290_v60 = vmul.f32 %v5060_v54, %v5060_v54  ;;  %v10006_v61 = vld [vmem:[#allocation9_spill] sm:$0xff]  ;;  %v10007_v29 = vld [vmem:[#allocation12_spill] sm:$0xff] }
 0x204   : > { %v5061_v19 = vadd.f32 %v6895_v18, %v4563_v25  ;;  %v4561_v48 = vadd.f32 %v4472_v39, %v3807_v46  ;;  %v5248_v14 = vadd.f32 %v5247_v26, %v5057_v23  ;;  %v5288_v1 = vmul.f32 %v5058_v5, %v5058_v5  ;;  %v10008_v25 = vld [vmem:[#allocation6_spill] sm:$0xff] }
 0x205   : > { %v6898_v50 = vpop.f32.mrf.mxu0  ;;  %v5317_v34 = vadd.f32 %v5316_v33, %v5286_v56  ;;  %v6850_v13 = vpop.f32.mrf.mxu1  ;;  %v3428_v17 = vadd.f32 %v10007_v29, %v10006_v61  ;;  %v3817_v56 = vadd.f32 %v10008_v25, %v3430_v37  ;;  %v10016_v37 = vld [vmem:[#allocation23_spill] sm:$0xff] }
 0x206   : > { %v6207_v59 = vpack.c.bf16 %v5061_v19, %v5060_v54  ;;  %v5059_v10 = vadd.f32 %v4970_v51, %v4561_v48  ;;  %v5249_v12 = vadd.f32 %v5248_v14, %v5058_v5  ;;  %v4566_v35 = vadd.f32 %v6850_v13, %v9636_v15 }
 0x207   : > { %v4983_v41 = vpop.f32.mrf.mxu0  ;;  %v5318_v43 = vadd.f32 %v5317_v34, %v5287_v45  ;;  %v4485_v22 = vpop.f32.mrf.mxu1  ;;  %v5291_v7 = vmul.f32 %v5061_v19, %v5061_v19  ;;  %v3814_v51 = vadd.f32 %v10005_v32, %v3427_v40  ;;  %v10014_v40 = vld [vmem:[#allocation14_spill] sm:$0xff] }
 0x208   : > { %6255 = vst [vmem:[%s9707_s21 + $0x38] sm:$0xff] %v6207_v59   ;;  %v6202_v58 = vpack.c.bf16 %v5059_v10, %v5058_v5  ;;  %v5289_v27 = vmul.f32 %v5059_v10, %v5059_v10  ;;  %v4564_v42 = vadd.f32 %v4485_v22, %v3810_v16  ;;  %v5250_v49 = vadd.f32 %v5249_v12, %v5059_v10  ;;  %v10010_v16 = vld [vmem:[#allocation10_spill] sm:$0xff] }
 0x209   : > { %v6899_v57 = vpop.f32.mrf.mxu0  ;;  %v5319_v23 = vadd.f32 %v5318_v43, %v5288_v1  ;;  %v6851_v11 = vpop.f32.mrf.mxu1  ;;  %v5064_v6 = vadd.f32 %v6898_v50, %v4566_v35  ;;  %v3815_v44 = vadd.f32 %v10010_v16, %v3428_v17  ;;  %v10011_v59 = vld [vmem:[#allocation18_spill] sm:$0xff]  ;;  %v10019_v17 = vld [vmem:[#allocation21_spill] sm:$0xff] }
 0x20a   : > { %6254 = vst [vmem:[%s9707_s21 + $0x30] sm:$0xff] %v6202_v58   ;;  %v4567_v0 = vadd.f32 %v6851_v11, %v3813_v36  ;;  %v5251_v28 = vadd.f32 %v5250_v49, %v5060_v54  ;;  %v5062_v15 = vadd.f32 %v4983_v41, %v4564_v42  ;;  %v3431_v10 = vadd.f32 %v9664_v31, %v10011_v59  ;;  %v10013_v36 = vld [vmem:[#allocation22_spill] sm:$0xff] }
 0x20b   : > { %v4986_v9 = vpop.f32.mrf.mxu0  ;;  %v5320_v18 = vadd.f32 %v5319_v23, %v5289_v27  ;;  %v4488_v8 = vpop.f32.mrf.mxu1  ;;  %v5294_v22 = vmul.f32 %v5064_v6, %v5064_v6 }
 0x20c   : > { %v5065_v24 = vadd.f32 %v6899_v57, %v4567_v0  ;;  %v4565_v21 = vadd.f32 %v4488_v8, %v3811_v4  ;;  %v5252_v38 = vadd.f32 %v5251_v28, %v5061_v19  ;;  %v5292_v50 = vmul.f32 %v5062_v15, %v5062_v15  ;;  %v10009_v19 = vld [vmem:[#allocation8_spill] sm:$0xff]  ;;  %v10012_v57 = vld [vmem:[#allocation13_spill] sm:$0xff] }
 0x20d   : > { %v6902_v2 = vpop.f32.mrf.mxu0  ;;  %v5321_v30 = vadd.f32 %v5320_v18, %v5290_v60  ;;  %v6854_v55 = vpop.f32.mrf.mxu1  ;;  %v3434_v12 = vadd.f32 %v10013_v36, %v10012_v57  ;;  %v3818_v20 = vadd.f32 %v10014_v40, %v3431_v10  ;;  %v3432_v0 = vadd.f32 %v10016_v37, %v10015_v52  ;;  %v10024_v57 = vld [vmem:[#allocation24_spill] sm:$0xff] }
 0x20e   : > { %v6217_v46 = vpack.c.bf16 %v5065_v24, %v5064_v6  ;;  %v5063_v62 = vadd.f32 %v4986_v9, %v4565_v21  ;;  %v5253_v26 = vadd.f32 %v5252_v38, %v5062_v15  ;;  %v4570_v48 = vadd.f32 %v6854_v55, %v10009_v19 }
 0x20f   : > { %v4999_v63 = vpop.f32.mrf.mxu0  ;;  %v5322_v33 = vadd.f32 %v5321_v30, %v5291_v7  ;;  %v4501_v5 = vpop.f32.mrf.mxu1  ;;  %v5295_v3 = vmul.f32 %v5065_v24, %v5065_v24 }
 0x210   : > { %6257 = vst [vmem:[%s9707_s21 + $0x48] sm:$0xff] %v6217_v46   ;;  %v6212_v39 = vpack.c.bf16 %v5063_v62, %v5062_v15  ;;  %v5293_v54 = vmul.f32 %v5063_v62, %v5063_v62  ;;  %v4568_v41 = vadd.f32 %v4501_v5, %v3814_v51  ;;  %v5254_v14 = vadd.f32 %v5253_v26, %v5063_v62  ;;  %v10017_v15 = vld [vmem:[#allocation16_spill] sm:$0xff]  ;;  %v10020_v62 = vld [vmem:[#allocation17_spill] sm:$0xff] }
 0x211   : > { %v6903_v47 = vpop.f32.mrf.mxu0  ;;  %v5323_v34 = vadd.f32 %v5322_v33, %v5292_v50  ;;  %v6855_v13 = vpop.f32.mrf.mxu1  ;;  %v5068_v9 = vadd.f32 %v6902_v2, %v4570_v48  ;;  %v3821_v8 = vadd.f32 %v10017_v15, %v3434_v12  ;;  %v3819_v46 = vadd.f32 %v10019_v17, %v3432_v0  ;;  %v10023_v26 = vld [vmem:[#allocation29_spill] sm:$0xff]  ;;  %v10025_v12 = vld [vmem:[#allocation2_spill] sm:$0xff]  ;;  %v10029_v0 = vld [vmem:[#allocation28_spill] sm:$0xff] }
 0x212   : > { %6256 = vst [vmem:[%s9707_s21 + $0x40] sm:$0xff] %v6212_v39   ;;  %v4571_v1 = vadd.f32 %v6855_v13, %v3817_v56  ;;  %v5255_v58 = vadd.f32 %v5254_v14, %v5064_v6  ;;  %v5066_v35 = vadd.f32 %v4999_v63, %v4568_v41  ;;  %v10022_v56 = vld [vmem:[#allocation20_spill] sm:$0xff] }
 0x213   : > { %v5002_v45 = vpop.f32.mrf.mxu0  ;;  %v5324_v27 = vadd.f32 %v5323_v34, %v5293_v54  ;;  %v4504_v42 = vpop.f32.mrf.mxu1  ;;  %v3438_v50 = vadd.f32 %v10023_v26, %v10022_v56  ;;  %v5298_v39 = vmul.f32 %v5068_v9, %v5068_v9 }
 0x214   : > { %v5069_v23 = vadd.f32 %v6903_v47, %v4571_v1  ;;  %v4569_v49 = vadd.f32 %v4504_v42, %v3815_v44  ;;  %v5256_v53 = vadd.f32 %v5255_v58, %v5065_v24  ;;  %v5296_v2 = vmul.f32 %v5066_v35, %v5066_v35  ;;  %v10018_v24 = vld [vmem:[#allocation19_spill] sm:$0xff]  ;;  %v10021_v47 = vld [vmem:[#allocation26_spill] sm:$0xff] }
 0x215   : > { %v6906_v43 = vpop.f32.mrf.mxu0  ;;  %v5325_v4 = vadd.f32 %v5324_v27, %v5294_v22  ;;  %v6858_v31 = vpop.f32.mrf.mxu1  ;;  %v3435_v25 = vadd.f32 %v10021_v47, %v10020_v62  ;;  %v10026_v1 = vld [vmem:[#allocation30_spill] sm:$0xff] }
 0x216   : > { %v6227_v60 = vpack.c.bf16 %v5069_v23, %v5068_v9  ;;  %v5067_v28 = vadd.f32 %v5002_v45, %v4569_v49  ;;  %v5257_v6 = vadd.f32 %v5256_v53, %v5066_v35  ;;  %v4574_v38 = vadd.f32 %v6858_v31, %v10018_v24 }
 0x217   : > { %v5015_v11 = vpop.f32.mrf.mxu0  ;;  %v5326_v21 = vadd.f32 %v5325_v4, %v5295_v3  ;;  %v4517_v63 = vpop.f32.mrf.mxu1  ;;  %v5299_v13 = vmul.f32 %v5069_v23, %v5069_v23  ;;  %v3822_v36 = vadd.f32 %v10024_v57, %v3435_v25  ;;  %v3436_v22 = vadd.f32 %v10026_v1, %v10025_v12 }
 0x218   : > { %6259 = vst [vmem:[%s9707_s21 + $0x58] sm:$0xff] %v6227_v60   ;;  %v6222_v7 = vpack.c.bf16 %v5067_v28, %v5066_v35  ;;  %v5297_v30 = vmul.f32 %v5067_v28, %v5067_v28  ;;  %v4572_v55 = vadd.f32 %v4517_v63, %v3818_v20  ;;  %v5258_v61 = vadd.f32 %v5257_v6, %v5067_v28  ;;  %v10027_v35 = vld [vmem:[#allocation25_spill] sm:$0xff] }
 0x219   : > { %v6907_v18 = vpop.f32.mrf.mxu0  ;;  %v5327_v51 = vadd.f32 %v5326_v21, %v5296_v2  ;;  %v6859_v29 = vpop.f32.mrf.mxu1  ;;  %v5072_v45 = vadd.f32 %v6906_v43, %v4574_v38  ;;  %v3825_v42 = vadd.f32 %v10027_v35, %v3438_v50  ;;  %v3823_v60 = vadd.f32 %v10029_v0, %v3436_v22 }
 0x21a   : > { %6258 = vst [vmem:[%s9707_s21 + $0x50] sm:$0xff] %v6222_v7   ;;  %v4575_v33 = vadd.f32 %v6859_v29, %v3821_v8  ;;  %v5259_v54 = vadd.f32 %v5258_v61, %v5068_v9  ;;  %v5070_v48 = vadd.f32 %v5015_v11, %v4572_v55 }
 0x21b   : > { %v5018_v32 = vpop.f32.mrf.mxu0  ;;  %v5328_v19 = vadd.f32 %v5327_v51, %v5297_v30  ;;  %v4520_v41 = vpop.f32.mrf.mxu1 }
 0x21c   : > { %v5073_v34 = vadd.f32 %v6907_v18, %v4575_v33  ;;  %v4573_v14 = vadd.f32 %v4520_v41, %v3819_v46  ;;  %v5260_v44 = vadd.f32 %v5259_v54, %v5069_v23  ;;  %v5300_v43 = vmul.f32 %v5070_v48, %v5070_v48  ;;  %v10028_v23 = vld [vmem:[#allocation27_spill] sm:$0xff] }
 0x21d   : > { %v6910_v5 = vpop.f32.mrf.mxu0  ;;  %v5329_v16 = vadd.f32 %v5328_v19, %v5298_v39  ;;  %v6862_v59 = vpop.f32.mrf.mxu1  ;;  %v5302_v18 = vmul.f32 %v5072_v45, %v5072_v45 }
 0x21e   : > { %v6237_v58 = vpack.c.bf16 %v5073_v34, %v5072_v45  ;;  %v5071_v27 = vadd.f32 %v5018_v32, %v4573_v14  ;;  %v5261_v9 = vadd.f32 %v5260_v44, %v5070_v48  ;;  %v4578_v53 = vadd.f32 %v6862_v59, %v10028_v23 }
 0x21f   : > { %v5031_v10 = vpop.f32.mrf.mxu0  ;;  %v5330_v49 = vadd.f32 %v5329_v16, %v5299_v13  ;;  %v4533_v11 = vpop.f32.mrf.mxu1  ;;  %v5303_v30 = vmul.f32 %v5073_v34, %v5073_v34 }
 0x220   : > { %6261 = vst [vmem:[%s9707_s21 + $0x68] sm:$0xff] %v6237_v58   ;;  %v6232_v3 = vpack.c.bf16 %v5071_v27, %v5070_v48  ;;  %v5301_v4 = vmul.f32 %v5071_v27, %v5071_v27  ;;  %v4576_v31 = vadd.f32 %v4533_v11, %v3822_v36  ;;  %v5262_v20 = vadd.f32 %v5261_v9, %v5071_v27 }
 0x221   : > { %v5331_v40 = vadd.f32 %v5330_v49, %v5300_v43  ;;  %v6863_v52 = vpop.f32.mrf.mxu1  ;;  %v6911_v37 = vpop.f32.mrf.mxu0  ;;  %v5076_v21 = vadd.f32 %v6910_v5, %v4578_v53 }
 0x222   : > { %6260 = vst [vmem:[%s9707_s21 + $0x60] sm:$0xff] %v6232_v3   ;;  %v4579_v28 = vadd.f32 %v6863_v52, %v3825_v42  ;;  %v5263_v15 = vadd.f32 %v5262_v20, %v5072_v45  ;;  %v5074_v6 = vadd.f32 %v5031_v10, %v4576_v31 }
 0x223   : > { %v5332_v8 = vadd.f32 %v5331_v40, %v5301_v4  ;;  %v4536_v2 = vpop.f32.mrf.mxu1  ;;  %v5034_v55 = vpop.f32.mrf.mxu0  ;;  %v5306_v56 = vmul.f32 %v5076_v21, %v5076_v21 }
 0x224   : > { %v5077_v63 = vadd.f32 %v6911_v37, %v4579_v28  ;;  %v4577_v7 = vadd.f32 %v4536_v2, %v3823_v60  ;;  %v5264_v38 = vadd.f32 %v5263_v15, %v5073_v34  ;;  %v5304_v29 = vmul.f32 %v5074_v6, %v5074_v6 }
 0x225   : > { %v5333_v24 = vadd.f32 %v5332_v8, %v5302_v18 }
 0x226   : > { %v6247_v32 = vpack.c.bf16 %v5077_v63, %v5076_v21  ;;  %v5075_v51 = vadd.f32 %v5034_v55, %v4577_v7  ;;  %v5265_v61 = vadd.f32 %v5264_v38, %v5074_v6  ;;  %v5307_v33 = vmul.f32 %v5077_v63, %v5077_v63 }
 0x227   : > { %v5334_v17 = vadd.f32 %v5333_v24, %v5303_v30 }
 0x228   : > { %6263 = vst [vmem:[%s9707_s21 + $0x78] sm:$0xff] %v6247_v32   ;;  %v6242_v46 = vpack.c.bf16 %v5075_v51, %v5074_v6  ;;  %v5305_v62 = vmul.f32 %v5075_v51, %v5075_v51  ;;  %v5266_v25 = vadd.f32 %v5265_v61, %v5075_v51 }
 0x229   : > { %v5335_v47 = vadd.f32 %v5334_v17, %v5304_v29 }
 0x22a   : > { %6262 = vst [vmem:[%s9707_s21 + $0x70] sm:$0xff] %v6242_v46   ;;  %v5267_v26 = vadd.f32 %v5266_v25, %v5076_v21 }
 0x22b   : > { %v5336_v50 = vadd.f32 %v5335_v47, %v5305_v62 }
 0x22c   : > { %v5268_v5 = vadd.f32 %v5267_v26, %v5077_v63 }
 0x22d   : > { %v5337_v39 = vadd.f32 %v5336_v50, %v5306_v56 }
 0x22e   : > { %v5269_v54 = vrot.slane %v5268_v5, 4 }
 0x22f   : > { %v5338_v19 = vadd.f32 %v5337_v39, %v5307_v33 }
 0x230   : > { %v5270_v48 = vadd.f32 %v5269_v54, %v5268_v5 }
 0x231   : > { %v5339_v41 = vrot.slane %v5338_v19, 4 }
 0x232   : > { %v5271_v45 = vrot.slane %v5270_v48, 2 }
 0x233   : > { %v5340_v34 = vadd.f32 %v5339_v41, %v5338_v19 }
 0x234   : > { %v5272_v14 = vadd.f32 %v5271_v45, %v5270_v48 }
 0x235   : > { %v5341_v13 = vrot.slane %v5340_v34, 2 }
 0x236   : > { %v5273_v16 = vrot.slane %v5272_v14, 1 }
 0x237   : > { %v5342_v44 = vadd.f32 %v5341_v13, %v5340_v34 }
 0x238   : > { %v5274_v59 = vadd.f32 %v5273_v16, %v5272_v14 }
 0x239   : > { %v5343_v10 = vrot.slane %v5342_v44, 1 }
 0x23a   : > { %5275 = vst [vmem:[%s261_s24] sm:$0x1] %v5274_v59 }
 0x23b   : > { %v5344_v57 = vadd.f32 %v5343_v10, %v5342_v44 }
 0x23d   : > { %5345 = vst [vmem:[%s267_s27] sm:$0x1] %v5344_v57 }
 0x23e PF: > { %s15_s17 = sadd.s32 1, %s7104_s17   ;;  %s10030_s15 = smov %s7100_s16 }
 0x23f   : > { %p12_p5 = scmp.ge.s32.totalorder %s15_s17, 4   ;;  %s10031_s16 = smov %s10033_s18 }
 0x241   :  { %14 = sbr.rel (!%p12_p5) target bundleno = 2 (0x2), region = 95 }

</bundles_post_ra>
